<compile_context>
chip_gen: v6e
topology: v6e:2x2x1
jax: 0.10.0
libtpu: 0.0.40
codegen_flags: <defaults>
</compile_context>

<pallas_src>
import functools
import math

import jax
import jax.numpy as jnp
from jax.experimental import pallas as pl
from jax.experimental.pallas import tpu as pltpu

# ----------------------------- configuration (small shapes) -----------------------------
N_NODES = 8            # n  (sourceL of the fused embedding x and of x1/x2)
EMB = 16               # embedding_dim (per-graph)
HID = 32               # hidden_dim
BATCH = 4
MAX_DEC_LEN = 8        # max_decoding_len
N_GLIMPSES = 1
TANH_EXPLORATION = 10.0
USE_TANH = True


def _sigmoid(x):
    # single tanh instead of exp + divide
    return 0.5 * (jnp.tanh(0.5 * x) + 1.0)


def _softmax_last(x):
    m = jnp.max(x, axis=-1, keepdims=True)
    e = jnp.exp(x - m)
    return e / jnp.sum(e, axis=-1, keepdims=True)


# --------------------- encoder LSTM + fused ref projections (1 launch) ------------------
def _encoder_project_kernel(x_ref, wih_ref, whh_ref, b_ref, h0_ref, c0_ref,
                            refw_ref, refb_ref,
                            e_ref, ht_ref, ct_ref, *, hid, n_steps):
    h = h0_ref[...]
    c = c0_ref[...]
    wih = wih_ref[...]
    whh = whh_ref[...]
    b = b_ref[...]
    refw = refw_ref[...]            # [H, 2H]  = [glimpse_ref_w | pointer_ref_w]
    refb = refb_ref[...]            # [1, 2H]
    for l in range(n_steps):        # static unroll: 8 tiny steps, weights stay in vregs
        x_t = x_ref[l]                                                   # [B, n]
        gates = (jnp.dot(x_t, wih, preferred_element_type=jnp.float32)
                 + jnp.dot(h, whh, preferred_element_type=jnp.float32) + b)
        i_g = _sigmoid(gates[:, 0 * hid:1 * hid])
        f_g = _sigmoid(gates[:, 1 * hid:2 * hid])
        g_g = jnp.tanh(gates[:, 2 * hid:3 * hid])
        o_g = _sigmoid(gates[:, 3 * hid:4 * hid])
        c = f_g * c + i_g * g_g
        h = o_g * jnp.tanh(c)
        # project_ref (Conv1d k=1) for glimpse & pointer attention, fused into one matmul
        e_ref[l] = jnp.dot(h, refw, preferred_element_type=jnp.float32) + refb
    ht_ref[...] = h
    ct_ref[...] = c


def encoder_project(x_tmajor, w_ih_t, w_hh_t, bias, h0, c0, ref_w_t, ref_b):
    L, B, _ = x_tmajor.shape
    H = h0.shape[-1]
    kernel = functools.partial(_encoder_project_kernel, hid=H, n_steps=L)
    out_shapes = (jax.ShapeDtypeStruct((L, B, ref_w_t.shape[1]), jnp.float32),  # e_g|e_p
                  jax.ShapeDtypeStruct((B, H), jnp.float32),                    # h_T
                  jax.ShapeDtypeStruct((B, H), jnp.float32))                    # c_T
    return pl.pallas_call(kernel, out_shape=out_shapes)(
        x_tmajor, w_ih_t, w_hh_t, bias, h0, c0, ref_w_t, ref_b)


# ------------------ fully fused decoder: LSTM + attention + sampling --------------------
def _fused_decoder_kernel(gum_ref, x1_ref, x2_ref, in1_0_ref, in2_0_ref,
                          h0_ref, c0_ref, eg_ref, ep_ref,
                          wia_ref, wib_ref, whid_ref, bl_ref,
                          gqw_ref, gqb_ref, gv_ref,
                          pqw_ref, pqb_ref, pv_ref,
                          probs_ref, idx_ref, ht_ref, ct_ref,
                          hx_sc, cx_sc, mask_sc, in1_sc, in2_sc,
                          *, hid, use_tanh, tanh_c, n_glimpses):
    t = pl.program_id(0)

    @pl.when(t == 0)
    def _():
        hx_sc[...] = h0_ref[...]
        cx_sc[...] = c0_ref[...]
        mask_sc[...] = jnp.zeros_like(mask_sc)
        in1_sc[...] = in1_0_ref[...]
        in2_sc[...] = in2_0_ref[...]

    # --- LSTM cell; decoder-input weights pre-split so no in-kernel concat is needed ---
    hx = hx_sc[...]
    cx = cx_sc[...]
    gates = (jnp.dot(in1_sc[...], wia_ref[...], preferred_element_type=jnp.float32)
             + jnp.dot(in2_sc[...], wib_ref[...], preferred_element_type=jnp.float32)
             + jnp.dot(hx, whid_ref[...], preferred_element_type=jnp.float32)
             + bl_ref[...])
    i_g = _sigmoid(gates[:, 0 * hid:1 * hid])
    f_g = _sigmoid(gates[:, 1 * hid:2 * hid])
    g_g = jnp.tanh(gates[:, 2 * hid:3 * hid])
    o_g = _sigmoid(gates[:, 3 * hid:4 * hid])
    cy = f_g * cx + i_g * g_g
    hy = o_g * jnp.tanh(cy)
    hx_sc[...] = hy
    cx_sc[...] = cy
    ht_ref[...] = hy
    ct_ref[...] = cy

    mask = mask_sc[...]                      # [B, L] 1.0 where previously selected
    neg = jnp.float32(-1e9)                  # finite "masked" value (NaN-safe)
    e_g = eg_ref[...]                        # [B, L, H] projected ctx (glimpse)
    e_p = ep_ref[...]                        # [B, L, H] projected ctx (pointer)

    def attn_logits(q, e_blh, w_q, b_q, v_row):
        qp = jnp.dot(q, w_q, preferred_element_type=jnp.float32) + b_q   # [B, H]
        th = jnp.tanh(qp[:, None, :] + e_blh)                            # [B, L, H]
        return jnp.sum(th * v_row[None, :, :], axis=-1)                  # [B, L]

    # --- glimpse attention(s) (use_tanh=False) ---
    g_l = hy
    for _ in range(n_glimpses):
        lg = attn_logits(g_l, e_g, gqw_ref[...], gqb_ref[...], gv_ref[...])
        lg = jnp.where(mask > 0.5, neg, lg)
        p_g = _softmax_last(lg)
        g_l = jnp.sum(e_g * p_g[:, :, None], axis=1)                     # [B, H]

    # --- pointer attention ---
    lp = attn_logits(g_l, e_p, pqw_ref[...], pqb_ref[...], pv_ref[...])
    if use_tanh:
        lp = tanh_c * jnp.tanh(lp)
    lp = jnp.where(mask > 0.5, neg, lp)
    probs_ref[0] = _softmax_last(lp)

    # --- stochastic sampling: Gumbel-max over the masked logits (== multinomial(probs)) ---
    # Gumbel noise is precomputed outside the kernel (no in-kernel PRNG primitives).
    # TODO(synk): the race-condition resampling loop of decode_stochastic is omitted
    #             (masking already gives previously selected indices ~zero probability).
    y = lp + gum_ref[0]                                                    # [B, L]
    lane = jax.lax.broadcasted_iota(jnp.int32, lp.shape, 1).astype(jnp.float32)
    y_max = jnp.max(y, axis=-1, keepdims=True)
    n_src = jnp.float32(lp.shape[-1])
    idx_f = jnp.min(jnp.where(y >= y_max, lane, n_src), axis=-1, keepdims=True)  # [B, 1]
    idx_ref[0] = idx_f.astype(jnp.int32)

    one_hot = (lane == idx_f).astype(jnp.float32)                          # [B, L]
    mask_sc[...] = jnp.maximum(mask, one_hot)

    # --- next decoder input = [x1[t] | x2[idx]]; gather as one-hot weighted reduction ---
    x2_sel = jnp.sum(x2_ref[...] * one_hot[:, :, None], axis=1)            # [B, E]
    in1_sc[...] = x1_ref[0]
    in2_sc[...] = x2_sel


def fused_decode(gumbel, x1_t, x2_ble, in1_0, in2_0, h0, c0, e_g, e_p, params):
    T, B, E = x1_t.shape
    L = x2_ble.shape[1]
    H = h0.shape[-1]
    kernel = functools.partial(_fused_decoder_kernel, hid=H, use_tanh=USE_TANH,
                               tanh_c=TANH_EXPLORATION, n_glimpses=N_GLIMPSES)
    const2 = lambda t: (0, 0)
    const3 = lambda t: (0, 0, 0)
    grid_spec = pltpu.PrefetchScalarGridSpec(
        num_scalar_prefetch=0,
        grid=(T,),
        in_specs=[
            pl.BlockSpec((1, B, L), lambda t: (t, 0, 0)),           # gumbel noise [t]
            pl.BlockSpec((1, B, E), lambda t: (t, 0, 0)),           # x1[t]
            pl.BlockSpec((B, L, E), const3),                        # x2
            pl.BlockSpec((B, E), const2),                           # dec_in0 half a
            pl.BlockSpec((B, E), const2),                           # dec_in0 half b
            pl.BlockSpec((B, H), const2),                           # h0
            pl.BlockSpec((B, H), const2),                           # c0
            pl.BlockSpec((B, L, H), const3),                        # e_g
            pl.BlockSpec((B, L, H), const3),                        # e_p
            pl.BlockSpec((E, 4 * H), const2),                       # W_in (x1 half)
            pl.BlockSpec((E, 4 * H), const2),                       # W_in (x2 half)
            pl.BlockSpec((H, 4 * H), const2),                       # W_hid
            pl.BlockSpec((1, 4 * H), const2),                       # LSTM bias
            pl.BlockSpec((H, H), const2),                           # glimpse q W
            pl.BlockSpec((1, H), const2),                           # glimpse q b
            pl.BlockSpec((1, H), const2),                           # glimpse v
            pl.BlockSpec((H, H), const2),                           # pointer q W
            pl.BlockSpec((1, H), const2),                           # pointer q b
            pl.BlockSpec((1, H), const2),                           # pointer v
        ],
        out_specs=[
            pl.BlockSpec((1, B, L), lambda t: (t, 0, 0)),           # probs per step
            pl.BlockSpec((1, B, 1), lambda t: (t, 0, 0)),           # sampled idx per step
            pl.BlockSpec((B, H), const2),                           # final h
            pl.BlockSpec((B, H), const2),                           # final c
        ],
        scratch_shapes=[
            pltpu.VMEM((B, H), jnp.float32), pltpu.VMEM((B, H), jnp.float32),
            pltpu.VMEM((B, L), jnp.float32),
            pltpu.VMEM((B, E), jnp.float32), pltpu.VMEM((B, E), jnp.float32),
        ],
    )
    out_shapes = (jax.ShapeDtypeStruct((T, B, L), jnp.float32),
                  jax.ShapeDtypeStruct((T, B, 1), jnp.int32),
                  jax.ShapeDtypeStruct((B, H), jnp.float32),
                  jax.ShapeDtypeStruct((B, H), jnp.float32))
    return pl.pallas_call(
        kernel,
        out_shape=out_shapes,
        grid_spec=grid_spec,
        compiler_params=pltpu.CompilerParams(dimension_semantics=("arbitrary",)),
    )(gumbel, x1_t, x2_ble, in1_0, in2_0, h0, c0, e_g, e_p,
      params['dec_w_in_a_t'], params['dec_w_in_b_t'], params['dec_w_hid_t'],
      params['dec_b_lstm'],
      params['g_q_w_t'], params['g_q_b'], params['g_v'],
      params['p_q_w_t'], params['p_q_b'], params['p_v'])


# --------------------------------------- full forward -----------------------------------
@jax.jit
def matching_pointer_network_forward(params, x, x1, x2, key):
    B = x.shape[0]
    H, E = HID, EMB
    x_t = jnp.transpose(x, (1, 0, 2))          # [n, B, n]   time-major encoder input
    x1_t = jnp.transpose(x1, (1, 0, 2))        # [T, B, E]
    T = x1_t.shape[0]
    L = x2.shape[1]

    # ---------------- encoder + fused ref projections (1 pallas_call) ----------------
    h0 = jnp.broadcast_to(params['enc_h0'][None, :], (B, H))
    c0 = jnp.broadcast_to(params['enc_c0'][None, :], (B, H))
    ref_w_t = jnp.concatenate([params['g_ref_w_t'], params['p_ref_w_t']], axis=1)   # [H,2H]
    ref_b = jnp.concatenate([params['g_ref_b'], params['p_ref_b']], axis=1)         # [1,2H]
    e_all, h_t, c_t = encoder_project(x_t, params['enc_w_ih_t'], params['enc_w_hh_t'],
                                      params['enc_b'], h0, c0, ref_w_t, ref_b)
    e_g = jnp.transpose(e_all[:, :, :H], (1, 0, 2))      # [B, L, H]
    e_p = jnp.transpose(e_all[:, :, H:], (1, 0, 2))      # [B, L, H]

    # ---------------- fused decoder (1 pallas_call for all steps) ----------------
    dec0 = params['dec_in_0']
    in1_0 = jnp.broadcast_to(dec0[None, :E], (B, E))
    in2_0 = jnp.broadcast_to(dec0[None, E:], (B, E))
    # Precomputed Gumbel noise for in-kernel Gumbel-max sampling (== multinomial on probs)
    gumbel = jax.random.gumbel(key, (T, B, L), jnp.float32)

    probs, idxs, h_fin, c_fin = fused_decode(gumbel, x1_t, x2, in1_0, in2_0,
                                             h_t, c_t, e_g, e_p, params)
    return probs, idxs[..., 0], (h_fin, c_fin)


# ----------------------------------- parameter init -------------------------------------
def init_params(key):
    ks = jax.random.split(key, 20)
    u = lambda k, shape, b: jax.random.uniform(k, shape, jnp.float32, -b, b)
    H, E, n = HID, EMB, N_NODES
    bH = 1.0 / math.sqrt(H)
    b2E = 1.0 / math.sqrt(2 * E)
    p = {}
    # Encoder: nn.LSTM(n_nodes, H) + learned init state
    p['enc_w_ih_t'] = u(ks[0], (n, 4 * H), bH)
    p['enc_w_hh_t'] = u(ks[1], (H, 4 * H), bH)
    p['enc_b'] = u(ks[2], (1, 4 * H), bH)          # b_ih + b_hh fused
    p['enc_h0'] = u(ks[3], (H,), bH)
    p['enc_c0'] = u(ks[4], (H,), bH)
    # Decoder trainable first input
    p['dec_in_0'] = u(ks[5], (2 * E,), b2E)
    # Decoder LSTM-cell weights (input weight pre-split into x1-/x2- halves)
    p['dec_w_in_a_t'] = u(ks[6], (E, 4 * H), b2E)
    p['dec_w_in_b_t'] = u(ks[7], (E, 4 * H), b2E)
    p['dec_w_hid_t'] = u(ks[8], (H, 4 * H), bH)
    p['dec_b_lstm'] = u(ks[9], (1, 4 * H), bH)     # both Linear biases fused
    # Glimpse attention (use_tanh=False)
    p['g_q_w_t'] = u(ks[10], (H, H), bH)
    p['g_q_b'] = u(ks[11], (1, H), bH)
    p['g_ref_w_t'] = u(ks[12], (H, H), bH)
    p['g_ref_b'] = u(ks[13], (1, H), bH)
    p['g_v'] = u(ks[14], (1, H), bH)
    # Pointer attention (use_tanh=USE_TANH, C=TANH_EXPLORATION)
    p['p_q_w_t'] = u(ks[15], (H, H), bH)
    p['p_q_b'] = u(ks[16], (1, H), bH)
    p['p_ref_w_t'] = u(ks[17], (H, H), bH)
    p['p_ref_b'] = u(ks[18], (1, H), bH)
    p['p_v'] = u(ks[19], (1, H), bH)
    return p


if __name__ == "__main__":
    key = jax.random.PRNGKey(0)
    k_param, k_x, k_x1, k_x2, k_sample = jax.random.split(key, 5)
    params = init_params(k_param)

    x = jax.random.normal(k_x, (BATCH, N_NODES, N_NODES), jnp.float32)       # fused emb
    x1 = jax.random.normal(k_x1, (BATCH, MAX_DEC_LEN, EMB), jnp.float32)     # graph-1 emb
    x2 = jax.random.normal(k_x2, (BATCH, MAX_DEC_LEN, EMB), jnp.float32)     # graph-2 emb

    pointer_probs, input_idxs, hidden = matching_pointer_network_forward(
        params, x, x1, x2, k_sample)
    jax.block_until_ready((pointer_probs, input_idxs, hidden))

    assert pointer_probs.shape == (MAX_DEC_LEN, BATCH, N_NODES)
    assert input_idxs.shape == (MAX_DEC_LEN, BATCH)
    # masking sanity: each batch element selects every node exactly once
    import numpy as np
    idxs_np = np.asarray(input_idxs)
    for b in range(BATCH):
        assert len(set(idxs_np[:, b].tolist())) == MAX_DEC_LEN
    probs_np = np.asarray(pointer_probs)
    assert np.all(np.isfinite(probs_np))
    assert np.allclose(probs_np.sum(-1), 1.0, atol=1e-4)
    print("KERNEL_OK")
</pallas_src>

<mosaic_0001>
module attributes {stable_mosaic.version = 11 : i64} {
  func.func @_encoder_project_kernel(%arg0: memref<8x4x8xf32, #tpu.memory_space<vmem>>, %arg1: memref<8x128xf32, #tpu.memory_space<vmem>>, %arg2: memref<32x128xf32, #tpu.memory_space<vmem>>, %arg3: memref<1x128xf32, #tpu.memory_space<vmem>>, %arg4: memref<4x32xf32, #tpu.memory_space<vmem>>, %arg5: memref<4x32xf32, #tpu.memory_space<vmem>>, %arg6: memref<32x64xf32, #tpu.memory_space<vmem>>, %arg7: memref<1x64xf32, #tpu.memory_space<vmem>>, %arg8: memref<8x4x64xf32, #tpu.memory_space<vmem>>, %arg9: memref<4x32xf32, #tpu.memory_space<vmem>>, %arg10: memref<4x32xf32, #tpu.memory_space<vmem>>) attributes {dimension_semantics = [], scalar_prefetch = 0 : i64, scratch_operands = 0 : i64, tpu.core_type = #tpu.core_type<tc>} {
    %c0 = arith.constant 0 : index
    %c0_0 = arith.constant 0 : index
    %0 = vector.load %arg4[%c0, %c0_0] : memref<4x32xf32, #tpu.memory_space<vmem>>, vector<4x32xf32>
    %c0_1 = arith.constant 0 : index
    %c0_2 = arith.constant 0 : index
    %1 = vector.load %arg5[%c0_1, %c0_2] : memref<4x32xf32, #tpu.memory_space<vmem>>, vector<4x32xf32>
    %c0_3 = arith.constant 0 : index
    %c0_4 = arith.constant 0 : index
    %2 = vector.load %arg1[%c0_3, %c0_4] : memref<8x128xf32, #tpu.memory_space<vmem>>, vector<8x128xf32>
    %c0_5 = arith.constant 0 : index
    %c0_6 = arith.constant 0 : index
    %3 = vector.load %arg2[%c0_5, %c0_6] : memref<32x128xf32, #tpu.memory_space<vmem>>, vector<32x128xf32>
    %c0_7 = arith.constant 0 : index
    %c0_8 = arith.constant 0 : index
    %4 = vector.load %arg3[%c0_7, %c0_8] : memref<1x128xf32, #tpu.memory_space<vmem>>, vector<1x128xf32>
    %c0_9 = arith.constant 0 : index
    %c0_10 = arith.constant 0 : index
    %5 = vector.load %arg6[%c0_9, %c0_10] : memref<32x64xf32, #tpu.memory_space<vmem>>, vector<32x64xf32>
    %c0_11 = arith.constant 0 : index
    %c0_12 = arith.constant 0 : index
    %6 = vector.load %arg7[%c0_11, %c0_12] : memref<1x64xf32, #tpu.memory_space<vmem>>, vector<1x64xf32>
    %c0_13 = arith.constant 0 : index
    %c0_14 = arith.constant 0 : index
    %c0_15 = arith.constant 0 : index
    %7 = vector.load %arg0[%c0_13, %c0_14, %c0_15] : memref<8x4x8xf32, #tpu.memory_space<vmem>>, vector<1x4x8xf32>
    %8 = vector.shape_cast %7 : vector<1x4x8xf32> to vector<4x8xf32>
    %cst = arith.constant dense<0.000000e+00> : vector<4x128xf32>
    %9 = tpu.matmul %8, %2, %cst {dimension_numbers = #tpu.dot_dimension_numbers<[1], [0], [0], [1], [0, 0, 1, 1], [], []>} : vector<4x8xf32>, vector<8x128xf32>, vector<4x128xf32> -> vector<4x128xf32>
    %cst_16 = arith.constant dense<0.000000e+00> : vector<4x128xf32>
    %10 = tpu.matmul %0, %3, %cst_16 {dimension_numbers = #tpu.dot_dimension_numbers<[1], [0], [0], [1], [0, 0, 1, 1], [], []>} : vector<4x32xf32>, vector<32x128xf32>, vector<4x128xf32> -> vector<4x128xf32>
    %11 = arith.addf %9, %10 : vector<4x128xf32>
    %12 = vector.broadcast %4 : vector<1x128xf32> to vector<4x128xf32>
    %13 = arith.addf %11, %12 : vector<4x128xf32>
    %14 = vector.extract_strided_slice %13 {offsets = [0, 0], sizes = [4, 32], strides = [1, 1]} : vector<4x128xf32> to vector<4x32xf32>
    %cst_17 = arith.constant 5.000000e-01 : f32
    %15 = vector.broadcast %cst_17 : f32 to vector<4x32xf32>
    %16 = arith.mulf %15, %14 : vector<4x32xf32>
    %17 = math.tanh %16 : vector<4x32xf32>
    %cst_18 = arith.constant 1.000000e+00 : f32
    %18 = vector.broadcast %cst_18 : f32 to vector<4x32xf32>
    %19 = arith.addf %17, %18 : vector<4x32xf32>
    %cst_19 = arith.constant 5.000000e-01 : f32
    %20 = vector.broadcast %cst_19 : f32 to vector<4x32xf32>
    %21 = arith.mulf %20, %19 : vector<4x32xf32>
    %22 = vector.extract_strided_slice %13 {offsets = [0, 32], sizes = [4, 32], strides = [1, 1]} : vector<4x128xf32> to vector<4x32xf32>
    %cst_20 = arith.constant 5.000000e-01 : f32
    %23 = vector.broadcast %cst_20 : f32 to vector<4x32xf32>
    %24 = arith.mulf %23, %22 : vector<4x32xf32>
    %25 = math.tanh %24 : vector<4x32xf32>
    %cst_21 = arith.constant 1.000000e+00 : f32
    %26 = vector.broadcast %cst_21 : f32 to vector<4x32xf32>
    %27 = arith.addf %25, %26 : vector<4x32xf32>
    %cst_22 = arith.constant 5.000000e-01 : f32
    %28 = vector.broadcast %cst_22 : f32 to vector<4x32xf32>
    %29 = arith.mulf %28, %27 : vector<4x32xf32>
    %30 = vector.extract_strided_slice %13 {offsets = [0, 64], sizes = [4, 32], strides = [1, 1]} : vector<4x128xf32> to vector<4x32xf32>
    %31 = math.tanh %30 : vector<4x32xf32>
    %32 = vector.extract_strided_slice %13 {offsets = [0, 96], sizes = [4, 32], strides = [1, 1]} : vector<4x128xf32> to vector<4x32xf32>
    %cst_23 = arith.constant 5.000000e-01 : f32
    %33 = vector.broadcast %cst_23 : f32 to vector<4x32xf32>
    %34 = arith.mulf %33, %32 : vector<4x32xf32>
    %35 = math.tanh %34 : vector<4x32xf32>
    %cst_24 = arith.constant 1.000000e+00 : f32
    %36 = vector.broadcast %cst_24 : f32 to vector<4x32xf32>
    %37 = arith.addf %35, %36 : vector<4x32xf32>
    %cst_25 = arith.constant 5.000000e-01 : f32
    %38 = vector.broadcast %cst_25 : f32 to vector<4x32xf32>
    %39 = arith.mulf %38, %37 : vector<4x32xf32>
    %40 = arith.mulf %29, %1 : vector<4x32xf32>
    %41 = arith.mulf %21, %31 : vector<4x32xf32>
    %42 = arith.addf %40, %41 : vector<4x32xf32>
    %43 = math.tanh %42 : vector<4x32xf32>
    %44 = arith.mulf %39, %43 : vector<4x32xf32>
    %cst_26 = arith.constant dense<0.000000e+00> : vector<4x64xf32>
    %45 = tpu.matmul %44, %5, %cst_26 {dimension_numbers = #tpu.dot_dimension_numbers<[1], [0], [0], [1], [0, 0, 1, 1], [], []>} : vector<4x32xf32>, vector<32x64xf32>, vector<4x64xf32> -> vector<4x64xf32>
    %46 = vector.broadcast %6 : vector<1x64xf32> to vector<4x64xf32>
    %47 = arith.addf %45, %46 : vector<4x64xf32>
    %c0_27 = arith.constant 0 : index
    %c0_28 = arith.constant 0 : index
    %c0_29 = arith.constant 0 : index
    %48 = vector.load %arg8[%c0_27, %c0_28, %c0_29] : memref<8x4x64xf32, #tpu.memory_space<vmem>>, vector<1x4x64xf32>
    %49 = vector.shape_cast %48 : vector<1x4x64xf32> to vector<4x64xf32>
    %50 = vector.shape_cast %47 : vector<4x64xf32> to vector<1x4x64xf32>
    tpu.vector_store %arg8[%c0_27, %c0_28, %c0_29], %50 {strides = array<i32>} : memref<8x4x64xf32, #tpu.memory_space<vmem>>, vector<1x4x64xf32>,
    %c1 = arith.constant 1 : index
    %c0_30 = arith.constant 0 : index
    %c0_31 = arith.constant 0 : index
    %51 = vector.load %arg0[%c1, %c0_30, %c0_31] : memref<8x4x8xf32, #tpu.memory_space<vmem>>, vector<1x4x8xf32>
    %52 = vector.shape_cast %51 : vector<1x4x8xf32> to vector<4x8xf32>
    %cst_32 = arith.constant dense<0.000000e+00> : vector<4x128xf32>
    %53 = tpu.matmul %52, %2, %cst_32 {dimension_numbers = #tpu.dot_dimension_numbers<[1], [0], [0], [1], [0, 0, 1, 1], [], []>} : vector<4x8xf32>, vector<8x128xf32>, vector<4x128xf32> -> vector<4x128xf32>
    %cst_33 = arith.constant dense<0.000000e+00> : vector<4x128xf32>
    %54 = tpu.matmul %44, %3, %cst_33 {dimension_numbers = #tpu.dot_dimension_numbers<[1], [0], [0], [1], [0, 0, 1, 1], [], []>} : vector<4x32xf32>, vector<32x128xf32>, vector<4x128xf32> -> vector<4x128xf32>
    %55 = arith.addf %53, %54 : vector<4x128xf32>
    %56 = vector.broadcast %4 : vector<1x128xf32> to vector<4x128xf32>
    %57 = arith.addf %55, %56 : vector<4x128xf32>
    %58 = vector.extract_strided_slice %57 {offsets = [0, 0], sizes = [4, 32], strides = [1, 1]} : vector<4x128xf32> to vector<4x32xf32>
    %cst_34 = arith.constant 5.000000e-01 : f32
    %59 = vector.broadcast %cst_34 : f32 to vector<4x32xf32>
    %60 = arith.mulf %59, %58 : vector<4x32xf32>
    %61 = math.tanh %60 : vector<4x32xf32>
    %cst_35 = arith.constant 1.000000e+00 : f32
    %62 = vector.broadcast %cst_35 : f32 to vector<4x32xf32>
    %63 = arith.addf %61, %62 : vector<4x32xf32>
    %cst_36 = arith.constant 5.000000e-01 : f32
    %64 = vector.broadcast %cst_36 : f32 to vector<4x32xf32>
    %65 = arith.mulf %64, %63 : vector<4x32xf32>
    %66 = vector.extract_strided_slice %57 {offsets = [0, 32], sizes = [4, 32], strides = [1, 1]} : vector<4x128xf32> to vector<4x32xf32>
    %cst_37 = arith.constant 5.000000e-01 : f32
    %67 = vector.broadcast %cst_37 : f32 to vector<4x32xf32>
    %68 = arith.mulf %67, %66 : vector<4x32xf32>
    %69 = math.tanh %68 : vector<4x32xf32>
    %cst_38 = arith.constant 1.000000e+00 : f32
    %70 = vector.broadcast %cst_38 : f32 to vector<4x32xf32>
    %71 = arith.addf %69, %70 : vector<4x32xf32>
    %cst_39 = arith.constant 5.000000e-01 : f32
    %72 = vector.broadcast %cst_39 : f32 to vector<4x32xf32>
    %73 = arith.mulf %72, %71 : vector<4x32xf32>
    %74 = vector.extract_strided_slice %57 {offsets = [0, 64], sizes = [4, 32], strides = [1, 1]} : vector<4x128xf32> to vector<4x32xf32>
    %75 = math.tanh %74 : vector<4x32xf32>
    %76 = vector.extract_strided_slice %57 {offsets = [0, 96], sizes = [4, 32], strides = [1, 1]} : vector<4x128xf32> to vector<4x32xf32>
    %cst_40 = arith.constant 5.000000e-01 : f32
    %77 = vector.broadcast %cst_40 : f32 to vector<4x32xf32>
    %78 = arith.mulf %77, %76 : vector<4x32xf32>
    %79 = math.tanh %78 : vector<4x32xf32>
    %cst_41 = arith.constant 1.000000e+00 : f32
    %80 = vector.broadcast %cst_41 : f32 to vector<4x32xf32>
    %81 = arith.addf %79, %80 : vector<4x32xf32>
    %cst_42 = arith.constant 5.000000e-01 : f32
    %82 = vector.broadcast %cst_42 : f32 to vector<4x32xf32>
    %83 = arith.mulf %82, %81 : vector<4x32xf32>
    %84 = arith.mulf %73, %42 : vector<4x32xf32>
    %85 = arith.mulf %65, %75 : vector<4x32xf32>
    %86 = arith.addf %84, %85 : vector<4x32xf32>
    %87 = math.tanh %86 : vector<4x32xf32>
    %88 = arith.mulf %83, %87 : vector<4x32xf32>
    %cst_43 = arith.constant dense<0.000000e+00> : vector<4x64xf32>
    %89 = tpu.matmul %88, %5, %cst_43 {dimension_numbers = #tpu.dot_dimension_numbers<[1], [0], [0], [1], [0, 0, 1, 1], [], []>} : vector<4x32xf32>, vector<32x64xf32>, vector<4x64xf32> -> vector<4x64xf32>
    %90 = vector.broadcast %6 : vector<1x64xf32> to vector<4x64xf32>
    %91 = arith.addf %89, %90 : vector<4x64xf32>
    %c1_44 = arith.constant 1 : index
    %c0_45 = arith.constant 0 : index
    %c0_46 = arith.constant 0 : index
    %92 = vector.load %arg8[%c1_44, %c0_45, %c0_46] : memref<8x4x64xf32, #tpu.memory_space<vmem>>, vector<1x4x64xf32>
    %93 = vector.shape_cast %92 : vector<1x4x64xf32> to vector<4x64xf32>
    %94 = vector.shape_cast %91 : vector<4x64xf32> to vector<1x4x64xf32>
    tpu.vector_store %arg8[%c1_44, %c0_45, %c0_46], %94 {strides = array<i32>} : memref<8x4x64xf32, #tpu.memory_space<vmem>>, vector<1x4x64xf32>,
    %c2 = arith.constant 2 : index
    %c0_47 = arith.constant 0 : index
    %c0_48 = arith.constant 0 : index
    %95 = vector.load %arg0[%c2, %c0_47, %c0_48] : memref<8x4x8xf32, #tpu.memory_space<vmem>>, vector<1x4x8xf32>
    %96 = vector.shape_cast %95 : vector<1x4x8xf32> to vector<4x8xf32>
    %cst_49 = arith.constant dense<0.000000e+00> : vector<4x128xf32>
    %97 = tpu.matmul %96, %2, %cst_49 {dimension_numbers = #tpu.dot_dimension_numbers<[1], [0], [0], [1], [0, 0, 1, 1], [], []>} : vector<4x8xf32>, vector<8x128xf32>, vector<4x128xf32> -> vector<4x128xf32>
    %cst_50 = arith.constant dense<0.000000e+00> : vector<4x128xf32>
    %98 = tpu.matmul %88, %3, %cst_50 {dimension_numbers = #tpu.dot_dimension_numbers<[1], [0], [0], [1], [0, 0, 1, 1], [], []>} : vector<4x32xf32>, vector<32x128xf32>, vector<4x128xf32> -> vector<4x128xf32>
    %99 = arith.addf %97, %98 : vector<4x128xf32>
    %100 = vector.broadcast %4 : vector<1x128xf32> to vector<4x128xf32>
    %101 = arith.addf %99, %100 : vector<4x128xf32>
    %102 = vector.extract_strided_slice %101 {offsets = [0, 0], sizes = [4, 32], strides = [1, 1]} : vector<4x128xf32> to vector<4x32xf32>
    %cst_51 = arith.constant 5.000000e-01 : f32
    %103 = vector.broadcast %cst_51 : f32 to vector<4x32xf32>
    %104 = arith.mulf %103, %102 : vector<4x32xf32>
    %105 = math.tanh %104 : vector<4x32xf32>
    %cst_52 = arith.constant 1.000000e+00 : f32
    %106 = vector.broadcast %cst_52 : f32 to vector<4x32xf32>
    %107 = arith.addf %105, %106 : vector<4x32xf32>
    %cst_53 = arith.constant 5.000000e-01 : f32
    %108 = vector.broadcast %cst_53 : f32 to vector<4x32xf32>
    %109 = arith.mulf %108, %107 : vector<4x32xf32>
    %110 = vector.extract_strided_slice %101 {offsets = [0, 32], sizes = [4, 32], strides = [1, 1]} : vector<4x128xf32> to vector<4x32xf32>
    %cst_54 = arith.constant 5.000000e-01 : f32
    %111 = vector.broadcast %cst_54 : f32 to vector<4x32xf32>
    %112 = arith.mulf %111, %110 : vector<4x32xf32>
    %113 = math.tanh %112 : vector<4x32xf32>
    %cst_55 = arith.constant 1.000000e+00 : f32
    %114 = vector.broadcast %cst_55 : f32 to vector<4x32xf32>
    %115 = arith.addf %113, %114 : vector<4x32xf32>
    %cst_56 = arith.constant 5.000000e-01 : f32
    %116 = vector.broadcast %cst_56 : f32 to vector<4x32xf32>
    %117 = arith.mulf %116, %115 : vector<4x32xf32>
    %118 = vector.extract_strided_slice %101 {offsets = [0, 64], sizes = [4, 32], strides = [1, 1]} : vector<4x128xf32> to vector<4x32xf32>
    %119 = math.tanh %118 : vector<4x32xf32>
    %120 = vector.extract_strided_slice %101 {offsets = [0, 96], sizes = [4, 32], strides = [1, 1]} : vector<4x128xf32> to vector<4x32xf32>
    %cst_57 = arith.constant 5.000000e-01 : f32
    %121 = vector.broadcast %cst_57 : f32 to vector<4x32xf32>
    %122 = arith.mulf %121, %120 : vector<4x32xf32>
    %123 = math.tanh %122 : vector<4x32xf32>
    %cst_58 = arith.constant 1.000000e+00 : f32
    %124 = vector.broadcast %cst_58 : f32 to vector<4x32xf32>
    %125 = arith.addf %123, %124 : vector<4x32xf32>
    %cst_59 = arith.constant 5.000000e-01 : f32
    %126 = vector.broadcast %cst_59 : f32 to vector<4x32xf32>
    %127 = arith.mulf %126, %125 : vector<4x32xf32>
    %128 = arith.mulf %117, %86 : vector<4x32xf32>
    %129 = arith.mulf %109, %119 : vector<4x32xf32>
    %130 = arith.addf %128, %129 : vector<4x32xf32>
    %131 = math.tanh %130 : vector<4x32xf32>
    %132 = arith.mulf %127, %131 : vector<4x32xf32>
    %cst_60 = arith.constant dense<0.000000e+00> : vector<4x64xf32>
    %133 = tpu.matmul %132, %5, %cst_60 {dimension_numbers = #tpu.dot_dimension_numbers<[1], [0], [0], [1], [0, 0, 1, 1], [], []>} : vector<4x32xf32>, vector<32x64xf32>, vector<4x64xf32> -> vector<4x64xf32>
    %134 = vector.broadcast %6 : vector<1x64xf32> to vector<4x64xf32>
    %135 = arith.addf %133, %134 : vector<4x64xf32>
    %c2_61 = arith.constant 2 : index
    %c0_62 = arith.constant 0 : index
    %c0_63 = arith.constant 0 : index
    %136 = vector.load %arg8[%c2_61, %c0_62, %c0_63] : memref<8x4x64xf32, #tpu.memory_space<vmem>>, vector<1x4x64xf32>
    %137 = vector.shape_cast %136 : vector<1x4x64xf32> to vector<4x64xf32>
    %138 = vector.shape_cast %135 : vector<4x64xf32> to vector<1x4x64xf32>
    tpu.vector_store %arg8[%c2_61, %c0_62, %c0_63], %138 {strides = array<i32>} : memref<8x4x64xf32, #tpu.memory_space<vmem>>, vector<1x4x64xf32>,
    %c3 = arith.constant 3 : index
    %c0_64 = arith.constant 0 : index
    %c0_65 = arith.constant 0 : index
    %139 = vector.load %arg0[%c3, %c0_64, %c0_65] : memref<8x4x8xf32, #tpu.memory_space<vmem>>, vector<1x4x8xf32>
    %140 = vector.shape_cast %139 : vector<1x4x8xf32> to vector<4x8xf32>
    %cst_66 = arith.constant dense<0.000000e+00> : vector<4x128xf32>
    %141 = tpu.matmul %140, %2, %cst_66 {dimension_numbers = #tpu.dot_dimension_numbers<[1], [0], [0], [1], [0, 0, 1, 1], [], []>} : vector<4x8xf32>, vector<8x128xf32>, vector<4x128xf32> -> vector<4x128xf32>
    %cst_67 = arith.constant dense<0.000000e+00> : vector<4x128xf32>
    %142 = tpu.matmul %132, %3, %cst_67 {dimension_numbers = #tpu.dot_dimension_numbers<[1], [0], [0], [1], [0, 0, 1, 1], [], []>} : vector<4x32xf32>, vector<32x128xf32>, vector<4x128xf32> -> vector<4x128xf32>
    %143 = arith.addf %141, %142 : vector<4x128xf32>
    %144 = vector.broadcast %4 : vector<1x128xf32> to vector<4x128xf32>
    %145 = arith.addf %143, %144 : vector<4x128xf32>
    %146 = vector.extract_strided_slice %145 {offsets = [0, 0], sizes = [4, 32], strides = [1, 1]} : vector<4x128xf32> to vector<4x32xf32>
    %cst_68 = arith.constant 5.000000e-01 : f32
    %147 = vector.broadcast %cst_68 : f32 to vector<4x32xf32>
    %148 = arith.mulf %147, %146 : vector<4x32xf32>
    %149 = math.tanh %148 : vector<4x32xf32>
    %cst_69 = arith.constant 1.000000e+00 : f32
    %150 = vector.broadcast %cst_69 : f32 to vector<4x32xf32>
    %151 = arith.addf %149, %150 : vector<4x32xf32>
    %cst_70 = arith.constant 5.000000e-01 : f32
    %152 = vector.broadcast %cst_70 : f32 to vector<4x32xf32>
    %153 = arith.mulf %152, %151 : vector<4x32xf32>
    %154 = vector.extract_strided_slice %145 {offsets = [0, 32], sizes = [4, 32], strides = [1, 1]} : vector<4x128xf32> to vector<4x32xf32>
    %cst_71 = arith.constant 5.000000e-01 : f32
    %155 = vector.broadcast %cst_71 : f32 to vector<4x32xf32>
    %156 = arith.mulf %155, %154 : vector<4x32xf32>
    %157 = math.tanh %156 : vector<4x32xf32>
    %cst_72 = arith.constant 1.000000e+00 : f32
    %158 = vector.broadcast %cst_72 : f32 to vector<4x32xf32>
    %159 = arith.addf %157, %158 : vector<4x32xf32>
    %cst_73 = arith.constant 5.000000e-01 : f32
    %160 = vector.broadcast %cst_73 : f32 to vector<4x32xf32>
    %161 = arith.mulf %160, %159 : vector<4x32xf32>
    %162 = vector.extract_strided_slice %145 {offsets = [0, 64], sizes = [4, 32], strides = [1, 1]} : vector<4x128xf32> to vector<4x32xf32>
    %163 = math.tanh %162 : vector<4x32xf32>
    %164 = vector.extract_strided_slice %145 {offsets = [0, 96], sizes = [4, 32], strides = [1, 1]} : vector<4x128xf32> to vector<4x32xf32>
    %cst_74 = arith.constant 5.000000e-01 : f32
    %165 = vector.broadcast %cst_74 : f32 to vector<4x32xf32>
    %166 = arith.mulf %165, %164 : vector<4x32xf32>
    %167 = math.tanh %166 : vector<4x32xf32>
    %cst_75 = arith.constant 1.000000e+00 : f32
    %168 = vector.broadcast %cst_75 : f32 to vector<4x32xf32>
    %169 = arith.addf %167, %168 : vector<4x32xf32>
    %cst_76 = arith.constant 5.000000e-01 : f32
    %170 = vector.broadcast %cst_76 : f32 to vector<4x32xf32>
    %171 = arith.mulf %170, %169 : vector<4x32xf32>
    %172 = arith.mulf %161, %130 : vector<4x32xf32>
    %173 = arith.mulf %153, %163 : vector<4x32xf32>
    %174 = arith.addf %172, %173 : vector<4x32xf32>
    %175 = math.tanh %174 : vector<4x32xf32>
    %176 = arith.mulf %171, %175 : vector<4x32xf32>
    %cst_77 = arith.constant dense<0.000000e+00> : vector<4x64xf32>
    %177 = tpu.matmul %176, %5, %cst_77 {dimension_numbers = #tpu.dot_dimension_numbers<[1], [0], [0], [1], [0, 0, 1, 1], [], []>} : vector<4x32xf32>, vector<32x64xf32>, vector<4x64xf32> -> vector<4x64xf32>
    %178 = vector.broadcast %6 : vector<1x64xf32> to vector<4x64xf32>
    %179 = arith.addf %177, %178 : vector<4x64xf32>
    %c3_78 = arith.constant 3 : index
    %c0_79 = arith.constant 0 : index
    %c0_80 = arith.constant 0 : index
    %180 = vector.load %arg8[%c3_78, %c0_79, %c0_80] : memref<8x4x64xf32, #tpu.memory_space<vmem>>, vector<1x4x64xf32>
    %181 = vector.shape_cast %180 : vector<1x4x64xf32> to vector<4x64xf32>
    %182 = vector.shape_cast %179 : vector<4x64xf32> to vector<1x4x64xf32>
    tpu.vector_store %arg8[%c3_78, %c0_79, %c0_80], %182 {strides = array<i32>} : memref<8x4x64xf32, #tpu.memory_space<vmem>>, vector<1x4x64xf32>,
    %c4 = arith.constant 4 : index
    %c0_81 = arith.constant 0 : index
    %c0_82 = arith.constant 0 : index
    %183 = vector.load %arg0[%c4, %c0_81, %c0_82] : memref<8x4x8xf32, #tpu.memory_space<vmem>>, vector<1x4x8xf32>
    %184 = vector.shape_cast %183 : vector<1x4x8xf32> to vector<4x8xf32>
    %cst_83 = arith.constant dense<0.000000e+00> : vector<4x128xf32>
    %185 = tpu.matmul %184, %2, %cst_83 {dimension_numbers = #tpu.dot_dimension_numbers<[1], [0], [0], [1], [0, 0, 1, 1], [], []>} : vector<4x8xf32>, vector<8x128xf32>, vector<4x128xf32> -> vector<4x128xf32>
    %cst_84 = arith.constant dense<0.000000e+00> : vector<4x128xf32>
    %186 = tpu.matmul %176, %3, %cst_84 {dimension_numbers = #tpu.dot_dimension_numbers<[1], [0], [0], [1], [0, 0, 1, 1], [], []>} : vector<4x32xf32>, vector<32x128xf32>, vector<4x128xf32> -> vector<4x128xf32>
    %187 = arith.addf %185, %186 : vector<4x128xf32>
    %188 = vector.broadcast %4 : vector<1x128xf32> to vector<4x128xf32>
    %189 = arith.addf %187, %188 : vector<4x128xf32>
    %190 = vector.extract_strided_slice %189 {offsets = [0, 0], sizes = [4, 32], strides = [1, 1]} : vector<4x128xf32> to vector<4x32xf32>
    %cst_85 = arith.constant 5.000000e-01 : f32
    %191 = vector.broadcast %cst_85 : f32 to vector<4x32xf32>
    %192 = arith.mulf %191, %190 : vector<4x32xf32>
    %193 = math.tanh %192 : vector<4x32xf32>
    %cst_86 = arith.constant 1.000000e+00 : f32
    %194 = vector.broadcast %cst_86 : f32 to vector<4x32xf32>
    %195 = arith.addf %193, %194 : vector<4x32xf32>
    %cst_87 = arith.constant 5.000000e-01 : f32
    %196 = vector.broadcast %cst_87 : f32 to vector<4x32xf32>
    %197 = arith.mulf %196, %195 : vector<4x32xf32>
    %198 = vector.extract_strided_slice %189 {offsets = [0, 32], sizes = [4, 32], strides = [1, 1]} : vector<4x128xf32> to vector<4x32xf32>
    %cst_88 = arith.constant 5.000000e-01 : f32
    %199 = vector.broadcast %cst_88 : f32 to vector<4x32xf32>
    %200 = arith.mulf %199, %198 : vector<4x32xf32>
    %201 = math.tanh %200 : vector<4x32xf32>
    %cst_89 = arith.constant 1.000000e+00 : f32
    %202 = vector.broadcast %cst_89 : f32 to vector<4x32xf32>
    %203 = arith.addf %201, %202 : vector<4x32xf32>
    %cst_90 = arith.constant 5.000000e-01 : f32
    %204 = vector.broadcast %cst_90 : f32 to vector<4x32xf32>
    %205 = arith.mulf %204, %203 : vector<4x32xf32>
    %206 = vector.extract_strided_slice %189 {offsets = [0, 64], sizes = [4, 32], strides = [1, 1]} : vector<4x128xf32> to vector<4x32xf32>
    %207 = math.tanh %206 : vector<4x32xf32>
    %208 = vector.extract_strided_slice %189 {offsets = [0, 96], sizes = [4, 32], strides = [1, 1]} : vector<4x128xf32> to vector<4x32xf32>
    %cst_91 = arith.constant 5.000000e-01 : f32
    %209 = vector.broadcast %cst_91 : f32 to vector<4x32xf32>
    %210 = arith.mulf %209, %208 : vector<4x32xf32>
    %211 = math.tanh %210 : vector<4x32xf32>
    %cst_92 = arith.constant 1.000000e+00 : f32
    %212 = vector.broadcast %cst_92 : f32 to vector<4x32xf32>
    %213 = arith.addf %211, %212 : vector<4x32xf32>
    %cst_93 = arith.constant 5.000000e-01 : f32
    %214 = vector.broadcast %cst_93 : f32 to vector<4x32xf32>
    %215 = arith.mulf %214, %213 : vector<4x32xf32>
    %216 = arith.mulf %205, %174 : vector<4x32xf32>
    %217 = arith.mulf %197, %207 : vector<4x32xf32>
    %218 = arith.addf %216, %217 : vector<4x32xf32>
    %219 = math.tanh %218 : vector<4x32xf32>
    %220 = arith.mulf %215, %219 : vector<4x32xf32>
    %cst_94 = arith.constant dense<0.000000e+00> : vector<4x64xf32>
    %221 = tpu.matmul %220, %5, %cst_94 {dimension_numbers = #tpu.dot_dimension_numbers<[1], [0], [0], [1], [0, 0, 1, 1], [], []>} : vector<4x32xf32>, vector<32x64xf32>, vector<4x64xf32> -> vector<4x64xf32>
    %222 = vector.broadcast %6 : vector<1x64xf32> to vector<4x64xf32>
    %223 = arith.addf %221, %222 : vector<4x64xf32>
    %c4_95 = arith.constant 4 : index
    %c0_96 = arith.constant 0 : index
    %c0_97 = arith.constant 0 : index
    %224 = vector.load %arg8[%c4_95, %c0_96, %c0_97] : memref<8x4x64xf32, #tpu.memory_space<vmem>>, vector<1x4x64xf32>
    %225 = vector.shape_cast %224 : vector<1x4x64xf32> to vector<4x64xf32>
    %226 = vector.shape_cast %223 : vector<4x64xf32> to vector<1x4x64xf32>
    tpu.vector_store %arg8[%c4_95, %c0_96, %c0_97], %226 {strides = array<i32>} : memref<8x4x64xf32, #tpu.memory_space<vmem>>, vector<1x4x64xf32>,
    %c5 = arith.constant 5 : index
    %c0_98 = arith.constant 0 : index
    %c0_99 = arith.constant 0 : index
    %227 = vector.load %arg0[%c5, %c0_98, %c0_99] : memref<8x4x8xf32, #tpu.memory_space<vmem>>, vector<1x4x8xf32>
    %228 = vector.shape_cast %227 : vector<1x4x8xf32> to vector<4x8xf32>
    %cst_100 = arith.constant dense<0.000000e+00> : vector<4x128xf32>
    %229 = tpu.matmul %228, %2, %cst_100 {dimension_numbers = #tpu.dot_dimension_numbers<[1], [0], [0], [1], [0, 0, 1, 1], [], []>} : vector<4x8xf32>, vector<8x128xf32>, vector<4x128xf32> -> vector<4x128xf32>
    %cst_101 = arith.constant dense<0.000000e+00> : vector<4x128xf32>
    %230 = tpu.matmul %220, %3, %cst_101 {dimension_numbers = #tpu.dot_dimension_numbers<[1], [0], [0], [1], [0, 0, 1, 1], [], []>} : vector<4x32xf32>, vector<32x128xf32>, vector<4x128xf32> -> vector<4x128xf32>
    %231 = arith.addf %229, %230 : vector<4x128xf32>
    %232 = vector.broadcast %4 : vector<1x128xf32> to vector<4x128xf32>
    %233 = arith.addf %231, %232 : vector<4x128xf32>
    %234 = vector.extract_strided_slice %233 {offsets = [0, 0], sizes = [4, 32], strides = [1, 1]} : vector<4x128xf32> to vector<4x32xf32>
    %cst_102 = arith.constant 5.000000e-01 : f32
    %235 = vector.broadcast %cst_102 : f32 to vector<4x32xf32>
    %236 = arith.mulf %235, %234 : vector<4x32xf32>
    %237 = math.tanh %236 : vector<4x32xf32>
    %cst_103 = arith.constant 1.000000e+00 : f32
    %238 = vector.broadcast %cst_103 : f32 to vector<4x32xf32>
    %239 = arith.addf %237, %238 : vector<4x32xf32>
    %cst_104 = arith.constant 5.000000e-01 : f32
    %240 = vector.broadcast %cst_104 : f32 to vector<4x32xf32>
    %241 = arith.mulf %240, %239 : vector<4x32xf32>
    %242 = vector.extract_strided_slice %233 {offsets = [0, 32], sizes = [4, 32], strides = [1, 1]} : vector<4x128xf32> to vector<4x32xf32>
    %cst_105 = arith.constant 5.000000e-01 : f32
    %243 = vector.broadcast %cst_105 : f32 to vector<4x32xf32>
    %244 = arith.mulf %243, %242 : vector<4x32xf32>
    %245 = math.tanh %244 : vector<4x32xf32>
    %cst_106 = arith.constant 1.000000e+00 : f32
    %246 = vector.broadcast %cst_106 : f32 to vector<4x32xf32>
    %247 = arith.addf %245, %246 : vector<4x32xf32>
    %cst_107 = arith.constant 5.000000e-01 : f32
    %248 = vector.broadcast %cst_107 : f32 to vector<4x32xf32>
    %249 = arith.mulf %248, %247 : vector<4x32xf32>
    %250 = vector.extract_strided_slice %233 {offsets = [0, 64], sizes = [4, 32], strides = [1, 1]} : vector<4x128xf32> to vector<4x32xf32>
    %251 = math.tanh %250 : vector<4x32xf32>
    %252 = vector.extract_strided_slice %233 {offsets = [0, 96], sizes = [4, 32], strides = [1, 1]} : vector<4x128xf32> to vector<4x32xf32>
    %cst_108 = arith.constant 5.000000e-01 : f32
    %253 = vector.broadcast %cst_108 : f32 to vector<4x32xf32>
    %254 = arith.mulf %253, %252 : vector<4x32xf32>
    %255 = math.tanh %254 : vector<4x32xf32>
    %cst_109 = arith.constant 1.000000e+00 : f32
    %256 = vector.broadcast %cst_109 : f32 to vector<4x32xf32>
    %257 = arith.addf %255, %256 : vector<4x32xf32>
    %cst_110 = arith.constant 5.000000e-01 : f32
    %258 = vector.broadcast %cst_110 : f32 to vector<4x32xf32>
    %259 = arith.mulf %258, %257 : vector<4x32xf32>
    %260 = arith.mulf %249, %218 : vector<4x32xf32>
    %261 = arith.mulf %241, %251 : vector<4x32xf32>
    %262 = arith.addf %260, %261 : vector<4x32xf32>
    %263 = math.tanh %262 : vector<4x32xf32>
    %264 = arith.mulf %259, %263 : vector<4x32xf32>
    %cst_111 = arith.constant dense<0.000000e+00> : vector<4x64xf32>
    %265 = tpu.matmul %264, %5, %cst_111 {dimension_numbers = #tpu.dot_dimension_numbers<[1], [0], [0], [1], [0, 0, 1, 1], [], []>} : vector<4x32xf32>, vector<32x64xf32>, vector<4x64xf32> -> vector<4x64xf32>
    %266 = vector.broadcast %6 : vector<1x64xf32> to vector<4x64xf32>
    %267 = arith.addf %265, %266 : vector<4x64xf32>
    %c5_112 = arith.constant 5 : index
    %c0_113 = arith.constant 0 : index
    %c0_114 = arith.constant 0 : index
    %268 = vector.load %arg8[%c5_112, %c0_113, %c0_114] : memref<8x4x64xf32, #tpu.memory_space<vmem>>, vector<1x4x64xf32>
    %269 = vector.shape_cast %268 : vector<1x4x64xf32> to vector<4x64xf32>
    %270 = vector.shape_cast %267 : vector<4x64xf32> to vector<1x4x64xf32>
    tpu.vector_store %arg8[%c5_112, %c0_113, %c0_114], %270 {strides = array<i32>} : memref<8x4x64xf32, #tpu.memory_space<vmem>>, vector<1x4x64xf32>,
    %c6 = arith.constant 6 : index
    %c0_115 = arith.constant 0 : index
    %c0_116 = arith.constant 0 : index
    %271 = vector.load %arg0[%c6, %c0_115, %c0_116] : memref<8x4x8xf32, #tpu.memory_space<vmem>>, vector<1x4x8xf32>
    %272 = vector.shape_cast %271 : vector<1x4x8xf32> to vector<4x8xf32>
    %cst_117 = arith.constant dense<0.000000e+00> : vector<4x128xf32>
    %273 = tpu.matmul %272, %2, %cst_117 {dimension_numbers = #tpu.dot_dimension_numbers<[1], [0], [0], [1], [0, 0, 1, 1], [], []>} : vector<4x8xf32>, vector<8x128xf32>, vector<4x128xf32> -> vector<4x128xf32>
    %cst_118 = arith.constant dense<0.000000e+00> : vector<4x128xf32>
    %274 = tpu.matmul %264, %3, %cst_118 {dimension_numbers = #tpu.dot_dimension_numbers<[1], [0], [0], [1], [0, 0, 1, 1], [], []>} : vector<4x32xf32>, vector<32x128xf32>, vector<4x128xf32> -> vector<4x128xf32>
    %275 = arith.addf %273, %274 : vector<4x128xf32>
    %276 = vector.broadcast %4 : vector<1x128xf32> to vector<4x128xf32>
    %277 = arith.addf %275, %276 : vector<4x128xf32>
    %278 = vector.extract_strided_slice %277 {offsets = [0, 0], sizes = [4, 32], strides = [1, 1]} : vector<4x128xf32> to vector<4x32xf32>
    %cst_119 = arith.constant 5.000000e-01 : f32
    %279 = vector.broadcast %cst_119 : f32 to vector<4x32xf32>
    %280 = arith.mulf %279, %278 : vector<4x32xf32>
    %281 = math.tanh %280 : vector<4x32xf32>
    %cst_120 = arith.constant 1.000000e+00 : f32
    %282 = vector.broadcast %cst_120 : f32 to vector<4x32xf32>
    %283 = arith.addf %281, %282 : vector<4x32xf32>
    %cst_121 = arith.constant 5.000000e-01 : f32
    %284 = vector.broadcast %cst_121 : f32 to vector<4x32xf32>
    %285 = arith.mulf %284, %283 : vector<4x32xf32>
    %286 = vector.extract_strided_slice %277 {offsets = [0, 32], sizes = [4, 32], strides = [1, 1]} : vector<4x128xf32> to vector<4x32xf32>
    %cst_122 = arith.constant 5.000000e-01 : f32
    %287 = vector.broadcast %cst_122 : f32 to vector<4x32xf32>
    %288 = arith.mulf %287, %286 : vector<4x32xf32>
    %289 = math.tanh %288 : vector<4x32xf32>
    %cst_123 = arith.constant 1.000000e+00 : f32
    %290 = vector.broadcast %cst_123 : f32 to vector<4x32xf32>
    %291 = arith.addf %289, %290 : vector<4x32xf32>
    %cst_124 = arith.constant 5.000000e-01 : f32
    %292 = vector.broadcast %cst_124 : f32 to vector<4x32xf32>
    %293 = arith.mulf %292, %291 : vector<4x32xf32>
    %294 = vector.extract_strided_slice %277 {offsets = [0, 64], sizes = [4, 32], strides = [1, 1]} : vector<4x128xf32> to vector<4x32xf32>
    %295 = math.tanh %294 : vector<4x32xf32>
    %296 = vector.extract_strided_slice %277 {offsets = [0, 96], sizes = [4, 32], strides = [1, 1]} : vector<4x128xf32> to vector<4x32xf32>
    %cst_125 = arith.constant 5.000000e-01 : f32
    %297 = vector.broadcast %cst_125 : f32 to vector<4x32xf32>
    %298 = arith.mulf %297, %296 : vector<4x32xf32>
    %299 = math.tanh %298 : vector<4x32xf32>
    %cst_126 = arith.constant 1.000000e+00 : f32
    %300 = vector.broadcast %cst_126 : f32 to vector<4x32xf32>
    %301 = arith.addf %299, %300 : vector<4x32xf32>
    %cst_127 = arith.constant 5.000000e-01 : f32
    %302 = vector.broadcast %cst_127 : f32 to vector<4x32xf32>
    %303 = arith.mulf %302, %301 : vector<4x32xf32>
    %304 = arith.mulf %293, %262 : vector<4x32xf32>
    %305 = arith.mulf %285, %295 : vector<4x32xf32>
    %306 = arith.addf %304, %305 : vector<4x32xf32>
    %307 = math.tanh %306 : vector<4x32xf32>
    %308 = arith.mulf %303, %307 : vector<4x32xf32>
    %cst_128 = arith.constant dense<0.000000e+00> : vector<4x64xf32>
    %309 = tpu.matmul %308, %5, %cst_128 {dimension_numbers = #tpu.dot_dimension_numbers<[1], [0], [0], [1], [0, 0, 1, 1], [], []>} : vector<4x32xf32>, vector<32x64xf32>, vector<4x64xf32> -> vector<4x64xf32>
    %310 = vector.broadcast %6 : vector<1x64xf32> to vector<4x64xf32>
    %311 = arith.addf %309, %310 : vector<4x64xf32>
    %c6_129 = arith.constant 6 : index
    %c0_130 = arith.constant 0 : index
    %c0_131 = arith.constant 0 : index
    %312 = vector.load %arg8[%c6_129, %c0_130, %c0_131] : memref<8x4x64xf32, #tpu.memory_space<vmem>>, vector<1x4x64xf32>
    %313 = vector.shape_cast %312 : vector<1x4x64xf32> to vector<4x64xf32>
    %314 = vector.shape_cast %311 : vector<4x64xf32> to vector<1x4x64xf32>
    tpu.vector_store %arg8[%c6_129, %c0_130, %c0_131], %314 {strides = array<i32>} : memref<8x4x64xf32, #tpu.memory_space<vmem>>, vector<1x4x64xf32>,
    %c7 = arith.constant 7 : index
    %c0_132 = arith.constant 0 : index
    %c0_133 = arith.constant 0 : index
    %315 = vector.load %arg0[%c7, %c0_132, %c0_133] : memref<8x4x8xf32, #tpu.memory_space<vmem>>, vector<1x4x8xf32>
    %316 = vector.shape_cast %315 : vector<1x4x8xf32> to vector<4x8xf32>
    %cst_134 = arith.constant dense<0.000000e+00> : vector<4x128xf32>
    %317 = tpu.matmul %316, %2, %cst_134 {dimension_numbers = #tpu.dot_dimension_numbers<[1], [0], [0], [1], [0, 0, 1, 1], [], []>} : vector<4x8xf32>, vector<8x128xf32>, vector<4x128xf32> -> vector<4x128xf32>
    %cst_135 = arith.constant dense<0.000000e+00> : vector<4x128xf32>
    %318 = tpu.matmul %308, %3, %cst_135 {dimension_numbers = #tpu.dot_dimension_numbers<[1], [0], [0], [1], [0, 0, 1, 1], [], []>} : vector<4x32xf32>, vector<32x128xf32>, vector<4x128xf32> -> vector<4x128xf32>
    %319 = arith.addf %317, %318 : vector<4x128xf32>
    %320 = vector.broadcast %4 : vector<1x128xf32> to vector<4x128xf32>
    %321 = arith.addf %319, %320 : vector<4x128xf32>
    %322 = vector.extract_strided_slice %321 {offsets = [0, 0], sizes = [4, 32], strides = [1, 1]} : vector<4x128xf32> to vector<4x32xf32>
    %cst_136 = arith.constant 5.000000e-01 : f32
    %323 = vector.broadcast %cst_136 : f32 to vector<4x32xf32>
    %324 = arith.mulf %323, %322 : vector<4x32xf32>
    %325 = math.tanh %324 : vector<4x32xf32>
    %cst_137 = arith.constant 1.000000e+00 : f32
    %326 = vector.broadcast %cst_137 : f32 to vector<4x32xf32>
    %327 = arith.addf %325, %326 : vector<4x32xf32>
    %cst_138 = arith.constant 5.000000e-01 : f32
    %328 = vector.broadcast %cst_138 : f32 to vector<4x32xf32>
    %329 = arith.mulf %328, %327 : vector<4x32xf32>
    %330 = vector.extract_strided_slice %321 {offsets = [0, 32], sizes = [4, 32], strides = [1, 1]} : vector<4x128xf32> to vector<4x32xf32>
    %cst_139 = arith.constant 5.000000e-01 : f32
    %331 = vector.broadcast %cst_139 : f32 to vector<4x32xf32>
    %332 = arith.mulf %331, %330 : vector<4x32xf32>
    %333 = math.tanh %332 : vector<4x32xf32>
    %cst_140 = arith.constant 1.000000e+00 : f32
    %334 = vector.broadcast %cst_140 : f32 to vector<4x32xf32>
    %335 = arith.addf %333, %334 : vector<4x32xf32>
    %cst_141 = arith.constant 5.000000e-01 : f32
    %336 = vector.broadcast %cst_141 : f32 to vector<4x32xf32>
    %337 = arith.mulf %336, %335 : vector<4x32xf32>
    %338 = vector.extract_strided_slice %321 {offsets = [0, 64], sizes = [4, 32], strides = [1, 1]} : vector<4x128xf32> to vector<4x32xf32>
    %339 = math.tanh %338 : vector<4x32xf32>
    %340 = vector.extract_strided_slice %321 {offsets = [0, 96], sizes = [4, 32], strides = [1, 1]} : vector<4x128xf32> to vector<4x32xf32>
    %cst_142 = arith.constant 5.000000e-01 : f32
    %341 = vector.broadcast %cst_142 : f32 to vector<4x32xf32>
    %342 = arith.mulf %341, %340 : vector<4x32xf32>
    %343 = math.tanh %342 : vector<4x32xf32>
    %cst_143 = arith.constant 1.000000e+00 : f32
    %344 = vector.broadcast %cst_143 : f32 to vector<4x32xf32>
    %345 = arith.addf %343, %344 : vector<4x32xf32>
    %cst_144 = arith.constant 5.000000e-01 : f32
    %346 = vector.broadcast %cst_144 : f32 to vector<4x32xf32>
    %347 = arith.mulf %346, %345 : vector<4x32xf32>
    %348 = arith.mulf %337, %306 : vector<4x32xf32>
    %349 = arith.mulf %329, %339 : vector<4x32xf32>
    %350 = arith.addf %348, %349 : vector<4x32xf32>
    %351 = math.tanh %350 : vector<4x32xf32>
    %352 = arith.mulf %347, %351 : vector<4x32xf32>
    %cst_145 = arith.constant dense<0.000000e+00> : vector<4x64xf32>
    %353 = tpu.matmul %352, %5, %cst_145 {dimension_numbers = #tpu.dot_dimension_numbers<[1], [0], [0], [1], [0, 0, 1, 1], [], []>} : vector<4x32xf32>, vector<32x64xf32>, vector<4x64xf32> -> vector<4x64xf32>
    %354 = vector.broadcast %6 : vector<1x64xf32> to vector<4x64xf32>
    %355 = arith.addf %353, %354 : vector<4x64xf32>
    %c7_146 = arith.constant 7 : index
    %c0_147 = arith.constant 0 : index
    %c0_148 = arith.constant 0 : index
    %356 = vector.load %arg8[%c7_146, %c0_147, %c0_148] : memref<8x4x64xf32, #tpu.memory_space<vmem>>, vector<1x4x64xf32>
    %357 = vector.shape_cast %356 : vector<1x4x64xf32> to vector<4x64xf32>
    %358 = vector.shape_cast %355 : vector<4x64xf32> to vector<1x4x64xf32>
    tpu.vector_store %arg8[%c7_146, %c0_147, %c0_148], %358 {strides = array<i32>} : memref<8x4x64xf32, #tpu.memory_space<vmem>>, vector<1x4x64xf32>,
    %c0_149 = arith.constant 0 : index
    %c0_150 = arith.constant 0 : index
    %359 = vector.load %arg9[%c0_149, %c0_150] : memref<4x32xf32, #tpu.memory_space<vmem>>, vector<4x32xf32>
    tpu.vector_store %arg9[%c0_149, %c0_150], %352 {strides = array<i32>} : memref<4x32xf32, #tpu.memory_space<vmem>>, vector<4x32xf32>,
    %c0_151 = arith.constant 0 : index
    %c0_152 = arith.constant 0 : index
    %360 = vector.load %arg10[%c0_151, %c0_152] : memref<4x32xf32, #tpu.memory_space<vmem>>, vector<4x32xf32>
    tpu.vector_store %arg10[%c0_151, %c0_152], %350 {strides = array<i32>} : memref<4x32xf32, #tpu.memory_space<vmem>>, vector<4x32xf32>,
    return
  }
}

module attributes {stable_mosaic.version = 11 : i64} {
  func.func @_fused_decoder_kernel(%arg0: i32, %arg1: memref<1x4x8xf32, #tpu.memory_space<vmem>>, %arg2: memref<1x4x16xf32, #tpu.memory_space<vmem>>, %arg3: memref<4x8x16xf32, #tpu.memory_space<vmem>>, %arg4: memref<4x16xf32, #tpu.memory_space<vmem>>, %arg5: memref<4x16xf32, #tpu.memory_space<vmem>>, %arg6: memref<4x32xf32, #tpu.memory_space<vmem>>, %arg7: memref<4x32xf32, #tpu.memory_space<vmem>>, %arg8: memref<4x8x32xf32, #tpu.memory_space<vmem>>, %arg9: memref<4x8x32xf32, #tpu.memory_space<vmem>>, %arg10: memref<16x128xf32, #tpu.memory_space<vmem>>, %arg11: memref<16x128xf32, #tpu.memory_space<vmem>>, %arg12: memref<32x128xf32, #tpu.memory_space<vmem>>, %arg13: memref<1x128xf32, #tpu.memory_space<vmem>>, %arg14: memref<32x32xf32, #tpu.memory_space<vmem>>, %arg15: memref<1x32xf32, #tpu.memory_space<vmem>>, %arg16: memref<1x32xf32, #tpu.memory_space<vmem>>, %arg17: memref<32x32xf32, #tpu.memory_space<vmem>>, %arg18: memref<1x32xf32, #tpu.memory_space<vmem>>, %arg19: memref<1x32xf32, #tpu.memory_space<vmem>>, %arg20: memref<1x4x8xf32, #tpu.memory_space<vmem>>, %arg21: memref<1x4x1xi32, #tpu.memory_space<vmem>>, %arg22: memref<4x32xf32, #tpu.memory_space<vmem>>, %arg23: memref<4x32xf32, #tpu.memory_space<vmem>>, %arg24: memref<4x32xf32, #tpu.memory_space<vmem>>, %arg25: memref<4x32xf32, #tpu.memory_space<vmem>>, %arg26: memref<4x8xf32, #tpu.memory_space<vmem>>, %arg27: memref<4x16xf32, #tpu.memory_space<vmem>>, %arg28: memref<4x16xf32, #tpu.memory_space<vmem>>) attributes {dimension_semantics = [#tpu.dimension_semantics<arbitrary>], iteration_bounds = array<i64: 8>, scalar_prefetch = 0 : i64, scratch_operands = 5 : i64, tpu.core_type = #tpu.core_type<tc>, window_params = [{transform_indices = @transform_0, window_bounds = array<i64: 1, 4, 8>}, {transform_indices = @transform_1, window_bounds = array<i64: 1, 4, 16>}, {pipeline_mode = #tpu.pipeline_mode<synchronous>, transform_indices = @transform_2, window_bounds = array<i64: 4, 8, 16>}, {pipeline_mode = #tpu.pipeline_mode<synchronous>, transform_indices = @transform_3, window_bounds = array<i64: 4, 16>}, {pipeline_mode = #tpu.pipeline_mode<synchronous>, transform_indices = @transform_4, window_bounds = array<i64: 4, 16>}, {pipeline_mode = #tpu.pipeline_mode<synchronous>, transform_indices = @transform_5, window_bounds = array<i64: 4, 32>}, {pipeline_mode = #tpu.pipeline_mode<synchronous>, transform_indices = @transform_6, window_bounds = array<i64: 4, 32>}, {pipeline_mode = #tpu.pipeline_mode<synchronous>, transform_indices = @transform_7, window_bounds = array<i64: 4, 8, 32>}, {pipeline_mode = #tpu.pipeline_mode<synchronous>, transform_indices = @transform_8, window_bounds = array<i64: 4, 8, 32>}, {pipeline_mode = #tpu.pipeline_mode<synchronous>, transform_indices = @transform_9, window_bounds = array<i64: 16, 128>}, {pipeline_mode = #tpu.pipeline_mode<synchronous>, transform_indices = @transform_10, window_bounds = array<i64: 16, 128>}, {pipeline_mode = #tpu.pipeline_mode<synchronous>, transform_indices = @transform_11, window_bounds = array<i64: 32, 128>}, {pipeline_mode = #tpu.pipeline_mode<synchronous>, transform_indices = @transform_12, window_bounds = array<i64: 1, 128>}, {pipeline_mode = #tpu.pipeline_mode<synchronous>, transform_indices = @transform_13, window_bounds = array<i64: 32, 32>}, {pipeline_mode = #tpu.pipeline_mode<synchronous>, transform_indices = @transform_14, window_bounds = array<i64: 1, 32>}, {pipeline_mode = #tpu.pipeline_mode<synchronous>, transform_indices = @transform_15, window_bounds = array<i64: 1, 32>}, {pipeline_mode = #tpu.pipeline_mode<synchronous>, transform_indices = @transform_16, window_bounds = array<i64: 32, 32>}, {pipeline_mode = #tpu.pipeline_mode<synchronous>, transform_indices = @transform_17, window_bounds = array<i64: 1, 32>}, {pipeline_mode = #tpu.pipeline_mode<synchronous>, transform_indices = @transform_18, window_bounds = array<i64: 1, 32>}, {transform_indices = @transform_19, window_bounds = array<i64: 1, 4, 8>}, {transform_indices = @transform_20, window_bounds = array<i64: 1, 4, 1>}, {pipeline_mode = #tpu.pipeline_mode<synchronous>, transform_indices = @transform_21, window_bounds = array<i64: 4, 32>}, {pipeline_mode = #tpu.pipeline_mode<synchronous>, transform_indices = @transform_22, window_bounds = array<i64: 4, 32>}]} {
    %c0_i32 = arith.constant 0 : i32
    %0 = arith.cmpi eq, %arg0, %c0_i32 : i32
    %1 = arith.extui %0 : i1 to i32
    %c0_i32_0 = arith.constant 0 : i32
    %2 = arith.cmpi ne, %1, %c0_i32_0 : i32
    scf.if %2 {
      %c0_94 = arith.constant 0 : index
      %c0_95 = arith.constant 0 : index
      %152 = vector.load %arg6[%c0_94, %c0_95] : memref<4x32xf32, #tpu.memory_space<vmem>>, vector<4x32xf32>
      %c0_96 = arith.constant 0 : index
      %c0_97 = arith.constant 0 : index
      %153 = vector.load %arg24[%c0_96, %c0_97] : memref<4x32xf32, #tpu.memory_space<vmem>>, vector<4x32xf32>
      tpu.vector_store %arg24[%c0_96, %c0_97], %152 {strides = array<i32>} : memref<4x32xf32, #tpu.memory_space<vmem>>, vector<4x32xf32>,
      %c0_98 = arith.constant 0 : index
      %c0_99 = arith.constant 0 : index
      %154 = vector.load %arg7[%c0_98, %c0_99] : memref<4x32xf32, #tpu.memory_space<vmem>>, vector<4x32xf32>
      %c0_100 = arith.constant 0 : index
      %c0_101 = arith.constant 0 : index
      %155 = vector.load %arg25[%c0_100, %c0_101] : memref<4x32xf32, #tpu.memory_space<vmem>>, vector<4x32xf32>
      tpu.vector_store %arg25[%c0_100, %c0_101], %154 {strides = array<i32>} : memref<4x32xf32, #tpu.memory_space<vmem>>, vector<4x32xf32>,
      %cst_102 = arith.constant 0.000000e+00 : f32
      %156 = vector.broadcast %cst_102 : f32 to vector<4x8xf32>
      %c0_103 = arith.constant 0 : index
      %c0_104 = arith.constant 0 : index
      %157 = vector.load %arg26[%c0_103, %c0_104] : memref<4x8xf32, #tpu.memory_space<vmem>>, vector<4x8xf32>
      tpu.vector_store %arg26[%c0_103, %c0_104], %156 {strides = array<i32>} : memref<4x8xf32, #tpu.memory_space<vmem>>, vector<4x8xf32>,
      %c0_105 = arith.constant 0 : index
      %c0_106 = arith.constant 0 : index
      %158 = vector.load %arg4[%c0_105, %c0_106] : memref<4x16xf32, #tpu.memory_space<vmem>>, vector<4x16xf32>
      %c0_107 = arith.constant 0 : index
      %c0_108 = arith.constant 0 : index
      %159 = vector.load %arg27[%c0_107, %c0_108] : memref<4x16xf32, #tpu.memory_space<vmem>>, vector<4x16xf32>
      tpu.vector_store %arg27[%c0_107, %c0_108], %158 {strides = array<i32>} : memref<4x16xf32, #tpu.memory_space<vmem>>, vector<4x16xf32>,
      %c0_109 = arith.constant 0 : index
      %c0_110 = arith.constant 0 : index
      %160 = vector.load %arg5[%c0_109, %c0_110] : memref<4x16xf32, #tpu.memory_space<vmem>>, vector<4x16xf32>
      %c0_111 = arith.constant 0 : index
      %c0_112 = arith.constant 0 : index
      %161 = vector.load %arg28[%c0_111, %c0_112] : memref<4x16xf32, #tpu.memory_space<vmem>>, vector<4x16xf32>
      tpu.vector_store %arg28[%c0_111, %c0_112], %160 {strides = array<i32>} : memref<4x16xf32, #tpu.memory_space<vmem>>, vector<4x16xf32>,
    } else {
    }
    %c0 = arith.constant 0 : index
    %c0_1 = arith.constant 0 : index
    %3 = vector.load %arg24[%c0, %c0_1] : memref<4x32xf32, #tpu.memory_space<vmem>>, vector<4x32xf32>
    %c0_2 = arith.constant 0 : index
    %c0_3 = arith.constant 0 : index
    %4 = vector.load %arg25[%c0_2, %c0_3] : memref<4x32xf32, #tpu.memory_space<vmem>>, vector<4x32xf32>
    %c0_4 = arith.constant 0 : index
    %c0_5 = arith.constant 0 : index
    %5 = vector.load %arg27[%c0_4, %c0_5] : memref<4x16xf32, #tpu.memory_space<vmem>>, vector<4x16xf32>
    %c0_6 = arith.constant 0 : index
    %c0_7 = arith.constant 0 : index
    %6 = vector.load %arg10[%c0_6, %c0_7] : memref<16x128xf32, #tpu.memory_space<vmem>>, vector<16x128xf32>
    %cst = arith.constant dense<0.000000e+00> : vector<4x128xf32>
    %7 = tpu.matmul %5, %6, %cst {dimension_numbers = #tpu.dot_dimension_numbers<[1], [0], [0], [1], [0, 0, 1, 1], [], []>} : vector<4x16xf32>, vector<16x128xf32>, vector<4x128xf32> -> vector<4x128xf32>
    %c0_8 = arith.constant 0 : index
    %c0_9 = arith.constant 0 : index
    %8 = vector.load %arg28[%c0_8, %c0_9] : memref<4x16xf32, #tpu.memory_space<vmem>>, vector<4x16xf32>
    %c0_10 = arith.constant 0 : index
    %c0_11 = arith.constant 0 : index
    %9 = vector.load %arg11[%c0_10, %c0_11] : memref<16x128xf32, #tpu.memory_space<vmem>>, vector<16x128xf32>
    %cst_12 = arith.constant dense<0.000000e+00> : vector<4x128xf32>
    %10 = tpu.matmul %8, %9, %cst_12 {dimension_numbers = #tpu.dot_dimension_numbers<[1], [0], [0], [1], [0, 0, 1, 1], [], []>} : vector<4x16xf32>, vector<16x128xf32>, vector<4x128xf32> -> vector<4x128xf32>
    %11 = arith.addf %7, %10 : vector<4x128xf32>
    %c0_13 = arith.constant 0 : index
    %c0_14 = arith.constant 0 : index
    %12 = vector.load %arg12[%c0_13, %c0_14] : memref<32x128xf32, #tpu.memory_space<vmem>>, vector<32x128xf32>
    %cst_15 = arith.constant dense<0.000000e+00> : vector<4x128xf32>
    %13 = tpu.matmul %3, %12, %cst_15 {dimension_numbers = #tpu.dot_dimension_numbers<[1], [0], [0], [1], [0, 0, 1, 1], [], []>} : vector<4x32xf32>, vector<32x128xf32>, vector<4x128xf32> -> vector<4x128xf32>
    %14 = arith.addf %11, %13 : vector<4x128xf32>
    %c0_16 = arith.constant 0 : index
    %c0_17 = arith.constant 0 : index
    %15 = vector.load %arg13[%c0_16, %c0_17] : memref<1x128xf32, #tpu.memory_space<vmem>>, vector<1x128xf32>
    %16 = vector.broadcast %15 : vector<1x128xf32> to vector<4x128xf32>
    %17 = arith.addf %14, %16 : vector<4x128xf32>
    %18 = vector.extract_strided_slice %17 {offsets = [0, 0], sizes = [4, 32], strides = [1, 1]} : vector<4x128xf32> to vector<4x32xf32>
    %cst_18 = arith.constant 5.000000e-01 : f32
    %19 = vector.broadcast %cst_18 : f32 to vector<4x32xf32>
    %20 = arith.mulf %19, %18 : vector<4x32xf32>
    %21 = math.tanh %20 : vector<4x32xf32>
    %cst_19 = arith.constant 1.000000e+00 : f32
    %22 = vector.broadcast %cst_19 : f32 to vector<4x32xf32>
    %23 = arith.addf %21, %22 : vector<4x32xf32>
    %cst_20 = arith.constant 5.000000e-01 : f32
    %24 = vector.broadcast %cst_20 : f32 to vector<4x32xf32>
    %25 = arith.mulf %24, %23 : vector<4x32xf32>
    %26 = vector.extract_strided_slice %17 {offsets = [0, 32], sizes = [4, 32], strides = [1, 1]} : vector<4x128xf32> to vector<4x32xf32>
    %cst_21 = arith.constant 5.000000e-01 : f32
    %27 = vector.broadcast %cst_21 : f32 to vector<4x32xf32>
    %28 = arith.mulf %27, %26 : vector<4x32xf32>
    %29 = math.tanh %28 : vector<4x32xf32>
    %cst_22 = arith.constant 1.000000e+00 : f32
    %30 = vector.broadcast %cst_22 : f32 to vector<4x32xf32>
    %31 = arith.addf %29, %30 : vector<4x32xf32>
    %cst_23 = arith.constant 5.000000e-01 : f32
    %32 = vector.broadcast %cst_23 : f32 to vector<4x32xf32>
    %33 = arith.mulf %32, %31 : vector<4x32xf32>
    %34 = vector.extract_strided_slice %17 {offsets = [0, 64], sizes = [4, 32], strides = [1, 1]} : vector<4x128xf32> to vector<4x32xf32>
    %35 = math.tanh %34 : vector<4x32xf32>
    %36 = vector.extract_strided_slice %17 {offsets = [0, 96], sizes = [4, 32], strides = [1, 1]} : vector<4x128xf32> to vector<4x32xf32>
    %cst_24 = arith.constant 5.000000e-01 : f32
    %37 = vector.broadcast %cst_24 : f32 to vector<4x32xf32>
    %38 = arith.mulf %37, %36 : vector<4x32xf32>
    %39 = math.tanh %38 : vector<4x32xf32>
    %cst_25 = arith.constant 1.000000e+00 : f32
    %40 = vector.broadcast %cst_25 : f32 to vector<4x32xf32>
    %41 = arith.addf %39, %40 : vector<4x32xf32>
    %cst_26 = arith.constant 5.000000e-01 : f32
    %42 = vector.broadcast %cst_26 : f32 to vector<4x32xf32>
    %43 = arith.mulf %42, %41 : vector<4x32xf32>
    %44 = arith.mulf %33, %4 : vector<4x32xf32>
    %45 = arith.mulf %25, %35 : vector<4x32xf32>
    %46 = arith.addf %44, %45 : vector<4x32xf32>
    %47 = math.tanh %46 : vector<4x32xf32>
    %48 = arith.mulf %43, %47 : vector<4x32xf32>
    %c0_27 = arith.constant 0 : index
    %c0_28 = arith.constant 0 : index
    %49 = vector.load %arg24[%c0_27, %c0_28] : memref<4x32xf32, #tpu.memory_space<vmem>>, vector<4x32xf32>
    tpu.vector_store %arg24[%c0_27, %c0_28], %48 {strides = array<i32>} : memref<4x32xf32, #tpu.memory_space<vmem>>, vector<4x32xf32>,
    %c0_29 = arith.constant 0 : index
    %c0_30 = arith.constant 0 : index
    %50 = vector.load %arg25[%c0_29, %c0_30] : memref<4x32xf32, #tpu.memory_space<vmem>>, vector<4x32xf32>
    tpu.vector_store %arg25[%c0_29, %c0_30], %46 {strides = array<i32>} : memref<4x32xf32, #tpu.memory_space<vmem>>, vector<4x32xf32>,
    %c0_31 = arith.constant 0 : index
    %c0_32 = arith.constant 0 : index
    %51 = vector.load %arg22[%c0_31, %c0_32] : memref<4x32xf32, #tpu.memory_space<vmem>>, vector<4x32xf32>
    tpu.vector_store %arg22[%c0_31, %c0_32], %48 {strides = array<i32>} : memref<4x32xf32, #tpu.memory_space<vmem>>, vector<4x32xf32>,
    %c0_33 = arith.constant 0 : index
    %c0_34 = arith.constant 0 : index
    %52 = vector.load %arg23[%c0_33, %c0_34] : memref<4x32xf32, #tpu.memory_space<vmem>>, vector<4x32xf32>
    tpu.vector_store %arg23[%c0_33, %c0_34], %46 {strides = array<i32>} : memref<4x32xf32, #tpu.memory_space<vmem>>, vector<4x32xf32>,
    %c0_35 = arith.constant 0 : index
    %c0_36 = arith.constant 0 : index
    %53 = vector.load %arg26[%c0_35, %c0_36] : memref<4x8xf32, #tpu.memory_space<vmem>>, vector<4x8xf32>
    %c0_37 = arith.constant 0 : index
    %c0_38 = arith.constant 0 : index
    %c0_39 = arith.constant 0 : index
    %54 = vector.load %arg8[%c0_37, %c0_38, %c0_39] : memref<4x8x32xf32, #tpu.memory_space<vmem>>, vector<4x8x32xf32>
    %c0_40 = arith.constant 0 : index
    %c0_41 = arith.constant 0 : index
    %c0_42 = arith.constant 0 : index
    %55 = vector.load %arg9[%c0_40, %c0_41, %c0_42] : memref<4x8x32xf32, #tpu.memory_space<vmem>>, vector<4x8x32xf32>
    %c0_43 = arith.constant 0 : index
    %c0_44 = arith.constant 0 : index
    %56 = vector.load %arg14[%c0_43, %c0_44] : memref<32x32xf32, #tpu.memory_space<vmem>>, vector<32x32xf32>
    %c0_45 = arith.constant 0 : index
    %c0_46 = arith.constant 0 : index
    %57 = vector.load %arg15[%c0_45, %c0_46] : memref<1x32xf32, #tpu.memory_space<vmem>>, vector<1x32xf32>
    %c0_47 = arith.constant 0 : index
    %c0_48 = arith.constant 0 : index
    %58 = vector.load %arg16[%c0_47, %c0_48] : memref<1x32xf32, #tpu.memory_space<vmem>>, vector<1x32xf32>
    %cst_49 = arith.constant dense<0.000000e+00> : vector<4x32xf32>
    %59 = tpu.matmul %48, %56, %cst_49 {dimension_numbers = #tpu.dot_dimension_numbers<[1], [0], [0], [1], [0, 0, 1, 1], [], []>} : vector<4x32xf32>, vector<32x32xf32>, vector<4x32xf32> -> vector<4x32xf32>
    %60 = vector.broadcast %57 : vector<1x32xf32> to vector<4x32xf32>
    %61 = arith.addf %59, %60 : vector<4x32xf32>
    %62 = vector.shape_cast %61 : vector<4x32xf32> to vector<4x1x32xf32>
    %63 = vector.broadcast %62 : vector<4x1x32xf32> to vector<4x8x32xf32>
    %64 = arith.addf %63, %54 : vector<4x8x32xf32>
    %65 = math.tanh %64 : vector<4x8x32xf32>
    %66 = vector.shape_cast %58 : vector<1x32xf32> to vector<1x1x32xf32>
    %67 = vector.broadcast %66 : vector<1x1x32xf32> to vector<4x8x32xf32>
    %68 = arith.mulf %65, %67 : vector<4x8x32xf32>
    %cst_50 = arith.constant dense<0.000000e+00> : vector<4x8xf32>
    %69 = vector.multi_reduction <add>, %68, %cst_50 [2] : vector<4x8x32xf32> to vector<4x8xf32>
    %cst_51 = arith.constant 5.000000e-01 : f32
    %70 = vector.broadcast %cst_51 : f32 to vector<4x8xf32>
    %71 = arith.cmpf ogt, %53, %70 : vector<4x8xf32>
    %cst_52 = arith.constant -1.000000e+09 : f32
    %72 = vector.broadcast %cst_52 : f32 to vector<4x8xf32>
    %73 = arith.select %71, %72, %69 : vector<4x8xi1>, vector<4x8xf32>
    %cst_53 = arith.constant dense<0xFF800000> : vector<4xf32>
    %74 = vector.multi_reduction <maximumf>, %73, %cst_53 [1] : vector<4x8xf32> to vector<4xf32>
    %75 = vector.shape_cast %74 : vector<4xf32> to vector<4x1xf32>
    %76 = vector.broadcast %75 : vector<4x1xf32> to vector<4x8xf32>
    %77 = arith.subf %73, %76 : vector<4x8xf32>
    %78 = math.exp %77 : vector<4x8xf32>
    %cst_54 = arith.constant dense<0.000000e+00> : vector<4xf32>
    %79 = vector.multi_reduction <add>, %78, %cst_54 [1] : vector<4x8xf32> to vector<4xf32>
    %80 = vector.shape_cast %79 : vector<4xf32> to vector<4x1xf32>
    %81 = vector.broadcast %80 : vector<4x1xf32> to vector<4x8xf32>
    %82 = arith.divf %78, %81 : vector<4x8xf32>
    %83 = vector.shape_cast %82 : vector<4x8xf32> to vector<4x8x1xf32>
    %84 = vector.broadcast %83 : vector<4x8x1xf32> to vector<4x8x32xf32>
    %85 = arith.mulf %54, %84 : vector<4x8x32xf32>
    %cst_55 = arith.constant dense<0.000000e+00> : vector<4x32xf32>
    %86 = vector.multi_reduction <add>, %85, %cst_55 [1] : vector<4x8x32xf32> to vector<4x32xf32>
    %c0_56 = arith.constant 0 : index
    %c0_57 = arith.constant 0 : index
    %87 = vector.load %arg17[%c0_56, %c0_57] : memref<32x32xf32, #tpu.memory_space<vmem>>, vector<32x32xf32>
    %c0_58 = arith.constant 0 : index
    %c0_59 = arith.constant 0 : index
    %88 = vector.load %arg18[%c0_58, %c0_59] : memref<1x32xf32, #tpu.memory_space<vmem>>, vector<1x32xf32>
    %c0_60 = arith.constant 0 : index
    %c0_61 = arith.constant 0 : index
    %89 = vector.load %arg19[%c0_60, %c0_61] : memref<1x32xf32, #tpu.memory_space<vmem>>, vector<1x32xf32>
    %cst_62 = arith.constant dense<0.000000e+00> : vector<4x32xf32>
    %90 = tpu.matmul %86, %87, %cst_62 {dimension_numbers = #tpu.dot_dimension_numbers<[1], [0], [0], [1], [0, 0, 1, 1], [], []>} : vector<4x32xf32>, vector<32x32xf32>, vector<4x32xf32> -> vector<4x32xf32>
    %91 = vector.broadcast %88 : vector<1x32xf32> to vector<4x32xf32>
    %92 = arith.addf %90, %91 : vector<4x32xf32>
    %93 = vector.shape_cast %92 : vector<4x32xf32> to vector<4x1x32xf32>
    %94 = vector.broadcast %93 : vector<4x1x32xf32> to vector<4x8x32xf32>
    %95 = arith.addf %94, %55 : vector<4x8x32xf32>
    %96 = math.tanh %95 : vector<4x8x32xf32>
    %97 = vector.shape_cast %89 : vector<1x32xf32> to vector<1x1x32xf32>
    %98 = vector.broadcast %97 : vector<1x1x32xf32> to vector<4x8x32xf32>
    %99 = arith.mulf %96, %98 : vector<4x8x32xf32>
    %cst_63 = arith.constant dense<0.000000e+00> : vector<4x8xf32>
    %100 = vector.multi_reduction <add>, %99, %cst_63 [2] : vector<4x8x32xf32> to vector<4x8xf32>
    %101 = math.tanh %100 : vector<4x8xf32>
    %cst_64 = arith.constant 1.000000e+01 : f32
    %102 = vector.broadcast %cst_64 : f32 to vector<4x8xf32>
    %103 = arith.mulf %102, %101 : vector<4x8xf32>
    %cst_65 = arith.constant 5.000000e-01 : f32
    %104 = vector.broadcast %cst_65 : f32 to vector<4x8xf32>
    %105 = arith.cmpf ogt, %53, %104 : vector<4x8xf32>
    %cst_66 = arith.constant -1.000000e+09 : f32
    %106 = vector.broadcast %cst_66 : f32 to vector<4x8xf32>
    %107 = arith.select %105, %106, %103 : vector<4x8xi1>, vector<4x8xf32>
    %cst_67 = arith.constant dense<0xFF800000> : vector<4xf32>
    %108 = vector.multi_reduction <maximumf>, %107, %cst_67 [1] : vector<4x8xf32> to vector<4xf32>
    %109 = vector.shape_cast %108 : vector<4xf32> to vector<4x1xf32>
    %110 = vector.broadcast %109 : vector<4x1xf32> to vector<4x8xf32>
    %111 = arith.subf %107, %110 : vector<4x8xf32>
    %112 = math.exp %111 : vector<4x8xf32>
    %cst_68 = arith.constant dense<0.000000e+00> : vector<4xf32>
    %113 = vector.multi_reduction <add>, %112, %cst_68 [1] : vector<4x8xf32> to vector<4xf32>
    %114 = vector.shape_cast %113 : vector<4xf32> to vector<4x1xf32>
    %115 = vector.broadcast %114 : vector<4x1xf32> to vector<4x8xf32>
    %116 = arith.divf %112, %115 : vector<4x8xf32>
    %c0_69 = arith.constant 0 : index
    %c0_70 = arith.constant 0 : index
    %c0_71 = arith.constant 0 : index
    %117 = vector.load %arg20[%c0_69, %c0_70, %c0_71] : memref<1x4x8xf32, #tpu.memory_space<vmem>>, vector<1x4x8xf32>
    %118 = vector.shape_cast %117 : vector<1x4x8xf32> to vector<4x8xf32>
    %119 = vector.shape_cast %116 : vector<4x8xf32> to vector<1x4x8xf32>
    tpu.vector_store %arg20[%c0_69, %c0_70, %c0_71], %119 {strides = array<i32>} : memref<1x4x8xf32, #tpu.memory_space<vmem>>, vector<1x4x8xf32>,
    %c0_72 = arith.constant 0 : index
    %c0_73 = arith.constant 0 : index
    %c0_74 = arith.constant 0 : index
    %120 = vector.load %arg1[%c0_72, %c0_73, %c0_74] : memref<1x4x8xf32, #tpu.memory_space<vmem>>, vector<1x4x8xf32>
    %121 = vector.shape_cast %120 : vector<1x4x8xf32> to vector<4x8xf32>
    %122 = arith.addf %107, %121 : vector<4x8xf32>
    %123 = tpu.iota {dimensions = array<i32: 1>} : vector<4x8xi32>
    %124 = arith.sitofp %123 : vector<4x8xi32> to vector<4x8xf32>
    %cst_75 = arith.constant dense<0xFF800000> : vector<4xf32>
    %125 = vector.multi_reduction <maximumf>, %122, %cst_75 [1] : vector<4x8xf32> to vector<4xf32>
    %126 = vector.shape_cast %125 : vector<4xf32> to vector<4x1xf32>
    %127 = vector.broadcast %126 : vector<4x1xf32> to vector<4x8xf32>
    %128 = arith.cmpf oge, %122, %127 : vector<4x8xf32>
    %cst_76 = arith.constant 8.000000e+00 : f32
    %129 = vector.broadcast %cst_76 : f32 to vector<4x8xf32>
    %130 = arith.select %128, %124, %129 : vector<4x8xi1>, vector<4x8xf32>
    %cst_77 = arith.constant dense<0x7F800000> : vector<4xf32>
    %131 = vector.multi_reduction <minimumf>, %130, %cst_77 [1] : vector<4x8xf32> to vector<4xf32>
    %132 = vector.shape_cast %131 : vector<4xf32> to vector<4x1xf32>
    %133 = arith.fptosi %132 : vector<4x1xf32> to vector<4x1xi32>
    %c0_78 = arith.constant 0 : index
    %c0_79 = arith.constant 0 : index
    %c0_80 = arith.constant 0 : index
    %134 = vector.load %arg21[%c0_78, %c0_79, %c0_80] : memref<1x4x1xi32, #tpu.memory_space<vmem>>, vector<1x4x1xi32>
    %135 = vector.shape_cast %134 : vector<1x4x1xi32> to vector<4x1xi32>
    %136 = vector.shape_cast %133 : vector<4x1xi32> to vector<1x4x1xi32>
    tpu.vector_store %arg21[%c0_78, %c0_79, %c0_80], %136 {strides = array<i32>} : memref<1x4x1xi32, #tpu.memory_space<vmem>>, vector<1x4x1xi32>,
    %137 = vector.broadcast %132 : vector<4x1xf32> to vector<4x8xf32>
    %138 = arith.cmpf oeq, %124, %137 : vector<4x8xf32>
    %139 = arith.extui %138 : vector<4x8xi1> to vector<4x8xi32>
    %140 = arith.sitofp %139 : vector<4x8xi32> to vector<4x8xf32>
    %141 = arith.maximumf %53, %140 : vector<4x8xf32>
    %c0_81 = arith.constant 0 : index
    %c0_82 = arith.constant 0 : index
    %142 = vector.load %arg26[%c0_81, %c0_82] : memref<4x8xf32, #tpu.memory_space<vmem>>, vector<4x8xf32>
    tpu.vector_store %arg26[%c0_81, %c0_82], %141 {strides = array<i32>} : memref<4x8xf32, #tpu.memory_space<vmem>>, vector<4x8xf32>,
    %c0_83 = arith.constant 0 : index
    %c0_84 = arith.constant 0 : index
    %c0_85 = arith.constant 0 : index
    %143 = vector.load %arg3[%c0_83, %c0_84, %c0_85] : memref<4x8x16xf32, #tpu.memory_space<vmem>>, vector<4x8x16xf32>
    %144 = vector.shape_cast %140 : vector<4x8xf32> to vector<4x8x1xf32>
    %145 = vector.broadcast %144 : vector<4x8x1xf32> to vector<4x8x16xf32>
    %146 = arith.mulf %143, %145 : vector<4x8x16xf32>
    %cst_86 = arith.constant dense<0.000000e+00> : vector<4x16xf32>
    %147 = vector.multi_reduction <add>, %146, %cst_86 [1] : vector<4x8x16xf32> to vector<4x16xf32>
    %c0_87 = arith.constant 0 : index
    %c0_88 = arith.constant 0 : index
    %c0_89 = arith.constant 0 : index
    %148 = vector.load %arg2[%c0_87, %c0_88, %c0_89] : memref<1x4x16xf32, #tpu.memory_space<vmem>>, vector<1x4x16xf32>
    %149 = vector.shape_cast %148 : vector<1x4x16xf32> to vector<4x16xf32>
    %c0_90 = arith.constant 0 : index
    %c0_91 = arith.constant 0 : index
    %150 = vector.load %arg27[%c0_90, %c0_91] : memref<4x16xf32, #tpu.memory_space<vmem>>, vector<4x16xf32>
    tpu.vector_store %arg27[%c0_90, %c0_91], %149 {strides = array<i32>} : memref<4x16xf32, #tpu.memory_space<vmem>>, vector<4x16xf32>,
    %c0_92 = arith.constant 0 : index
    %c0_93 = arith.constant 0 : index
    %151 = vector.load %arg28[%c0_92, %c0_93] : memref<4x16xf32, #tpu.memory_space<vmem>>, vector<4x16xf32>
    tpu.vector_store %arg28[%c0_92, %c0_93], %147 {strides = array<i32>} : memref<4x16xf32, #tpu.memory_space<vmem>>, vector<4x16xf32>,
    return
  }
  func.func @transform_0(%arg0: i32) -> (i32, i32, i32) {
    %c0_i32 = arith.constant 0 : i32
    %c0_i32_0 = arith.constant 0 : i32
    %c0_i32_1 = arith.constant 0 : i32
    return %arg0, %c0_i32, %c0_i32_0 : i32, i32, i32
  }
  func.func @transform_1(%arg0: i32) -> (i32, i32, i32) {
    %c0_i32 = arith.constant 0 : i32
    %c0_i32_0 = arith.constant 0 : i32
    %c0_i32_1 = arith.constant 0 : i32
    return %arg0, %c0_i32, %c0_i32_0 : i32, i32, i32
  }
  func.func @transform_2(%arg0: i32) -> (i32, i32, i32) {
    %c0_i32 = arith.constant 0 : i32
    %c0_i32_0 = arith.constant 0 : i32
    %c0_i32_1 = arith.constant 0 : i32
    %c0_i32_2 = arith.constant 0 : i32
    return %c0_i32, %c0_i32_0, %c0_i32_1 : i32, i32, i32
  }
  func.func @transform_3(%arg0: i32) -> (i32, i32) {
    %c0_i32 = arith.constant 0 : i32
    %c0_i32_0 = arith.constant 0 : i32
    %c0_i32_1 = arith.constant 0 : i32
    return %c0_i32, %c0_i32_0 : i32, i32
  }
  func.func @transform_4(%arg0: i32) -> (i32, i32) {
    %c0_i32 = arith.constant 0 : i32
    %c0_i32_0 = arith.constant 0 : i32
    %c0_i32_1 = arith.constant 0 : i32
    return %c0_i32, %c0_i32_0 : i32, i32
  }
  func.func @transform_5(%arg0: i32) -> (i32, i32) {
    %c0_i32 = arith.constant 0 : i32
    %c0_i32_0 = arith.constant 0 : i32
    %c0_i32_1 = arith.constant 0 : i32
    return %c0_i32, %c0_i32_0 : i32, i32
  }
  func.func @transform_6(%arg0: i32) -> (i32, i32) {
    %c0_i32 = arith.constant 0 : i32
    %c0_i32_0 = arith.constant 0 : i32
    %c0_i32_1 = arith.constant 0 : i32
    return %c0_i32, %c0_i32_0 : i32, i32
  }
  func.func @transform_7(%arg0: i32) -> (i32, i32, i32) {
    %c0_i32 = arith.constant 0 : i32
    %c0_i32_0 = arith.constant 0 : i32
    %c0_i32_1 = arith.constant 0 : i32
    %c0_i32_2 = arith.constant 0 : i32
    return %c0_i32, %c0_i32_0, %c0_i32_1 : i32, i32, i32
  }
  func.func @transform_8(%arg0: i32) -> (i32, i32, i32) {
    %c0_i32 = arith.constant 0 : i32
    %c0_i32_0 = arith.constant 0 : i32
    %c0_i32_1 = arith.constant 0 : i32
    %c0_i32_2 = arith.constant 0 : i32
    return %c0_i32, %c0_i32_0, %c0_i32_1 : i32, i32, i32
  }
  func.func @transform_9(%arg0: i32) -> (i32, i32) {
    %c0_i32 = arith.constant 0 : i32
    %c0_i32_0 = arith.constant 0 : i32
    %c0_i32_1 = arith.constant 0 : i32
    return %c0_i32, %c0_i32_0 : i32, i32
  }
  func.func @transform_10(%arg0: i32) -> (i32, i32) {
    %c0_i32 = arith.constant 0 : i32
    %c0_i32_0 = arith.constant 0 : i32
    %c0_i32_1 = arith.constant 0 : i32
    return %c0_i32, %c0_i32_0 : i32, i32
  }
  func.func @transform_11(%arg0: i32) -> (i32, i32) {
    %c0_i32 = arith.constant 0 : i32
    %c0_i32_0 = arith.constant 0 : i32
    %c0_i32_1 = arith.constant 0 : i32
    return %c0_i32, %c0_i32_0 : i32, i32
  }
  func.func @transform_12(%arg0: i32) -> (i32, i32) {
    %c0_i32 = arith.constant 0 : i32
    %c0_i32_0 = arith.constant 0 : i32
    %c0_i32_1 = arith.constant 0 : i32
    return %c0_i32, %c0_i32_0 : i32, i32
  }
  func.func @transform_13(%arg0: i32) -> (i32, i32) {
    %c0_i32 = arith.constant 0 : i32
    %c0_i32_0 = arith.constant 0 : i32
    %c0_i32_1 = arith.constant 0 : i32
    return %c0_i32, %c0_i32_0 : i32, i32
  }
  func.func @transform_14(%arg0: i32) -> (i32, i32) {
    %c0_i32 = arith.constant 0 : i32
    %c0_i32_0 = arith.constant 0 : i32
    %c0_i32_1 = arith.constant 0 : i32
    return %c0_i32, %c0_i32_0 : i32, i32
  }
  func.func @transform_15(%arg0: i32) -> (i32, i32) {
    %c0_i32 = arith.constant 0 : i32
    %c0_i32_0 = arith.constant 0 : i32
    %c0_i32_1 = arith.constant 0 : i32
    return %c0_i32, %c0_i32_0 : i32, i32
  }
  func.func @transform_16(%arg0: i32) -> (i32, i32) {
    %c0_i32 = arith.constant 0 : i32
    %c0_i32_0 = arith.constant 0 : i32
    %c0_i32_1 = arith.constant 0 : i32
    return %c0_i32, %c0_i32_0 : i32, i32
  }
  func.func @transform_17(%arg0: i32) -> (i32, i32) {
    %c0_i32 = arith.constant 0 : i32
    %c0_i32_0 = arith.constant 0 : i32
    %c0_i32_1 = arith.constant 0 : i32
    return %c0_i32, %c0_i32_0 : i32, i32
  }
  func.func @transform_18(%arg0: i32) -> (i32, i32) {
    %c0_i32 = arith.constant 0 : i32
    %c0_i32_0 = arith.constant 0 : i32
    %c0_i32_1 = arith.constant 0 : i32
    return %c0_i32, %c0_i32_0 : i32, i32
  }
  func.func @transform_19(%arg0: i32) -> (i32, i32, i32) {
    %c0_i32 = arith.constant 0 : i32
    %c0_i32_0 = arith.constant 0 : i32
    %c0_i32_1 = arith.constant 0 : i32
    return %arg0, %c0_i32, %c0_i32_0 : i32, i32, i32
  }
  func.func @transform_20(%arg0: i32) -> (i32, i32, i32) {
    %c0_i32 = arith.constant 0 : i32
    %c0_i32_0 = arith.constant 0 : i32
    %c0_i32_1 = arith.constant 0 : i32
    return %arg0, %c0_i32, %c0_i32_0 : i32, i32, i32
  }
  func.func @transform_21(%arg0: i32) -> (i32, i32) {
    %c0_i32 = arith.constant 0 : i32
    %c0_i32_0 = arith.constant 0 : i32
    %c0_i32_1 = arith.constant 0 : i32
    return %c0_i32, %c0_i32_0 : i32, i32
  }
  func.func @transform_22(%arg0: i32) -> (i32, i32) {
    %c0_i32 = arith.constant 0 : i32
    %c0_i32_0 = arith.constant 0 : i32
    %c0_i32_1 = arith.constant 0 : i32
    return %c0_i32, %c0_i32_0 : i32, i32
  }
}

</mosaic_0001>

<bundles_post_ra>
// kernel: matching_pointer_network_forward.3
= control target key start
LH: loop header
LB: loop body
LE: loop exit
PB: predicated region body
PF: predicated region fallthrough
CT: control target
= control target key end

     0   :  { %s2582_s0 = inlined_call_operand.vmem [shape: f32[8,4,8], index: 0, kind: input, shape index: {}]   ;;  %s2583_s1 = inlined_call_operand.vmem [shape: f32[8,4,16], index: 1, kind: input, shape index: {}]   ;;  %s2584_s2 = inlined_call_operand.vmem [shape: f32[4,8,16], index: 2, kind: input, shape index: {}]   ;;  %s2585_s3 = inlined_call_operand.vmem [shape: f32[4,16], index: 3, kind: input, shape index: {}]   ;;  %s2586_s4 = inlined_call_operand.vmem [shape: f32[4,16], index: 4, kind: input, shape index: {}]   ;;  %s2587_s5 = inlined_call_operand.vmem [shape: f32[4,32], index: 5, kind: input, shape index: {}]   ;;  %s2588_s6 = inlined_call_operand.vmem [shape: f32[4,32], index: 6, kind: input, shape index: {}]   ;;  %s2589_s7 = inlined_call_operand.vmem [shape: f32[4,8,32], index: 7, kind: input, shape index: {}]   ;;  %s2590_s8 = inlined_call_operand.vmem [shape: f32[4,8,32], index: 8, kind: input, shape index: {}]   ;;  %s2591_s9 = inlined_call_operand.vmem [shape: f32[16,128], index: 9, kind: input, shape index: {}]   ;;  %s2592_s10 = inlined_call_operand.vmem [shape: f32[16,128], index: 10, kind: input, shape index: {}]   ;;  %s2593_s11 = inlined_call_operand.vmem [shape: f32[32,128], index: 11, kind: input, shape index: {}]   ;;  %s2594_s12 = inlined_call_operand.vmem [shape: f32[1,128], index: 12, kind: input, shape index: {}]   ;;  %s2595_s13 = inlined_call_operand.vmem [shape: f32[32,32], index: 13, kind: input, shape index: {}]   ;;  %s2596_s14 = inlined_call_operand.vmem [shape: f32[1,32], index: 14, kind: input, shape index: {}]   ;;  %s2597_s15 = inlined_call_operand.vmem [shape: f32[1,32], index: 15, kind: input, shape index: {}]   ;;  %s2598_s16 = inlined_call_operand.vmem [shape: f32[32,32], index: 16, kind: input, shape index: {}]   ;;  %s2599_s17 = inlined_call_operand.vmem [shape: f32[1,32], index: 17, kind: input, shape index: {}]   ;;  %s2600_s18 = inlined_call_operand.vmem [shape: f32[1,32], index: 18, kind: input, shape index: {}]   ;;  %s2601_s19 = inlined_call_operand.hbm [shape: f32[8,4,8], index: 19, kind: output, shape index: {0}]   ;;  %s2602_s20 = inlined_call_operand.vmem [shape: s32[8,4,1], index: 20, kind: output, shape index: {1}]   ;;  %s2603_s21 = inlined_call_operand.hbm [shape: f32[4,32], index: 21, kind: output, shape index: {2}]   ;;  %s2604_s22 = inlined_call_operand.hbm [shape: f32[4,32], index: 22, kind: output, shape index: {3}]  }
   0x1   :  { %2618 = sst [smem:[#allocation22_spill]] %s2582_s0 }
   0x2   :  { %2619 = sst [smem:[#allocation23_spill]] %s2583_s1 }
   0x3   :  { %2620 = sst [smem:[#allocation24_spill]] %s2584_s2 }
   0x4   :  { %2621 = sst [smem:[#allocation25_spill]] %s2585_s3 }
   0x5   :  { %2622 = sst [smem:[#allocation26_spill]] %s2586_s4 }
   0x6   :  { %2623 = sst [smem:[#allocation27_spill]] %s2587_s5 }
   0x7   :  { %2624 = sst [smem:[#allocation28_spill]] %s2588_s6 }
   0x8   :  { %2625 = sst [smem:[#allocation29_spill]] %s2601_s19 }
   0x9   :  { %2626 = sst [smem:[#allocation30_spill]] %s2603_s21 }
   0xa   :  { %2627 = sst [smem:[#allocation31_spill]] %s2604_s22 }
   0xb   :  { %28 = vsyncpa [#allocation8], 0 }
   0xc   :  { %30 = vsyncpa [#allocation8 + $0x1], 0 }
   0xd   :  { %31 = vsyncpa [#allocation10], 0  ;;  %s2170_s3 = smov 0   ;;  %s2172_s28 = smov 0  }
   0xe   :  { %s2174_s29 = smov 0   ;;  %s2176_s30 = smov 0  }
   0xf LB: > { %2628 = sst [smem:[#allocation14_spill]] %s2031_s3  ;;  %s2191_s4 = sadd.s32 4294967295, %s2043_s30   ;;  %s2043_s30 = sphi %s2176_s30, %s2663_s30   ;;  %s2039_s29 = sphi %s2174_s29, %s2666_s29   ;;  %s2035_s28 = sphi %s2172_s28, %s2665_s28   ;;  %s2031_s3 = sphi %s2170_s3, %s2664_s3  }
  0x10   : > { %2629 = sst [smem:[#allocation15_spill]] %s2035_s28  ;;  %s1735_s0 = sadd.s32 4294967294, %s2043_s30  }
  0x11   : > { %2630 = sst [smem:[#allocation16_spill]] %s2039_s29  ;;  %s2195_s23 = sadd.s32 1, %s2043_s30  }
  0x12   : > { %2631 = sst [smem:[#allocation17_spill]] %s2043_s30  ;;  %s453_s1 = sadd.s32 1, %s2039_s29 }
  0x13   : > { %2632 = sst [smem:[#allocation18_spill]] %s2195_s23  ;;  %s450_s5 = ssub.s32 %s2043_s30, %s2195_s23 }
  0x14   : > { %p463_p0 = scmp.ne.s32.totalorder %s2039_s29, %s2035_s28  ;;  %p451_p1 = scmp.eq.s32.totalorder %s450_s5, 0 }
  0x15   : > { %p2617_p2 = scmp.eq.s32.totalorder %s2191_s4, 7  ;;  %p469_p3 = scmp.ne.s32.totalorder %s2035_s28, %s2031_s3 }
  0x16   : > { %p470_p4 = scmp.eq.s32.totalorder %s1735_s0, 7  ;;  %p1738_p7 = scmp.ge.s32.totalorder %s2043_s30, 1 }
  0x17   : > { %s2206_s24 = scalar_select %p451_p1, %s2039_s29, %s453_s1  }
  0x18   : > { %p2210_p5 = por %p2617_p2, %p463_p0  ;;  %p2214_p6 = por %p470_p4, %p469_p3 }
  0x19   : > { %2633 = sst [smem:[#allocation19_spill]] %s2206_s24  ;;  %p621_p8 = scmp.lt.s32.totalorder %s2043_s30, 9 }
  0x1a   : > { %s2634_s6 = scalar_select %p2210_p5, 1, 0 }
  0x1b   : > { %s2636_s25 = scalar_select %p2214_p6, 1, 0 }
  0x1c   : > { %2635 = sst [smem:[#allocation20_spill]] %s2634_s6  ;;  %p622_p9 = pnand %p1738_p7, %p621_p8 }
  0x1d   : > { %2637 = sst [smem:[#allocation21_spill]] %s2636_s25  ;;  %s2613_s26 = sand.u32 (!%p622_p9), 1, %s2035_s28  }
  0x1e   : > { %625 = sbr.rel (%p622_p9) target bundleno = 2382 (0x94e), region = 96  ;;  %p690_p10 = scmp.lt.s32.totalorder (!%p622_p9), %s2191_s4, 7 }
  0x1f   : > { %s2224_s2 = sshll.u32 (!%p622_p9), %s2613_s26, 2  ;;  %s2638_s24 = sld [smem:[#allocation22_spill]] (!%p622_p9) }
  0x20   : > { %s2639_s3 = sld [smem:[#allocation23_spill]] (!%p622_p9)  ;;  %p1743_p11 = scmp.ne.s32.totalorder (!%p622_p9), %s2191_s4, 0 }
  0x23   : > { %s691_s27 = scalar_select %p690_p10, %s2191_s4, 7 }
  0x24   : > { %705 = sbr.rel (%p1743_p11) target bundleno = 48 (0x30), region = 100  ;;  %s2640_s21 = sld [smem:[#allocation27_spill]] (!%p1743_p11) }
  0x25   : > { %s2227_s0 = sshll.u32 %s691_s27, 2  ;;  %s2642_s19 = sld [smem:[#allocation25_spill]] (!%p1743_p11) }
  0x26   : > { %s693_s29 = scalar_lea.vmem %s2638_s24, %s2227_s0  ;;  %s697_s30 = scalar_lea.vmem %s2639_s3, %s2227_s0 }
  0x27   : > { %s701_s26 = scalar_lea.vmem %s2602_s20, %s2227_s0  ;;  %s2641_s24 = sld [smem:[#allocation28_spill]] (!%p1743_p11) }
  0x28   : > { %s2643_s6 = sld [smem:[#allocation26_spill]] (!%p1743_p11) }
  0x29   : > { %vm707_vm0 = vcmask 257024   ;;  %vm711_vm1 = vcmask 60416   ;;  %vm714_vm2 = vcmask 125952   ;;  %v2045_v4 = vmov 0.0  }
  0x2a   : > { %v706_v0 = vld [vmem:[%s2640_s21] sm:$0xf]  ;;  %712 = vst.msk [vmem:[#allocation4] sm:$0xf] %vm711_vm1, %v2045_v4 }
  0x2b   : > { %708 = vst.msk [vmem:[#allocation2] sm:$0xf] %vm707_vm0, %v706_v0  ;;  %v713_v2 = vld [vmem:[%s2642_s19] sm:$0xf] }
  0x2c   : > { %715 = vst.msk [vmem:[#allocation5] sm:$0xf] %vm714_vm2, %v713_v2 }
  0x2d   : > { %v709_v1 = vld [vmem:[%s2641_s24] sm:$0xf] }
  0x2e   : > { %710 = vst.msk [vmem:[#allocation3] sm:$0xf] %vm707_vm0, %v709_v1  ;;  %v716_v3 = vld [vmem:[%s2643_s6] sm:$0xf] }
  0x2f   : > { %717 = vst.msk [vmem:[#allocation6] sm:$0xf] %vm714_vm2, %v716_v3 }
  0x30 PF: > { %v725_v5 = vld [vmem:[%s2592_s10 + $0x8] sm:$0xff]  ;;  %v876_v6 = vld [vmem:[%s2593_s11 + $0x18] sm:$0xff]  ;;  %v2046_v7 = vmov 0.0   ;;  %v724_v8 = vld [vmem:[%s2592_s10] sm:$0xff]  ;;  %vm1565_vm3 = vcmask 125952   ;;  %vm726_vm4 = vcmask 130048   ;;  %v1096_v50 = vlaneseq }
  0x31   : > { %1784 = vmatprep.subr.mxu1 %v2046_v7  ;;  %1798 = vmatprep.subr.mxu0 %v2046_v7  ;;  %v875_v10 = vld [vmem:[%s2593_s11 + $0x10] sm:$0xff]  ;;  %vm2047_vm5 = vmmov 0   ;;  %v722_v11 = vld [vmem:[%s2591_s9 + $0x8] sm:$0xff]  ;;  %v1564_v13 = vld [vmem:[%s697_s30] sm:$0xf]  ;;  %vm877_vm6 = vcmask 261120  }
  0x32   : > { %1785 = vmatpush3.msra.mxu1 %v725_v5  ;;  %1799 = vmatpush3.msra.mxu0 %v876_v6  ;;  %v874_v14 = vld [vmem:[%s2593_s11 + $0x8] sm:$0xff]  ;;  %v721_v15 = vld [vmem:[%s2591_s9] sm:$0xff]  ;;  %s2048_s23 = smov 64   ;;  %s2049_s19 = smov 32   ;;  %v1011_v40 = vld [vmem:[%s2595_s13 + $0x18] sm:$0xff]  ;;  %vm990_vm7 = vcmask 257024  }
  0x33   : > { %1786 = vmatprep.subr.mxu1 %v2046_v7  ;;  %1788 = vmatprep.mubr.msk.f32.mxu1 %vm2047_vm5, %v2046_v7  ;;  %v720_v12 = vld [vmem:[#allocation5] sm:$0xf]  ;;  %v873_v16 = vld [vmem:[%s2593_s11] sm:$0xff]  ;;  %v1010_v41 = vld [vmem:[%s2595_s13 + $0x10] sm:$0xff]  ;;  %v2050_v48 = vmov 1966171168  }
  0x34   : > { %1787 = vmatpush3.msra.mxu1 %v724_v8  ;;  %1800 = vmatprep.subr.mxu0 %v2046_v7  ;;  %1566 = vst.msk [vmem:[#allocation5] sm:$0xf] %vm1565_vm3, %v1564_v13  ;;  %v718_v17 = vld [vmem:[#allocation2] sm:$0xf]  ;;  %v1009_v42 = vld [vmem:[%s2595_s13 + $0x8] sm:$0xff]  ;;  %v1094_v49 = vunpack.c.l.s4 %v2050_v48  ;;  %v2332_v52 = vshrl.u32 %v1096_v50, 7 }
  0x35   : > { %1791 = vmatprep.subr.mxu1 %v2046_v7  ;;  %1801 = vmatpush3.msra.mxu0 %v875_v10  ;;  %v1747_v23 = vld [vmem:[%s2594_s12] ss:$0 sm:$0xff]  ;;  %v719_v29 = vld [vmem:[#allocation3] sm:$0xf]  ;;  %v2355_v2 = vld [vmem:[%s2589_s7 + $0x8] sm:$0xff]  ;;  %vm1190_vm8 = vcmask 1041409  }
  0x36   : > { %v723_v9 = vld [vmem:[#allocation6] sm:$0xf]  ;;  %1802 = vmatprep.subr.mxu0 %v2046_v7  ;;  %1806 = vmatprep.mubr.msk.f32.mxu0 %vm2047_vm5, %v2046_v7  ;;  %v1008_v43 = vld [vmem:[%s2595_s13] sm:$0xff]  ;;  %v1095_v51 = vunpack.c.0.s8 %v1094_v49  ;;  %v2342_v59 = vsub.s32 0, %v2332_v52  ;;  %vm1192_vm9 = vcmask 1042434   ;;  %vm1194_vm10 = vcmask 1043459  }
  0x37   : > { %1789 = vmatmul.mubr.msk.f32.vlgmr.msra.gmra.mxu1 %vm726_vm4, %v723_v9  ;;  %1803 = vmatpush3.msra.mxu0 %v874_v14  ;;  %v1748_v53 = vld [vmem:[%s2596_s14] ss:$0 sm:$0xff]  ;;  %v2360_v3 = vld [vmem:[%s2589_s7 + $0x10] sm:$0xff]  ;;  %v2368_v9 = vld [vmem:[%s2589_s7 + $0x18] sm:$0xff]  ;;  %vm1198_vm12 = vcmask 60416   ;;  %vm1493_vm15 = vcmask 3072  }
  0x38   : > { %1792 = vmatpush3.msra.mxu1 %v722_v11  ;;  %1795 = vmatprep.mubr.msk.f32.mxu1 %vm2047_vm5, %v2046_v7  ;;  %v2338_v54 = vsub.s32 %v1095_v51, %v2332_v52  ;;  %v2348_v62 = vld [vmem:[%s2589_s7] sm:$0xff]  ;;  %s2051_s1 = smov [#allocation9]   ;;  %s2052_s30 = smov 96  }
  0x39   : > { %1793 = vmatprep.subr.mxu1 %v2046_v7  ;;  %1804 = vmatprep.subr.mxu0 %v2046_v7  ;;  %v1750_v14 = vld [vmem:[%s2597_s15] ss:$0 sm:$0xff]  ;;  %s1608_s6 = sshll.u32 %s2051_s1, 4  ;;  %s1609_s6 = int_to_ptr.vmem [resolvable:$true] %s1608_s6 }
  0x3a   : > { %1794 = vmatpush3.msra.mxu1 %v721_v15  ;;  %1805 = vmatpush3.msra.mxu0 %v873_v16  ;;  %p1938_p1 = scmp.lt.s32.totalorder %s1609_s6, %s1609_s6 }
  0x3b   : > { %1796 = vmatmul.mubr.msk.f32.vlgmr.msra.gmra.mxu1 %vm726_vm4, %v720_v12  ;;  %1809 = vmatprep.subr.mxu1 %v2046_v7 }
  0x3c   : > { %1807 = vmatmul.mubr.msk.f32.vlgmr.msra.gmra.mxu0 %vm877_vm6, %v718_v17  ;;  %1817 = vmatprep.mubr.msk.f32.mxu1 %vm2047_vm5, %v2046_v7 }
  0x3d   : > { %1820 = vmatprep.subr.mxu0 %v2046_v7  ;;  %1828 = vmatprep.mubr.msk.f32.mxu0 %vm2047_vm5, %v2046_v7 }
  0x3e   : > { %1810 = vmatpush3.msra.mxu1 %v1011_v40 }
  0x3f   : > { %1811 = vmatprep.subr.mxu1 %v2046_v7 }
  0x40   : > { %1812 = vmatpush3.msra.mxu1 %v1010_v41 }
  0x41   : > { %1813 = vmatprep.subr.mxu1 %v2046_v7 }
  0x42   : > { %1814 = vmatpush3.msra.mxu1 %v1009_v42 }
  0x43   : > { %1815 = vmatprep.subr.mxu1 %v2046_v7 }
  0x44   : > { %1816 = vmatpush3.msra.mxu1 %v1008_v43 }
  0xf7   : > { %v796_v18 = vpop.f32.mrf.mxu1 }
  0xf9   : > { %v1790_v19 = vpop.f32.mrf.mxu1 }
  0xfb   : > { %v869_v20 = vpop.f32.mrf.mxu1 }
  0xfc   : > { %v870_v21 = vadd.f32 %v869_v20, %v796_v18  ;;  %v947_v22 = vpop.f32.mrf.mxu0 }
  0xfd   : > { %v1797_v24 = vpop.f32.mrf.mxu1 }
  0xfe   : > { %v951_v25 = vadd.f32 %v947_v22, %v870_v21  ;;  %v1808_v26 = vpop.f32.mrf.mxu0 }
 0x100   : > { %v959_v27 = vadd.f32 %v1747_v23, %v951_v25 }
 0x102   : > { %1893 = vtanh.f32 %v959_v27  ;;  %v960_v30 = vmul.f32 0.5, %v959_v27  ;;  %v2381_v27 = vand.u32 127, %v1096_v50  ;;  %v1219_v50 = vsub.s32 1, %v2332_v52 }
 0x104   : > { %1895 = vtanh.f32 %v960_v30 }
 0x10f   : > { %v1894_v28 = vpop.eup %1893 }
 0x110   : > { %971 = vrot.lane.b32.xlu0 %v1894_v28, %s2048_s23 }
 0x111   : > { %v1896_v31 = vpop.eup %1895 }
 0x112   : > { %v962_v32 = vadd.f32 1.0, %v1896_v31 }
 0x114   : > { %966 = vrot.lane.b32.xlu0 %v719_v29, %s2049_s19  ;;  %v963_v33 = vmul.f32 0.5, %v962_v32  ;;  %v2385_v29 = vsub.s32 %v2381_v27, %v2332_v52 }
 0x182   : > { %v972_v34 = vpop.permute.xlu0 %971 }
 0x183   : > { %v974_v35 = vmul.f32 %v972_v34, %v963_v33 }
 0x185   : > { %976 = vrot.lane.b32.xlu1 %v974_v35, %s2049_s19 }
 0x186   : > { %v967_v36 = vpop.permute.xlu0 %966 }
 0x187   : > { %v969_v37 = vmul.f32 %v967_v36, %v963_v33 }
 0x1f7   : > { %v977_v38 = vpop.permute.xlu1 %976 }
 0x1f8   : > { %v2311_v39 = vadd.f32 %v977_v38, %v969_v37 }
 0x1fa   : > { %1897 = vtanh.f32 %v2311_v39 }
 0x207   : > { %v1898_v44 = vpop.eup %1897 }
 0x208   : > { %982 = vrot.lane.b32.xlu1 %v1898_v44, %s2048_s23 }
 0x27a   : > { %v983_v45 = vpop.permute.xlu1 %982 }
 0x27b   : > { %v985_v46 = vmul.f32 %v983_v45, %v963_v33  ;;  %v2388_v33 = vld [vmem:[#allocation4] sm:$0xf] }
 0x27c   : > { %vm1167_vm11 = vcmp.gt.f32.partialorder %v2388_v33, 0.5 }
 0x27d   : > { %987 = vrot.lane.b32.xlu0 %v985_v46, %s2049_s19 }
 0x2ef   : > { %v988_v47 = vpop.permute.xlu0 %987 }
 0x2f0   : > { %991 = vst.msk [vmem:[#allocation2] sm:$0xf] %vm990_vm7, %v988_v47  ;;  %997 = vst.msk [vmem:[#allocation9] sm:$0xf] %vm990_vm7, %v988_v47  ;;  %1818 = vmatmul.mubr.msk.f32.vlgmr.msra.gmra.mxu1 %vm877_vm6, %v988_v47 }
 0x3b0   : > { %v1088_v55 = vpop.f32.mrf.mxu1 }
 0x3b1   : > { %v1089_v56 = vadd.f32 %v1748_v53, %v1088_v55 }
 0x3b2   : > { %v1819_v57 = vpop.f32.mrf.mxu1 }
 0x3b3   : > { %v1099_v58 = vrot.slane %v1089_v56, %v2338_v54  ;;  %v1226_v57 = vsub.s32 2, %v2332_v52 }
 0x3b5   : > { %v1100_v60 = vcombine.high %v1099_v58, %v1099_v58  ;;  %v1107_v61 = vrot.slane %v1099_v58, %v2338_v54  ;;  %v1233_v58 = vsub.s32 3, %v2332_v52 }
 0x3b7   : > { %v1114_v63 = vrot.slane %v1100_v60, %v2338_v54  ;;  %v1115_v0 = vcombine.high %v1107_v61, %v1107_v61  ;;  %v1120_v1 = vrot.slane %v1107_v61, %v2342_v59 }
 0x3b9   : > { %v1116_v4 = vcombine.high %v1114_v63, %v1114_v63  ;;  %v1124_v5 = vrot.slane %v1114_v63, %v2342_v59  ;;  %v1128_v6 = vrot.slane %v1115_v0, %v2342_v59  ;;  %v1137_v8 = vadd.f32 %v1120_v1, %v2348_v62  ;;  %v1273_v63 = vld [vmem:[%s2598_s16 + $0x18] sm:$0xff]  ;;  %v1272_v0 = vld [vmem:[%s2598_s16 + $0x10] sm:$0xff]  ;;  %v1271_v1 = vld [vmem:[%s2598_s16 + $0x8] sm:$0xff] }
 0x3ba   : > { %1821 = vmatpush3.msra.mxu0 %v1273_v63 }
 0x3bb   : > { %v1132_v10 = vrot.slane %v1116_v4, %v2342_v59  ;;  %v1138_v11 = vadd.f32 %v1124_v5, %v2355_v2  ;;  %v1139_v12 = vadd.f32 %v1128_v6, %v2360_v3  ;;  %1899 = vtanh.f32 %v1137_v8  ;;  %1822 = vmatprep.subr.mxu0 %v2046_v7  ;;  %v1270_v4 = vld [vmem:[%s2598_s16] sm:$0xff] }
 0x3bc   : > { %1823 = vmatpush3.msra.mxu0 %v1272_v0  ;;  %v1005_v0 = vld [vmem:[%s2590_s8 + $0x8] sm:$0xff] }
 0x3bd   : > { %v1140_v13 = vadd.f32 %v1132_v10, %v2368_v9  ;;  %1901 = vtanh.f32 %v1138_v11  ;;  %1824 = vmatprep.subr.mxu0 %v2046_v7 }
 0x3be   : > { %1903 = vtanh.f32 %v1139_v12  ;;  %1825 = vmatpush3.msra.mxu0 %v1271_v1  ;;  %v1006_v1 = vld [vmem:[%s2590_s8 + $0x10] sm:$0xff] }
 0x3bf   : > { %1905 = vtanh.f32 %v1140_v13  ;;  %1826 = vmatprep.subr.mxu0 %v2046_v7 }
 0x3c0   : > { %1827 = vmatpush3.msra.mxu0 %v1270_v4 }
 0x3c8   : > { %v1900_v15 = vpop.eup %1899 }
 0x3c9   : > { %v1151_v16 = vmul.f32 %v1900_v15, %v1750_v14 }
 0x3ca   : > { %v1902_v17 = vpop.eup %1901 }
 0x3cb   : > { %v1904_v18 = vpop.eup %1903  ;;  %v1155_v19 = vsel %vm877_vm6, %v1151_v16, 0.0  ;;  %v1152_v20 = vmul.f32 %v1902_v17, %v1750_v14 }
 0x3cc   : > { %v1906_v21 = vpop.eup %1905  ;;  %1156 = vadd.xlane.f32.xlu1 %v1155_v19  ;;  %v1153_v24 = vmul.f32 %v1904_v18, %v1750_v14 }
 0x3cd   : > { %v1158_v22 = vsel %vm877_vm6, %v1152_v20, 0.0  ;;  %v1154_v23 = vmul.f32 %v1906_v21, %v1750_v14 }
 0x3ce   : > { %1159 = vadd.xlane.f32.xlu0 %v1158_v22  ;;  %v1161_v26 = vsel %vm877_vm6, %v1153_v24, 0.0 }
 0x3cf   : > { %v1164_v25 = vsel %vm877_vm6, %v1154_v23, 0.0 }
 0x3d0   : > { %1165 = vadd.xlane.f32.xlu1 %v1164_v25 }
 0x3d2   : > { %1162 = vadd.xlane.f32.xlu0 %v1161_v26 }
 0x455   : > { %v1157_v28 = vpop.xlane.xlu1 %1156 }
 0x456   : > { %v1177_v34 = vrot.slane %v1157_v28, %v2385_v29 }
 0x457   : > { %v1160_v30 = vpop.xlane.xlu0 %1159 }
 0x458   : > { %v1181_v31 = vrot.slane %v1160_v30, %v2385_v29 }
 0x459   : > { %v1166_v32 = vpop.xlane.xlu1 %1165 }
 0x45a   : > { %v1191_v37 = vsel %vm1190_vm8, %v1181_v31, %v1177_v34  ;;  %v1189_v38 = vrot.slane %v1166_v32, %v2385_v29 }
 0x45b   : > { %v1163_v35 = vpop.xlane.xlu0 %1162 }
 0x45c   : > { %v1185_v36 = vrot.slane %v1163_v35, %v2385_v29 }
 0x45e   : > { %v1193_v40 = vsel %vm1192_vm9, %v1185_v36, %v1191_v37 }
 0x45f   : > { %v1195_v41 = vsel %vm1194_vm10, %v1189_v38, %v1193_v40 }
 0x460   : > { %v1197_v42 = vsel %vm1167_vm11, -1e+09, %v1195_v41 }
 0x461   : > { %v1199_v43 = vsel %vm1198_vm12, %v1197_v42, -inf }
 0x462   : > { %1200 = vmax.xlane.f32.xlu0 %v1199_v43 }
 0x4eb   : > { %v1201_v44 = vpop.xlane.xlu0 %1200 }
 0x4ec   : > { %v1202_v45 = vsub.f32 %v1197_v42, %v1201_v44 }
 0x4ee   : > { %v1203_v46 = vmul.f32 1.442695, %v1202_v45 }
 0x4f0   : > { %1907 = vpow2.f32 %v1203_v46  ;;  %v1751_v46 = vld [vmem:[%s2599_s17] ss:$0 sm:$0xff] }
 0x4fd   : > { %v1908_v47 = vpop.eup %1907 }
 0x4fe   : > { %v1205_v48 = vsel %vm1198_vm12, %v1908_v47, 0.0 }
 0x4ff   : > { %1206 = vadd.xlane.f32.xlu1 %v1205_v48 }
 0x588   : > { %v1207_v49 = vpop.xlane.xlu1 %1206 }
 0x589   : > { %1909 = vrcp.f32 %v1207_v49 }
 0x596   : > { %v1910_v51 = vpop.eup %1909 }
 0x597   : > { %v1209_v53 = vmul.f32 %v1910_v51, %v1908_v47 }
 0x599   : > { %v1220_v55 = vrot.slane %v1209_v53, %v1219_v50  ;;  %v1213_v56 = vrot.slane %v1209_v53, %v2342_v59  ;;  %v1227_v60 = vrot.slane %v1209_v53, %v1226_v57  ;;  %v1234_v61 = vrot.slane %v1209_v53, %v1233_v58 }
 0x59b   : > { %1222 = vbcast.lane.b32.xlu1 %v1220_v55, 256  ;;  %1215 = vbcast.lane.b32.xlu0 %v1213_v56, 256  ;;  %v1004_v56 = vld [vmem:[%s2590_s8] sm:$0xff] }
 0x59f   : > { %1229 = vbcast.lane.b32.xlu1 %v1227_v60, 256  ;;  %1236 = vbcast.lane.b32.xlu0 %v1234_v61, 256 }
 0x60d   : > { %v1223_v5 = vpop.permute.xlu1 %1222  ;;  %v1216_v6 = vpop.permute.xlu0 %1215 }
 0x60e   : > { %v1239_v8 = vmul.f32 %v1223_v5, %v2355_v2  ;;  %v1238_v10 = vmul.f32 %v1216_v6, %v2348_v62 }
 0x610   : > { %v1249_v11 = vsel %vm877_vm6, %v1239_v8, 0.0  ;;  %v1242_v12 = vsel %vm877_vm6, %v1238_v10, 0.0 }
 0x611   : > { %v1250_v13 = vrot.slane %v1249_v11, 4  ;;  %v1243_v14 = vrot.slane %v1242_v12, 4  ;;  %v1230_v15 = vpop.permute.xlu1 %1229  ;;  %v1237_v16 = vpop.permute.xlu0 %1236 }
 0x612   : > { %v1240_v17 = vmul.f32 %v1230_v15, %v2360_v3  ;;  %v1241_v18 = vmul.f32 %v1237_v16, %v2368_v9 }
 0x613   : > { %v1251_v19 = vadd.f32 %v1250_v13, %v1249_v11  ;;  %v1244_v20 = vadd.f32 %v1243_v14, %v1242_v12  ;;  %v1753_v14 = vld [vmem:[%s2600_s18] ss:$0 sm:$0xff] }
 0x614   : > { %v1256_v21 = vsel %vm877_vm6, %v1240_v17, 0.0  ;;  %v1263_v2 = vsel %vm877_vm6, %v1241_v18, 0.0 }
 0x615   : > { %v1252_v22 = vrot.slane %v1251_v19, 2  ;;  %v1245_v62 = vrot.slane %v1244_v20, 2  ;;  %v1257_v23 = vrot.slane %v1256_v21, 4  ;;  %v1264_v24 = vrot.slane %v1263_v2, 4 }
 0x617   : > { %v1253_v25 = vadd.f32 %v1252_v22, %v1251_v19  ;;  %v1246_v26 = vadd.f32 %v1245_v62, %v1244_v20  ;;  %v1258_v28 = vadd.f32 %v1257_v23, %v1256_v21  ;;  %v1265_v30 = vadd.f32 %v1264_v24, %v1263_v2 }
 0x619   : > { %v1254_v31 = vrot.slane %v1253_v25, 1  ;;  %v1247_v32 = vrot.slane %v1246_v26, 1  ;;  %v1259_v34 = vrot.slane %v1258_v28, 2  ;;  %v1266_v3 = vrot.slane %v1265_v30, 2 }
 0x61b   : > { %v1260_v35 = vadd.f32 %v1259_v34, %v1258_v28  ;;  %v1267_v9 = vadd.f32 %v1266_v3, %v1265_v30  ;;  %v1255_v36 = vadd.f32 %v1254_v31, %v1253_v25  ;;  %v1248_v37 = vadd.f32 %v1247_v32, %v1246_v26 }
 0x61d   : > { %v1261_v38 = vrot.slane %v1260_v35, 1  ;;  %v1268_v40 = vrot.slane %v1267_v9, 1  ;;  %v1286_v43 = vsel %vm1190_vm8, %v1255_v36, %v1248_v37 }
 0x61f   : > { %v1262_v41 = vadd.f32 %v1261_v38, %v1260_v35  ;;  %v1269_v42 = vadd.f32 %v1268_v40, %v1267_v9 }
 0x621   : > { %v1287_v44 = vsel %vm1192_vm9, %v1262_v41, %v1286_v43 }
 0x622   : > { %v1288_v45 = vsel %vm1194_vm10, %v1269_v42, %v1287_v44 }
 0x623   : > { %1829 = vmatmul.mubr.msk.f32.vlgmr.msra.gmra.mxu0 %vm877_vm6, %v1288_v45  ;;  %v1481_v45 = vld [vmem:[%s693_s29] sm:$0xf] }
 0x6e3   : > { %v1357_v47 = vpop.f32.mrf.mxu0 }
 0x6e4   : > { %v1358_v48 = vadd.f32 %v1751_v46, %v1357_v47 }
 0x6e5   : > { %v1830_v49 = vpop.f32.mrf.mxu0 }
 0x6e6   : > { %v1368_v51 = vrot.slane %v1358_v48, %v2338_v54 }
 0x6e8   : > { %v1369_v53 = vcombine.high %v1368_v51, %v1368_v51  ;;  %v1376_v55 = vrot.slane %v1368_v51, %v2338_v54 }
 0x6ea   : > { %v1383_v60 = vrot.slane %v1369_v53, %v2338_v54  ;;  %v1384_v61 = vcombine.high %v1376_v55, %v1376_v55  ;;  %v1389_v63 = vrot.slane %v1376_v55, %v2342_v59  ;;  %v1007_v54 = vld [vmem:[%s2590_s8 + $0x18] sm:$0xff]  ;;  %v1483_v53 = vcvt.s32.f32 %v2381_v27 }
 0x6ec   : > { %v1385_v4 = vcombine.high %v1383_v60, %v1383_v60  ;;  %v1393_v5 = vrot.slane %v1383_v60, %v2342_v59  ;;  %v1397_v6 = vrot.slane %v1384_v61, %v2342_v59  ;;  %v1406_v8 = vadd.f32 %v1389_v63, %v1004_v56 }
 0x6ee   : > { %v1401_v10 = vrot.slane %v1385_v4, %v2342_v59  ;;  %v1407_v11 = vadd.f32 %v1393_v5, %v1005_v0  ;;  %v1408_v12 = vadd.f32 %v1397_v6, %v1006_v1  ;;  %1911 = vtanh.f32 %v1406_v8 }
 0x6f0   : > { %v1409_v13 = vadd.f32 %v1401_v10, %v1007_v54  ;;  %1913 = vtanh.f32 %v1407_v11 }
 0x6f1   : > { %1915 = vtanh.f32 %v1408_v12 }
 0x6f2   : > { %1917 = vtanh.f32 %v1409_v13 }
 0x6fb   : > { %v1912_v15 = vpop.eup %1911 }
 0x6fc   : > { %v1420_v16 = vmul.f32 %v1912_v15, %v1753_v14 }
 0x6fd   : > { %v1914_v17 = vpop.eup %1913 }
 0x6fe   : > { %v1916_v18 = vpop.eup %1915  ;;  %v1424_v19 = vsel %vm877_vm6, %v1420_v16, 0.0  ;;  %v1421_v20 = vmul.f32 %v1914_v17, %v1753_v14 }
 0x6ff   : > { %v1918_v21 = vpop.eup %1917  ;;  %1425 = vadd.xlane.f32.xlu1 %v1424_v19  ;;  %v1422_v62 = vmul.f32 %v1916_v18, %v1753_v14 }
 0x700   : > { %v1427_v2 = vsel %vm877_vm6, %v1421_v20, 0.0  ;;  %v1423_v22 = vmul.f32 %v1918_v21, %v1753_v14 }
 0x701   : > { %1428 = vadd.xlane.f32.xlu0 %v1427_v2  ;;  %v1430_v24 = vsel %vm877_vm6, %v1422_v62, 0.0 }
 0x702   : > { %v1433_v23 = vsel %vm877_vm6, %v1423_v22, 0.0 }
 0x703   : > { %1434 = vadd.xlane.f32.xlu1 %v1433_v23 }
 0x705   : > { %1431 = vadd.xlane.f32.xlu0 %v1430_v24 }
 0x788   : > { %v1426_v25 = vpop.xlane.xlu1 %1425 }
 0x789   : > { %1919 = vtanh.f32 %v1426_v25 }
 0x78a   : > { %v1429_v26 = vpop.xlane.xlu0 %1428 }
 0x78b   : > { %1921 = vtanh.f32 %v1429_v26 }
 0x78c   : > { %v1435_v28 = vpop.xlane.xlu1 %1434 }
 0x78d   : > { %1923 = vtanh.f32 %v1435_v28 }
 0x78e   : > { %v1432_v30 = vpop.xlane.xlu0 %1431 }
 0x78f   : > { %1925 = vtanh.f32 %v1432_v30 }
 0x796   : > { %v1920_v31 = vpop.eup %1919 }
 0x797   : > { %v1440_v35 = vmul.f32 10.0, %v1920_v31 }
 0x798   : > { %v1922_v32 = vpop.eup %1921 }
 0x799   : > { %v1441_v34 = vmul.f32 10.0, %v1922_v32  ;;  %v1451_v40 = vrot.slane %v1440_v35, %v2385_v29 }
 0x79a   : > { %v1924_v3 = vpop.eup %1923 }
 0x79b   : > { %v1455_v36 = vrot.slane %v1441_v34, %v2385_v29  ;;  %v1443_v37 = vmul.f32 10.0, %v1924_v3 }
 0x79c   : > { %v1926_v9 = vpop.eup %1925 }
 0x79d   : > { %v1442_v38 = vmul.f32 10.0, %v1926_v9  ;;  %v1463_v42 = vrot.slane %v1443_v37, %v2385_v29  ;;  %v1464_v43 = vsel %vm1190_vm8, %v1455_v36, %v1451_v40 }
 0x79f   : > { %v1459_v41 = vrot.slane %v1442_v38, %v2385_v29 }
 0x7a1   : > { %v1465_v44 = vsel %vm1192_vm9, %v1459_v41, %v1464_v43 }
 0x7a2   : > { %v1466_v46 = vsel %vm1194_vm10, %v1463_v42, %v1465_v44 }
 0x7a3   : > { %v1468_v47 = vsel %vm1167_vm11, -1e+09, %v1466_v46 }
 0x7a4   : > { %v1469_v48 = vsel %vm1198_vm12, %v1468_v47, -inf  ;;  %v1482_v49 = vadd.f32 %v1481_v45, %v1468_v47 }
 0x7a5   : > { %1470 = vmax.xlane.f32.xlu1 %v1469_v48 }
 0x7a6   : > { %v1484_v29 = vsel %vm1198_vm12, %v1482_v49, -inf }
 0x7a7   : > { %1485 = vmax.xlane.f32.xlu0 %v1484_v29 }
 0x82e   : > { %v1471_v51 = vpop.xlane.xlu1 %1470 }
 0x82f   : > { %v1472_v55 = vsub.f32 %v1468_v47, %v1471_v51 }
 0x830   : > { %v1486_v56 = vpop.xlane.xlu0 %1485 }
 0x831   : > { %v1473_v60 = vmul.f32 1.442695, %v1472_v55  ;;  %vm1487_vm13 = vcmp.ge.f32.partialorder %v1482_v49, %v1486_v56 }
 0x832   : > { %v1488_v61 = vsel %vm1487_vm13, %v1483_v53, 8.0 }
 0x833   : > { %1927 = vpow2.f32 %v1473_v60  ;;  %v1489_v63 = vsel %vm1198_vm12, %v1488_v61, inf }
 0x834   : > { %1490 = vmin.xlane.f32.xlu0 %v1489_v63 }
 0x840   : > { %v1928_v0 = vpop.eup %1927 }
 0x841   : > { %v1475_v1 = vsel %vm1198_vm12, %v1928_v0, 0.0 }
 0x842   : > { %1476 = vadd.xlane.f32.xlu1 %v1475_v1 }
 0x8bd   : > { %v1491_v4 = vpop.xlane.xlu0 %1490 }
 0x8be   : > { %v1831_v5 = vtrunc.f32 %v1491_v4  ;;  %vm1495_vm14 = vcmp.eq.f32.partialorder %v1483_v53, %v1491_v4 }
 0x8bf   : > { %v1754_v27 = vsel %vm1495_vm14, 1.0, %v2046_v7 }
 0x8c0   : > { %v1832_v6 = vcvt.f32.s32 %v1831_v5  ;;  %v1498_v8 = vmax.f32 %v2388_v33, %v1754_v27  ;;  %v1507_v54 = vrot.slane %v1754_v27, %v2342_v59  ;;  %v1514_v10 = vrot.slane %v1754_v27, %v1219_v50 }
 0x8c1   : > { %v1528_v7 = vrot.slane %v1754_v27, %v1233_v58  ;;  %v1521_v33 = vrot.slane %v1754_v27, %v1226_v57 }
 0x8c2   : > { %1494 = vst.msk [vmem:[%s701_s26] sm:$0xf] %vm1493_vm15, %v1832_v6  ;;  %1509 = vbcast.lane.b32.xlu0 %v1507_v54, 256  ;;  %1516 = vbcast.lane.b32.xlu1 %v1514_v10, 256  ;;  %s1931_s26 = scalar_lea.vmem %s1609_s6, 64 }
 0x8c3   : > { %1499 = vst.msk [vmem:[#allocation4] sm:$0xf] %vm1198_vm12, %v1498_v8  ;;  %p1932_p12 = scmp.ne.s32.totalorder %s1609_s6, %s1931_s26  ;;  %p1939_p3 = scmp.lt.s32.totalorder %s1931_s26, %s1931_s26 }
 0x8c5   : > { %p1933_p13 = pnand %p1932_p12, %p2617_p2  ;;  %p1940_p4 = por %p1939_p3, %p1938_p1 }
 0x8c6   : > { %1530 = vbcast.lane.b32.xlu0 %v1528_v7, 256  ;;  %1523 = vbcast.lane.b32.xlu1 %v1521_v33, 256 }
 0x8c7   : > { %p1934_p0 = pneg %p1933_p13 }
 0x8c9   : > { %p1941_p7 = pnand %p1940_p4, %p1934_p0 }
 0x8ca   : > { %993 = vrot.lane.b32.xlu1 %v2311_v39, %s2052_s30 }
 0x8cb   : > { %v1477_v59 = vpop.xlane.xlu1 %1476 }
 0x8cc   : > { %1944 = shalt.err (!%p1941_p7)
}
 0x8cd   : > { %s2646_s24 = sld [smem:[#allocation30_spill]]  ;;  %1929 = vrcp.f32 %v1477_v59  ;;  %s1756_s19 = sshll.u32 %s2191_s4, 6 }
 0x8ce   : > { %s2647_s3 = sld [smem:[#allocation15_spill]]  ;;  %s2649_s22 = scalar_lea.vmem [#allocation7], %s2224_s2 }
 0x8cf   : > { %s1594_s25 = sshll.u32 %s2649_s22, 4  ;;  %s2650_s29 = sld [smem:[#allocation29_spill]]  ;;  %s1595_s25 = int_to_ptr.vmem [resolvable:$true] %s1594_s25 }
 0x8d0   : > { %s2652_s30 = smov %s2649_s22  ;;  %s1955_s5 = scalar_lea.vmem %s1595_s25, 64 }
 0x8d1   : > { %p1956_p8 = scmp.ne.s32.totalorder %s1595_s25, %s1955_s5 }
 0x8d3   : > { %1835 = dma.vmem_to_hbm [thread:$0]  (%p2617_p2), %s1609_s6, 64, %s2646_s24, [#allocation10]  }
 0x8d4   : > { %s2653_s26 = sand.u32 1, %s2647_s3   ;;  %p1957_p9 = pnand %p1956_p8, %p2210_p5 }
 0x8d5   : > { %s2651_s27 = smov %s2650_s29  ;;  %s1592_s1 = scalar_lea.hbm %s2650_s29, %s1756_s19 }
 0x8d6   : > { %s1577_s0 = scalar_lea.sflag [#allocation8], %s2653_s26  ;;  %p1958_p10 = pneg %p1957_p9 }
 0x8d7   : > { %s2053_s6 = smov [#allocation7]  }
 0x8d8   : > { %s1959_s24 = sshll.u32 %s2053_s6, 4  ;;  %s1960_s24 = int_to_ptr.vmem [resolvable:$false] %s1959_s24 }
 0x8d9   : > { %s1961_s22 = scalar_lea.vmem %s1960_s24, 128  ;;  %p1962_p11 = scmp.lt.s32.totalorder %s1595_s25, %s1960_s24 }
 0x8da   : > { %v1930_v39 = vpop.eup %1929  ;;  %p1963_p12 = scmp.lt.s32.totalorder %s1961_s22, %s1955_s5 }
 0x8db   : > { %v1479_v52 = vmul.f32 %v1930_v39, %v1928_v0 }
 0x8dc   : > { %p1964_p13 = por %p1963_p12, %p1962_p11 }
 0x8dd   : > { %1480 = vst.msk [vmem:[%s2652_s30] sm:$0xf] %vm1198_vm12, %v1479_v52 }
 0x8de   : > { %p1965_p0 = pnand %p1964_p13, %p1958_p10 }
 0x8e0   : > { %1968 = shalt.err (!%p1965_p0)
}
 0x8e1   : > { %s1969_s19 = scalar_lea.hbm %s1592_s1, 64  ;;  %s1973_s21 = scalar_lea.hbm %s2651_s27, 512 }
 0x8e2   : > { %p1970_p1 = scmp.ne.s32.totalorder %s1592_s1, %s1969_s19  ;;  %p1974_p7 = scmp.lt.s32.totalorder %s1592_s1, %s2651_s27 }
 0x8e3   : > { %p1975_p8 = scmp.lt.s32.totalorder %s1973_s21, %s1969_s19 }
 0x8e4   : > { %p1971_p3 = pnand %p1970_p1, %p2210_p5 }
 0x8e5   : > { %p1976_p9 = por %p1975_p8, %p1974_p7 }
 0x8e6   : > { %p1972_p4 = pneg %p1971_p3 }
 0x8e8   : > { %p1977_p2 = pnand %p1976_p9, %p1972_p4 }
 0x8ea   : > { %1980 = shalt.err (!%p1977_p2)
}
 0x8eb   : > { %1833 = dma.vmem_to_hbm [thread:$0]  (%p2210_p5), %s1595_s25, 64, %s1592_s1, %s1577_s0  }
 0x8ec   : > { %s2654_s5 = sld [smem:[#allocation24_spill]]  ;;  %s2054_s23 = smov [#allocation11]  }
 0x8ed   : > { %s1619_s25 = sshll.u32 %s2054_s23, 4  ;;  %p2655_p5 = scmp.eq.s32.totalorder %s2191_s4, 7  ;;  %s1620_s25 = int_to_ptr.vmem [resolvable:$true] %s1619_s25 }
 0x8ee   : > { %s1981_s1 = scalar_lea.vmem %s1620_s25, 64  ;;  %p1988_p12 = scmp.lt.s32.totalorder %s1620_s25, %s1620_s25 }
 0x8ef   : > { %p1982_p2 = scmp.ne.s32.totalorder %s1620_s25, %s1981_s1  ;;  %p1989_p13 = scmp.lt.s32.totalorder %s1981_s1, %s1981_s1 }
 0x8f1   : > { %p1983_p10 = pnand %p1982_p2, %p2655_p5  ;;  %p1990_p0 = por %p1989_p13, %p1988_p12 }
 0x8f2   : > { %v1500_v50 = vld [vmem:[%s2654_s5] sm:$0xff]  ;;  %v1501_v57 = vld [vmem:[%s2654_s5 + $0x8] sm:$0xff]  ;;  %v1503_v14 = vld [vmem:[%s2654_s5 + $0x18] sm:$0xff] }
 0x8f3   : > { %v1502_v15 = vld [vmem:[%s2654_s5 + $0x10] sm:$0xff]  ;;  %p1984_p11 = pneg %p1983_p10 }
 0x8f5   : > { %p1991_p1 = pnand %p1990_p0, %p1984_p11 }
 0x934   : > { %v1510_v58 = vpop.permute.xlu0 %1509  ;;  %v1517_v11 = vpop.permute.xlu1 %1516 }
 0x935   : > { %v1532_v12 = vmul.f32 %v1510_v58, %v1500_v50  ;;  %v1533_v13 = vmul.f32 %v1517_v11, %v1501_v57 }
 0x937   : > { %v1536_v16 = vsel %vm726_vm4, %v1532_v12, 0.0  ;;  %v1543_v17 = vsel %vm726_vm4, %v1533_v13, 0.0 }
 0x938   : > { %v1537_v18 = vrot.slane %v1536_v16, 4  ;;  %v1544_v19 = vrot.slane %v1543_v17, 4  ;;  %v1531_v20 = vpop.permute.xlu0 %1530  ;;  %v1524_v21 = vpop.permute.xlu1 %1523 }
 0x939   : > { %v1535_v2 = vmul.f32 %v1531_v20, %v1503_v14  ;;  %v1534_v22 = vmul.f32 %v1524_v21, %v1502_v15 }
 0x93a   : > { %v1538_v62 = vadd.f32 %v1537_v18, %v1536_v16  ;;  %v1545_v23 = vadd.f32 %v1544_v19, %v1543_v17 }
 0x93b   : > { %v1557_v24 = vsel %vm726_vm4, %v1535_v2, 0.0  ;;  %v1550_v25 = vsel %vm726_vm4, %v1534_v22, 0.0 }
 0x93c   : > { %v1539_v26 = vrot.slane %v1538_v62, 2  ;;  %v1546_v28 = vrot.slane %v1545_v23, 2  ;;  %v1558_v30 = vrot.slane %v1557_v24, 4  ;;  %v1551_v31 = vrot.slane %v1550_v25, 4  ;;  %v994_v32 = vpop.permute.xlu1 %993 }
 0x93d   : > { %996 = vst.msk [vmem:[#allocation3] sm:$0xf] %vm990_vm7, %v994_v32  ;;  %998 = vst.msk [vmem:[#allocation11] sm:$0xf] %vm990_vm7, %v994_v32 }
 0x93e   : > { %v1540_v34 = vadd.f32 %v1539_v26, %v1538_v62  ;;  %v1547_v3 = vadd.f32 %v1546_v28, %v1545_v23  ;;  %v1559_v35 = vadd.f32 %v1558_v30, %v1557_v24  ;;  %v1552_v9 = vadd.f32 %v1551_v31, %v1550_v25 }
 0x93f   : > { %1994 = shalt.err (!%p1991_p1)
}
 0x940   : > { %p2656_p3 = pmov %p2655_p5  ;;  %s2657_s28 = sld [smem:[#allocation31_spill]]  ;;  %v1541_v36 = vrot.slane %v1540_v34, 1  ;;  %v1548_v37 = vrot.slane %v1547_v3, 1  ;;  %v1560_v38 = vrot.slane %v1559_v35, 2  ;;  %v1553_v40 = vrot.slane %v1552_v9, 2 }
 0x942   : > { %v1561_v41 = vadd.f32 %v1560_v38, %v1559_v35  ;;  %v1554_v42 = vadd.f32 %v1553_v40, %v1552_v9  ;;  %v1542_v43 = vadd.f32 %v1541_v36, %v1540_v34  ;;  %v1549_v44 = vadd.f32 %v1548_v37, %v1547_v3  ;;  %p2658_p4 = pmov %p2656_p3 }
 0x944   : > { %v1562_v45 = vrot.slane %v1561_v41, 1  ;;  %v1555_v46 = vrot.slane %v1554_v42, 1  ;;  %v1571_v49 = vsel %vm1190_vm8, %v1549_v44, %v1542_v43 }
 0x946   : > { %1837 = dma.vmem_to_hbm [thread:$0]  (%p2656_p3), %s1620_s25, 64, %s2657_s28, [#allocation10]   ;;  %v1563_v47 = vadd.f32 %v1562_v45, %v1561_v41  ;;  %v1556_v48 = vadd.f32 %v1555_v46, %v1554_v42 }
 0x948   : > { %v1572_v29 = vsel %vm1192_vm9, %v1556_v48, %v1571_v49 }
 0x949   : > { %v1573_v51 = vsel %vm1194_vm10, %v1563_v47, %v1572_v29 }
 0x94a   : > { %1575 = vst.msk [vmem:[#allocation6] sm:$0xf] %vm1565_vm3, %v1573_v51 }
 0x94b   : > { %2022 = dma.done.wait (%p2658_p4), [#allocation10], 128   ;;  %p2659_p7 = pmov %p2656_p3 }
 0x94d   : > { %2024 = vsyncadd (%p2659_p7), [#allocation10], 4294967168 }
 0x94e PF: > { %s2660_s29 = sld [smem:[#allocation17_spill]] }
 0x94f   : > { %s2661_s30 = sld [smem:[#allocation14_spill]] }
 0x954   : > { %p1851_p8 = scmp.ge.s32.totalorder %s2660_s29, 2 }
 0x955   : > { %s1639_s6 = sand.u32 1, %s2661_s30  }
 0x956   : > { %p1844_p9 = pnand %p1851_p8, %p2214_p6  ;;  %s1640_s24 = scalar_lea.sflag [#allocation8], %s1639_s6 }
 0x958   : > { %p1845_p2 = pneg %p1844_p9 }
 0x95a   : > { %2026 = dma.done.wait (%p1845_p2), %s1640_s24, 64  }
 0x95b   : > { %2028 = vsyncadd (%p1845_p2), %s1640_s24, 4294967232  ;;  %s2663_s30 = sld [smem:[#allocation18_spill]] }
 0x95c   : > { %s2664_s3 = sld [smem:[#allocation15_spill]] }
 0x95d   : > { %s2665_s28 = sld [smem:[#allocation16_spill]] }
 0x95e   : > { %s2666_s29 = sld [smem:[#allocation19_spill]] }
 0x961   : > { %p34_p5 = scmp.ge.s32.totalorder %s2663_s30, 10  }
 0x963   :  { %36 = sbr.rel (!%p34_p5) target bundleno = 15 (0xf), region = 166 }
 0x968   :  { %1652 = vsyncpa [#allocation8], 1 }
 0x969   :  { %1654 = vsyncpa [#allocation8 + $0x1], 1 }
 0x96a   :  { %1655 = vsyncpa [#allocation10], 1 }

// kernel: matching_pointer_network_forward.2
= control target key start
LH: loop header
LB: loop body
LE: loop exit
PB: predicated region body
PF: predicated region fallthrough
CT: control target
= control target key end

     0   :  { %v2450_v0 = vmov 0.0   ;;  %vm2451_vm0 = vmmov 0   ;;  %vm46_vm1 = vcmask 261120   ;;  %vm120_vm2 = vcmask 64512   ;;  %s2452_s26 = smov 64   ;;  %s2453_s29 = smov 32   ;;  %s2902_s2 = inlined_call_operand.vmem [shape: f32[32,128], index: 2, kind: input, shape index: {}]   ;;  %s2903_s4 = inlined_call_operand.vmem [shape: f32[4,32], index: 4, kind: input, shape index: {}]   ;;  %s2904_s1 = inlined_call_operand.vmem [shape: f32[8,128], index: 1, kind: input, shape index: {}]   ;;  %s2905_s0 = inlined_call_operand.vmem [shape: f32[8,4,8], index: 0, kind: input, shape index: {}]   ;;  %s2906_s3 = inlined_call_operand.vmem [shape: f32[1,128], index: 3, kind: input, shape index: {}]   ;;  %s2907_s5 = inlined_call_operand.vmem [shape: f32[4,32], index: 5, kind: input, shape index: {}]   ;;  %s2908_s6 = inlined_call_operand.vmem [shape: f32[32,64], index: 6, kind: input, shape index: {}]   ;;  %s2909_s7 = inlined_call_operand.vmem [shape: f32[1,64], index: 7, kind: input, shape index: {}]   ;;  %s2910_s8 = inlined_call_operand.vmem [shape: f32[8,4,64], index: 8, kind: output, shape index: {0}]   ;;  %s2911_s10 = inlined_call_operand.vmem [shape: f32[4,32], index: 10, kind: output, shape index: {2}]   ;;  %s2912_s9 = inlined_call_operand.vmem [shape: f32[4,32], index: 9, kind: output, shape index: {1}]  }
   0x1   :  { %2181 = vmatprep.subr.mxu0 %v2450_v0  ;;  %v2514_v1 = vld [vmem:[%s2902_s2 + $0x18] sm:$0xff]  ;;  %v2519_v2 = vld [vmem:[%s2902_s2 + $0x10] sm:$0xff]  ;;  %2189 = vmatprep.mubr.msk.f32.mxu0 %vm2451_vm0, %v2450_v0  ;;  %v2529_v3 = vld [vmem:[%s2902_s2 + $0x8] sm:$0xff]  ;;  %vm308_vm3 = vcmask 519168   ;;  %s2454_s19 = smov 96   ;;  %vm2026_vm4 = vcmask 257024  }
   0x2   :  { %2182 = vmatpush3.msra.mxu0 %v2514_v1  ;;  %2197 = vmatprep.subr.mxu1 %v2450_v0  ;;  %v2538_v4 = vld [vmem:[%s2902_s2] sm:$0xff]  ;;  %v2589_v27 = vld [vmem:[%s2908_s6 + $0x18] sm:$0xff]  ;;  %v2594_v28 = vld [vmem:[%s2908_s6 + $0x10] sm:$0xff] }
   0x3   :  { %2183 = vmatprep.subr.mxu0 %v2450_v0  ;;  %2205 = vmatprep.mubr.msk.f32.mxu1 %vm2451_vm0, %v2450_v0  ;;  %v32_v5 = vld [vmem:[%s2903_s4] sm:$0xf]  ;;  %v2601_v29 = vld [vmem:[%s2908_s6 + $0x8] sm:$0xff]  ;;  %v2050_v35 = vld [vmem:[%s2905_s0 + $0x4] sm:$0xf] }
   0x4   :  { %2184 = vmatpush3.msra.mxu0 %v2519_v2  ;;  %v2548_v6 = vld [vmem:[%s2904_s1] sm:$0xff]  ;;  %2198 = vmatpush3.msra.mxu1 %v2589_v27  ;;  %v2055_v60 = vld [vmem:[%s2905_s0 + $0x8] sm:$0xf] }
   0x5   :  { %2185 = vmatprep.subr.mxu0 %v2450_v0  ;;  %v45_v7 = vld [vmem:[%s2905_s0] sm:$0xf]  ;;  %2199 = vmatprep.subr.mxu1 %v2450_v0 }
   0x6   :  { %2186 = vmatpush3.msra.mxu0 %v2529_v3  ;;  %v2574_v10 = vld [vmem:[%s2906_s3] ss:$0 sm:$0xff]  ;;  %2200 = vmatpush3.msra.mxu1 %v2594_v28 }
   0x7   :  { %2187 = vmatprep.subr.mxu0 %v2450_v0  ;;  %v33_v16 = vld [vmem:[%s2907_s5] sm:$0xf]  ;;  %2201 = vmatprep.subr.mxu1 %v2450_v0 }
   0x8   :  { %2188 = vmatpush3.msra.mxu0 %v2538_v4  ;;  %v2608_v30 = vld [vmem:[%s2908_s6] sm:$0xff]  ;;  %2202 = vmatpush3.msra.mxu1 %v2601_v29 }
   0x9   :  { %2190 = vmatmul.mubr.msk.f32.vlgmr.msra.gmra.mxu0 %vm46_vm1, %v32_v5  ;;  %2192 = vmatprep.subr.mxu0 %v2450_v0  ;;  %v2649_v36 = vld [vmem:[%s2909_s7] ss:$0 sm:$0xff] }
   0xa   :  { %2193 = vmatpush3.msra.mxu0 %v2548_v6  ;;  %2194 = vmatprep.mubr.msk.f32.mxu0 %vm2451_vm0, %v2450_v0 }
   0xb   :  { %2208 = vmatprep.subr.mxu0 %v2450_v0  ;;  %2203 = vmatprep.subr.mxu1 %v2450_v0 }
   0xc   :  { %2204 = vmatpush3.msra.mxu1 %v2608_v30 }
   0xd   :  { %2195 = vmatmul.mubr.msk.f32.vlgmr.msra.gmra.mxu0 %vm120_vm2, %v45_v7  ;;  %2219 = vmatprep.subr.mxu1 %v2450_v0 }
   0xe   :  { %2209 = vmatpush3.msra.mxu0 %v2514_v1  ;;  %2216 = vmatprep.mubr.msk.f32.mxu0 %vm2451_vm0, %v2450_v0 }
   0xf   :  { %2210 = vmatprep.subr.mxu0 %v2450_v0 }
  0x10   :  { %2211 = vmatpush3.msra.mxu0 %v2519_v2 }
  0x11   :  { %2212 = vmatprep.subr.mxu0 %v2450_v0 }
  0x12   :  { %2213 = vmatpush3.msra.mxu0 %v2529_v3 }
  0x13   :  { %2214 = vmatprep.subr.mxu0 %v2450_v0 }
  0x14   :  { %2215 = vmatpush3.msra.mxu0 %v2538_v4 }
  0x15   :  { %2235 = vmatprep.subr.mxu0 %v2450_v0 }
  0xc9   :  { %v116_v8 = vpop.f32.mrf.mxu0 }
  0xcb   :  { %v2191_v9 = vpop.f32.mrf.mxu0 }
  0xcd   :  { %v190_v11 = vpop.f32.mrf.mxu0 }
  0xce   :  { %v191_v12 = vadd.f32 %v190_v11, %v116_v8 }
  0xcf   :  { %v2196_v13 = vpop.f32.mrf.mxu0 }
  0xd0   :  { %v200_v14 = vadd.f32 %v2574_v10, %v191_v12 }
  0xd2   :  { %2402 = vtanh.f32 %v200_v14  ;;  %v201_v17 = vmul.f32 0.5, %v200_v14 }
  0xd4   :  { %2404 = vtanh.f32 %v201_v17 }
  0xdf   :  { %v2403_v15 = vpop.eup %2402 }
  0xe0   :  { %212 = vrot.lane.b32.xlu0 %v2403_v15, %s2452_s26 }
  0xe1   :  { %v2405_v18 = vpop.eup %2404 }
  0xe2   :  { %v203_v19 = vadd.f32 1.0, %v2405_v18 }
  0xe4   :  { %207 = vrot.lane.b32.xlu0 %v33_v16, %s2453_s29  ;;  %v204_v20 = vmul.f32 0.5, %v203_v19 }
 0x152   :  { %v213_v21 = vpop.permute.xlu0 %212 }
 0x153   :  { %v215_v22 = vmul.f32 %v213_v21, %v204_v20 }
 0x155   :  { %217 = vrot.lane.b32.xlu1 %v215_v22, %s2453_s29 }
 0x156   :  { %v208_v23 = vpop.permute.xlu0 %207 }
 0x157   :  { %v210_v24 = vmul.f32 %v208_v23, %v204_v20 }
 0x1c7   :  { %v218_v25 = vpop.permute.xlu1 %217 }
 0x1c8   :  { %v2583_v26 = vadd.f32 %v218_v25, %v210_v24 }
 0x1ca   :  { %2406 = vtanh.f32 %v2583_v26 }
 0x1d7   :  { %v2407_v31 = vpop.eup %2406 }
 0x1d8   :  { %223 = vrot.lane.b32.xlu1 %v2407_v31, %s2452_s26  ;;  %v2060_v31 = vld [vmem:[%s2905_s0 + $0xc] sm:$0xf] }
 0x24a   :  { %v224_v32 = vpop.permute.xlu1 %223 }
 0x24b   :  { %v226_v33 = vmul.f32 %v224_v32, %v204_v20 }
 0x24d   :  { %234 = vrot.lane.b32.xlu0 %v226_v33, %s2453_s29 }
 0x2bf   :  { %v235_v34 = vpop.permute.xlu0 %234 }
 0x2c0   :  { %2206 = vmatmul.mubr.msk.f32.vlgmr.msra.gmra.mxu1 %vm46_vm1, %v235_v34  ;;  %2217 = vmatmul.mubr.msk.f32.vlgmr.msra.gmra.mxu0 %vm46_vm1, %v235_v34 }
 0x2c1   :  { %2220 = vmatpush3.msra.mxu1 %v2548_v6  ;;  %2221 = vmatprep.mubr.msk.f32.mxu1 %vm2451_vm0, %v2450_v0 }
 0x2c2   :  { %2224 = vmatprep.subr.mxu1 %v2450_v0  ;;  %2236 = vmatpush3.msra.mxu0 %v2514_v1 }
 0x2c3   :  { %2237 = vmatprep.subr.mxu0 %v2450_v0  ;;  %2243 = vmatprep.mubr.msk.f32.mxu0 %vm2451_vm0, %v2450_v0 }
 0x2c4   :  { %2222 = vmatmul.mubr.msk.f32.vlgmr.msra.gmra.mxu1 %vm120_vm2, %v2050_v35  ;;  %2238 = vmatpush3.msra.mxu0 %v2519_v2 }
 0x2c5   :  { %2225 = vmatpush3.msra.mxu1 %v2589_v27  ;;  %2239 = vmatprep.subr.mxu0 %v2450_v0 }
 0x2c6   :  { %2226 = vmatprep.subr.mxu1 %v2450_v0  ;;  %2240 = vmatpush3.msra.mxu0 %v2529_v3 }
 0x2c7   :  { %2227 = vmatpush3.msra.mxu1 %v2594_v28  ;;  %2241 = vmatprep.subr.mxu0 %v2450_v0 }
 0x2c8   :  { %2228 = vmatprep.subr.mxu1 %v2450_v0  ;;  %2232 = vmatprep.mubr.msk.f32.mxu1 %vm2451_vm0, %v2450_v0 }
 0x2c9   :  { %2229 = vmatpush3.msra.mxu1 %v2601_v29  ;;  %2242 = vmatpush3.msra.mxu0 %v2538_v4 }
 0x2ca   :  { %2230 = vmatprep.subr.mxu1 %v2450_v0  ;;  %2251 = vmatprep.subr.mxu0 %v2450_v0 }
 0x2cb   :  { %2231 = vmatpush3.msra.mxu1 %v2608_v30 }
 0x2cc   :  { %2246 = vmatprep.subr.mxu1 %v2450_v0 }
 0x380   :  { %v304_v37 = vpop.f32.mrf.mxu1  ;;  %v378_v38 = vpop.f32.mrf.mxu0 }
 0x381   :  { %v305_v39 = vadd.f32 %v2649_v36, %v304_v37 }
 0x382   :  { %v2207_v40 = vpop.f32.mrf.mxu1  ;;  %v2218_v41 = vpop.f32.mrf.mxu0 }
 0x383   :  { %309 = vst.msk [vmem:[%s2910_s8] sm:$0xf] %vm308_vm3, %v305_v39 }
 0x384   :  { %v451_v42 = vpop.f32.mrf.mxu1 }
 0x385   :  { %v452_v43 = vadd.f32 %v451_v42, %v378_v38 }
 0x386   :  { %v2223_v44 = vpop.f32.mrf.mxu1 }
 0x387   :  { %v455_v45 = vadd.f32 %v2574_v10, %v452_v43 }
 0x389   :  { %2408 = vtanh.f32 %v455_v45  ;;  %v456_v47 = vmul.f32 0.5, %v455_v45 }
 0x38b   :  { %2410 = vtanh.f32 %v456_v47 }
 0x396   :  { %v2409_v46 = vpop.eup %2408 }
 0x397   :  { %463 = vrot.lane.b32.xlu1 %v2409_v46, %s2452_s26 }
 0x398   :  { %v2411_v48 = vpop.eup %2410 }
 0x399   :  { %v458_v49 = vadd.f32 1.0, %v2411_v48 }
 0x39b   :  { %v459_v50 = vmul.f32 0.5, %v458_v49 }
 0x39d   :  { %v461_v53 = vmul.f32 %v459_v50, %v2583_v26 }
 0x409   :  { %v464_v51 = vpop.permute.xlu1 %463 }
 0x40a   :  { %v466_v52 = vmul.f32 %v464_v51, %v459_v50 }
 0x40c   :  { %468 = vrot.lane.b32.xlu0 %v466_v52, %s2453_s29 }
 0x47e   :  { %v469_v54 = vpop.permute.xlu0 %468 }
 0x47f   :  { %v471_v55 = vadd.f32 %v469_v54, %v461_v53 }
 0x481   :  { %2412 = vtanh.f32 %v471_v55 }
 0x48e   :  { %v2413_v56 = vpop.eup %2412 }
 0x48f   :  { %474 = vrot.lane.b32.xlu1 %v2413_v56, %s2452_s26  ;;  %v2065_v56 = vld [vmem:[%s2905_s0 + $0x10] sm:$0xf] }
 0x501   :  { %v475_v57 = vpop.permute.xlu1 %474 }
 0x502   :  { %v477_v58 = vmul.f32 %v475_v57, %v459_v50 }
 0x504   :  { %479 = vrot.lane.b32.xlu0 %v477_v58, %s2453_s29 }
 0x576   :  { %v480_v59 = vpop.permute.xlu0 %479 }
 0x577   :  { %2233 = vmatmul.mubr.msk.f32.vlgmr.msra.gmra.mxu1 %vm46_vm1, %v480_v59  ;;  %2244 = vmatmul.mubr.msk.f32.vlgmr.msra.gmra.mxu0 %vm46_vm1, %v480_v59 }
 0x578   :  { %2247 = vmatpush3.msra.mxu1 %v2548_v6  ;;  %2248 = vmatprep.mubr.msk.f32.mxu1 %vm2451_vm0, %v2450_v0 }
 0x579   :  { %2262 = vmatprep.subr.mxu1 %v2450_v0  ;;  %2252 = vmatpush3.msra.mxu0 %v2589_v27 }
 0x57a   :  { %2253 = vmatprep.subr.mxu0 %v2450_v0  ;;  %2259 = vmatprep.mubr.msk.f32.mxu0 %vm2451_vm0, %v2450_v0 }
 0x57b   :  { %2249 = vmatmul.mubr.msk.f32.vlgmr.msra.gmra.mxu1 %vm120_vm2, %v2055_v60  ;;  %2254 = vmatpush3.msra.mxu0 %v2594_v28 }
 0x57c   :  { %2263 = vmatpush3.msra.mxu1 %v2514_v1  ;;  %2255 = vmatprep.subr.mxu0 %v2450_v0 }
 0x57d   :  { %2264 = vmatprep.subr.mxu1 %v2450_v0  ;;  %2256 = vmatpush3.msra.mxu0 %v2601_v29 }
 0x57e   :  { %2265 = vmatpush3.msra.mxu1 %v2519_v2  ;;  %2257 = vmatprep.subr.mxu0 %v2450_v0 }
 0x57f   :  { %2266 = vmatprep.subr.mxu1 %v2450_v0  ;;  %2258 = vmatpush3.msra.mxu0 %v2608_v30 }
 0x580   :  { %2267 = vmatpush3.msra.mxu1 %v2529_v3  ;;  %2270 = vmatprep.mubr.msk.f32.mxu1 %vm2451_vm0, %v2450_v0 }
 0x581   :  { %2268 = vmatprep.subr.mxu1 %v2450_v0  ;;  %2273 = vmatprep.subr.mxu0 %v2450_v0 }
 0x582   :  { %2269 = vmatpush3.msra.mxu1 %v2538_v4 }
 0x583   :  { %2278 = vmatprep.subr.mxu1 %v2450_v0 }
 0x637   :  { %v549_v61 = vpop.f32.mrf.mxu1  ;;  %v623_v62 = vpop.f32.mrf.mxu0 }
 0x638   :  { %v550_v63 = vadd.f32 %v2649_v36, %v549_v61 }
 0x639   :  { %v2234_v5 = vpop.f32.mrf.mxu1  ;;  %v2245_v7 = vpop.f32.mrf.mxu0 }
 0x63a   :  { %2054 = vst.msk [vmem:[%s2910_s8 + $0x4] sm:$0xf] %vm308_vm3, %v550_v63 }
 0x63b   :  { %v696_v8 = vpop.f32.mrf.mxu1 }
 0x63c   :  { %v697_v9 = vadd.f32 %v696_v8, %v623_v62 }
 0x63d   :  { %v2250_v11 = vpop.f32.mrf.mxu1 }
 0x63e   :  { %v700_v12 = vadd.f32 %v2574_v10, %v697_v9 }
 0x640   :  { %2414 = vtanh.f32 %v700_v12  ;;  %v701_v14 = vmul.f32 0.5, %v700_v12 }
 0x642   :  { %2416 = vtanh.f32 %v701_v14 }
 0x64d   :  { %v2415_v13 = vpop.eup %2414 }
 0x64e   :  { %708 = vrot.lane.b32.xlu1 %v2415_v13, %s2452_s26 }
 0x64f   :  { %v2417_v15 = vpop.eup %2416 }
 0x650   :  { %v703_v16 = vadd.f32 1.0, %v2417_v15 }
 0x652   :  { %v704_v17 = vmul.f32 0.5, %v703_v16 }
 0x654   :  { %v706_v20 = vmul.f32 %v704_v17, %v471_v55 }
 0x6c0   :  { %v709_v18 = vpop.permute.xlu1 %708 }
 0x6c1   :  { %v711_v19 = vmul.f32 %v709_v18, %v704_v17 }
 0x6c3   :  { %713 = vrot.lane.b32.xlu0 %v711_v19, %s2453_s29 }
 0x735   :  { %v714_v21 = vpop.permute.xlu0 %713 }
 0x736   :  { %v716_v22 = vadd.f32 %v714_v21, %v706_v20 }
 0x738   :  { %2418 = vtanh.f32 %v716_v22 }
 0x745   :  { %v2419_v23 = vpop.eup %2418 }
 0x746   :  { %719 = vrot.lane.b32.xlu1 %v2419_v23, %s2452_s26  ;;  %v2070_v23 = vld [vmem:[%s2905_s0 + $0x14] sm:$0xf] }
 0x7b8   :  { %v720_v24 = vpop.permute.xlu1 %719 }
 0x7b9   :  { %v722_v25 = vmul.f32 %v720_v24, %v704_v17 }
 0x7bb   :  { %724 = vrot.lane.b32.xlu0 %v722_v25, %s2453_s29 }
 0x82d   :  { %v725_v26 = vpop.permute.xlu0 %724 }
 0x82e   :  { %2260 = vmatmul.mubr.msk.f32.vlgmr.msra.gmra.mxu0 %vm46_vm1, %v725_v26  ;;  %2271 = vmatmul.mubr.msk.f32.vlgmr.msra.gmra.mxu1 %vm46_vm1, %v725_v26 }
 0x82f   :  { %2274 = vmatpush3.msra.mxu0 %v2548_v6  ;;  %2275 = vmatprep.mubr.msk.f32.mxu0 %vm2451_vm0, %v2450_v0 }
 0x830   :  { %2289 = vmatprep.subr.mxu0 %v2450_v0  ;;  %2279 = vmatpush3.msra.mxu1 %v2589_v27 }
 0x831   :  { %2280 = vmatprep.subr.mxu1 %v2450_v0  ;;  %2286 = vmatprep.mubr.msk.f32.mxu1 %vm2451_vm0, %v2450_v0 }
 0x832   :  { %2276 = vmatmul.mubr.msk.f32.vlgmr.msra.gmra.mxu0 %vm120_vm2, %v2060_v31  ;;  %2281 = vmatpush3.msra.mxu1 %v2594_v28 }
 0x833   :  { %2290 = vmatpush3.msra.mxu0 %v2514_v1  ;;  %2282 = vmatprep.subr.mxu1 %v2450_v0 }
 0x834   :  { %2291 = vmatprep.subr.mxu0 %v2450_v0  ;;  %2283 = vmatpush3.msra.mxu1 %v2601_v29 }
 0x835   :  { %2292 = vmatpush3.msra.mxu0 %v2519_v2  ;;  %2284 = vmatprep.subr.mxu1 %v2450_v0 }
 0x836   :  { %2293 = vmatprep.subr.mxu0 %v2450_v0  ;;  %2285 = vmatpush3.msra.mxu1 %v2608_v30 }
 0x837   :  { %2294 = vmatpush3.msra.mxu0 %v2529_v3  ;;  %2297 = vmatprep.mubr.msk.f32.mxu0 %vm2451_vm0, %v2450_v0 }
 0x838   :  { %2295 = vmatprep.subr.mxu0 %v2450_v0  ;;  %2300 = vmatprep.subr.mxu1 %v2450_v0 }
 0x839   :  { %2296 = vmatpush3.msra.mxu0 %v2538_v4 }
 0x83a   :  { %2305 = vmatprep.subr.mxu0 %v2450_v0 }
 0x8ee   :  { %v794_v32 = vpop.f32.mrf.mxu0  ;;  %v868_v33 = vpop.f32.mrf.mxu1 }
 0x8ef   :  { %v795_v34 = vadd.f32 %v2649_v36, %v794_v32 }
 0x8f0   :  { %v2261_v35 = vpop.f32.mrf.mxu0  ;;  %v2272_v37 = vpop.f32.mrf.mxu1 }
 0x8f1   :  { %2059 = vst.msk [vmem:[%s2910_s8 + $0x8] sm:$0xf] %vm308_vm3, %v795_v34 }
 0x8f2   :  { %v941_v38 = vpop.f32.mrf.mxu0 }
 0x8f3   :  { %v942_v39 = vadd.f32 %v941_v38, %v868_v33 }
 0x8f4   :  { %v2277_v40 = vpop.f32.mrf.mxu0 }
 0x8f5   :  { %v945_v41 = vadd.f32 %v2574_v10, %v942_v39 }
 0x8f7   :  { %2420 = vtanh.f32 %v945_v41  ;;  %v946_v43 = vmul.f32 0.5, %v945_v41 }
 0x8f9   :  { %2422 = vtanh.f32 %v946_v43 }
 0x904   :  { %v2421_v42 = vpop.eup %2420 }
 0x905   :  { %953 = vrot.lane.b32.xlu1 %v2421_v42, %s2452_s26 }
 0x906   :  { %v2423_v44 = vpop.eup %2422 }
 0x907   :  { %v948_v45 = vadd.f32 1.0, %v2423_v44 }
 0x909   :  { %v949_v46 = vmul.f32 0.5, %v948_v45 }
 0x90b   :  { %v951_v49 = vmul.f32 %v949_v46, %v716_v22 }
 0x977   :  { %v954_v47 = vpop.permute.xlu1 %953 }
 0x978   :  { %v956_v48 = vmul.f32 %v954_v47, %v949_v46 }
 0x97a   :  { %958 = vrot.lane.b32.xlu0 %v956_v48, %s2453_s29 }
 0x9ec   :  { %v959_v50 = vpop.permute.xlu0 %958 }
 0x9ed   :  { %v961_v51 = vadd.f32 %v959_v50, %v951_v49 }
 0x9ef   :  { %2424 = vtanh.f32 %v961_v51 }
 0x9fc   :  { %v2425_v52 = vpop.eup %2424 }
 0x9fd   :  { %964 = vrot.lane.b32.xlu1 %v2425_v52, %s2452_s26  ;;  %v2075_v52 = vld [vmem:[%s2905_s0 + $0x18] sm:$0xf] }
 0xa6f   :  { %v965_v53 = vpop.permute.xlu1 %964 }
 0xa70   :  { %v967_v54 = vmul.f32 %v965_v53, %v949_v46 }
 0xa72   :  { %969 = vrot.lane.b32.xlu0 %v967_v54, %s2453_s29 }
 0xae4   :  { %v970_v55 = vpop.permute.xlu0 %969 }
 0xae5   :  { %2287 = vmatmul.mubr.msk.f32.vlgmr.msra.gmra.mxu1 %vm46_vm1, %v970_v55  ;;  %2298 = vmatmul.mubr.msk.f32.vlgmr.msra.gmra.mxu0 %vm46_vm1, %v970_v55 }
 0xae6   :  { %2301 = vmatpush3.msra.mxu1 %v2548_v6  ;;  %2302 = vmatprep.mubr.msk.f32.mxu1 %vm2451_vm0, %v2450_v0 }
 0xae7   :  { %2316 = vmatprep.subr.mxu1 %v2450_v0  ;;  %2306 = vmatpush3.msra.mxu0 %v2589_v27 }
 0xae8   :  { %2307 = vmatprep.subr.mxu0 %v2450_v0  ;;  %2313 = vmatprep.mubr.msk.f32.mxu0 %vm2451_vm0, %v2450_v0 }
 0xae9   :  { %2303 = vmatmul.mubr.msk.f32.vlgmr.msra.gmra.mxu1 %vm120_vm2, %v2065_v56  ;;  %2308 = vmatpush3.msra.mxu0 %v2594_v28 }
 0xaea   :  { %2317 = vmatpush3.msra.mxu1 %v2514_v1  ;;  %2309 = vmatprep.subr.mxu0 %v2450_v0 }
 0xaeb   :  { %2318 = vmatprep.subr.mxu1 %v2450_v0  ;;  %2310 = vmatpush3.msra.mxu0 %v2601_v29 }
 0xaec   :  { %2319 = vmatpush3.msra.mxu1 %v2519_v2  ;;  %2311 = vmatprep.subr.mxu0 %v2450_v0 }
 0xaed   :  { %2320 = vmatprep.subr.mxu1 %v2450_v0  ;;  %2312 = vmatpush3.msra.mxu0 %v2608_v30 }
 0xaee   :  { %2321 = vmatpush3.msra.mxu1 %v2529_v3  ;;  %2324 = vmatprep.mubr.msk.f32.mxu1 %vm2451_vm0, %v2450_v0 }
 0xaef   :  { %2322 = vmatprep.subr.mxu1 %v2450_v0  ;;  %2327 = vmatprep.subr.mxu0 %v2450_v0 }
 0xaf0   :  { %2323 = vmatpush3.msra.mxu1 %v2538_v4 }
 0xaf1   :  { %2332 = vmatprep.subr.mxu1 %v2450_v0 }
 0xba5   :  { %v1039_v57 = vpop.f32.mrf.mxu1  ;;  %v1113_v58 = vpop.f32.mrf.mxu0 }
 0xba6   :  { %v1040_v59 = vadd.f32 %v2649_v36, %v1039_v57 }
 0xba7   :  { %v2288_v60 = vpop.f32.mrf.mxu1  ;;  %v2299_v61 = vpop.f32.mrf.mxu0 }
 0xba8   :  { %2064 = vst.msk [vmem:[%s2910_s8 + $0xc] sm:$0xf] %vm308_vm3, %v1040_v59 }
 0xba9   :  { %v1186_v62 = vpop.f32.mrf.mxu1 }
 0xbaa   :  { %v1187_v63 = vadd.f32 %v1186_v62, %v1113_v58 }
 0xbab   :  { %v2304_v5 = vpop.f32.mrf.mxu1 }
 0xbac   :  { %v1190_v7 = vadd.f32 %v2574_v10, %v1187_v63 }
 0xbae   :  { %2426 = vtanh.f32 %v1190_v7  ;;  %v1191_v9 = vmul.f32 0.5, %v1190_v7 }
 0xbb0   :  { %2428 = vtanh.f32 %v1191_v9 }
 0xbbb   :  { %v2427_v8 = vpop.eup %2426 }
 0xbbc   :  { %1198 = vrot.lane.b32.xlu1 %v2427_v8, %s2452_s26 }
 0xbbd   :  { %v2429_v11 = vpop.eup %2428 }
 0xbbe   :  { %v1193_v12 = vadd.f32 1.0, %v2429_v11 }
 0xbc0   :  { %v1194_v13 = vmul.f32 0.5, %v1193_v12 }
 0xbc2   :  { %v1196_v16 = vmul.f32 %v1194_v13, %v961_v51 }
 0xc2e   :  { %v1199_v14 = vpop.permute.xlu1 %1198 }
 0xc2f   :  { %v1201_v15 = vmul.f32 %v1199_v14, %v1194_v13 }
 0xc31   :  { %1203 = vrot.lane.b32.xlu0 %v1201_v15, %s2453_s29  ;;  %v2080_v15 = vld [vmem:[%s2905_s0 + $0x1c] sm:$0xf] }
 0xca3   :  { %v1204_v17 = vpop.permute.xlu0 %1203 }
 0xca4   :  { %v1206_v18 = vadd.f32 %v1204_v17, %v1196_v16 }
 0xca6   :  { %2430 = vtanh.f32 %v1206_v18 }
 0xcb3   :  { %v2431_v19 = vpop.eup %2430 }
 0xcb4   :  { %1209 = vrot.lane.b32.xlu1 %v2431_v19, %s2452_s26 }
 0xd26   :  { %v1210_v20 = vpop.permute.xlu1 %1209 }
 0xd27   :  { %v1212_v21 = vmul.f32 %v1210_v20, %v1194_v13 }
 0xd29   :  { %1214 = vrot.lane.b32.xlu0 %v1212_v21, %s2453_s29 }
 0xd9b   :  { %v1215_v22 = vpop.permute.xlu0 %1214 }
 0xd9c   :  { %2314 = vmatmul.mubr.msk.f32.vlgmr.msra.gmra.mxu0 %vm46_vm1, %v1215_v22  ;;  %2325 = vmatmul.mubr.msk.f32.vlgmr.msra.gmra.mxu1 %vm46_vm1, %v1215_v22 }
 0xd9d   :  { %2328 = vmatpush3.msra.mxu0 %v2548_v6  ;;  %2329 = vmatprep.mubr.msk.f32.mxu0 %vm2451_vm0, %v2450_v0 }
 0xd9e   :  { %2343 = vmatprep.subr.mxu0 %v2450_v0  ;;  %2333 = vmatpush3.msra.mxu1 %v2589_v27 }
 0xd9f   :  { %2334 = vmatprep.subr.mxu1 %v2450_v0  ;;  %2340 = vmatprep.mubr.msk.f32.mxu1 %vm2451_vm0, %v2450_v0 }
 0xda0   :  { %2330 = vmatmul.mubr.msk.f32.vlgmr.msra.gmra.mxu0 %vm120_vm2, %v2070_v23  ;;  %2335 = vmatpush3.msra.mxu1 %v2594_v28 }
 0xda1   :  { %2344 = vmatpush3.msra.mxu0 %v2514_v1  ;;  %2336 = vmatprep.subr.mxu1 %v2450_v0 }
 0xda2   :  { %2345 = vmatprep.subr.mxu0 %v2450_v0  ;;  %2337 = vmatpush3.msra.mxu1 %v2601_v29 }
 0xda3   :  { %2346 = vmatpush3.msra.mxu0 %v2519_v2  ;;  %2338 = vmatprep.subr.mxu1 %v2450_v0 }
 0xda4   :  { %2347 = vmatprep.subr.mxu0 %v2450_v0  ;;  %2339 = vmatpush3.msra.mxu1 %v2608_v30 }
 0xda5   :  { %2348 = vmatpush3.msra.mxu0 %v2529_v3  ;;  %2351 = vmatprep.mubr.msk.f32.mxu0 %vm2451_vm0, %v2450_v0 }
 0xda6   :  { %2349 = vmatprep.subr.mxu0 %v2450_v0  ;;  %2354 = vmatprep.subr.mxu1 %v2450_v0 }
 0xda7   :  { %2350 = vmatpush3.msra.mxu0 %v2538_v4 }
 0xda8   :  { %2359 = vmatprep.subr.mxu0 %v2450_v0 }
 0xe5c   :  { %v1284_v24 = vpop.f32.mrf.mxu0  ;;  %v1358_v25 = vpop.f32.mrf.mxu1 }
 0xe5d   :  { %v1285_v26 = vadd.f32 %v2649_v36, %v1284_v24 }
 0xe5e   :  { %v2315_v31 = vpop.f32.mrf.mxu0  ;;  %v2326_v32 = vpop.f32.mrf.mxu1 }
 0xe5f   :  { %2069 = vst.msk [vmem:[%s2910_s8 + $0x10] sm:$0xf] %vm308_vm3, %v1285_v26 }
 0xe60   :  { %v1431_v33 = vpop.f32.mrf.mxu0 }
 0xe61   :  { %v1432_v34 = vadd.f32 %v1431_v33, %v1358_v25 }
 0xe62   :  { %v2331_v35 = vpop.f32.mrf.mxu0 }
 0xe63   :  { %v1435_v37 = vadd.f32 %v2574_v10, %v1432_v34 }
 0xe65   :  { %2432 = vtanh.f32 %v1435_v37  ;;  %v1436_v39 = vmul.f32 0.5, %v1435_v37 }
 0xe67   :  { %2434 = vtanh.f32 %v1436_v39 }
 0xe72   :  { %v2433_v38 = vpop.eup %2432 }
 0xe73   :  { %1443 = vrot.lane.b32.xlu1 %v2433_v38, %s2452_s26 }
 0xe74   :  { %v2435_v40 = vpop.eup %2434 }
 0xe75   :  { %v1438_v41 = vadd.f32 1.0, %v2435_v40 }
 0xe77   :  { %v1439_v42 = vmul.f32 0.5, %v1438_v41 }
 0xe79   :  { %v1441_v45 = vmul.f32 %v1439_v42, %v1206_v18 }
 0xee5   :  { %v1444_v43 = vpop.permute.xlu1 %1443 }
 0xee6   :  { %v1446_v44 = vmul.f32 %v1444_v43, %v1439_v42 }
 0xee8   :  { %1448 = vrot.lane.b32.xlu0 %v1446_v44, %s2453_s29 }
 0xf5a   :  { %v1449_v46 = vpop.permute.xlu0 %1448 }
 0xf5b   :  { %v1451_v47 = vadd.f32 %v1449_v46, %v1441_v45 }
 0xf5d   :  { %2436 = vtanh.f32 %v1451_v47 }
 0xf6a   :  { %v2437_v48 = vpop.eup %2436 }
 0xf6b   :  { %1454 = vrot.lane.b32.xlu1 %v2437_v48, %s2452_s26 }
 0xfdd   :  { %v1455_v49 = vpop.permute.xlu1 %1454 }
 0xfde   :  { %v1457_v50 = vmul.f32 %v1455_v49, %v1439_v42 }
 0xfe0   :  { %1459 = vrot.lane.b32.xlu0 %v1457_v50, %s2453_s29 }
0x1052   :  { %v1460_v51 = vpop.permute.xlu0 %1459 }
0x1053   :  { %2341 = vmatmul.mubr.msk.f32.vlgmr.msra.gmra.mxu1 %vm46_vm1, %v1460_v51  ;;  %2352 = vmatmul.mubr.msk.f32.vlgmr.msra.gmra.mxu0 %vm46_vm1, %v1460_v51 }
0x1054   :  { %2355 = vmatpush3.msra.mxu1 %v2548_v6  ;;  %2356 = vmatprep.mubr.msk.f32.mxu1 %vm2451_vm0, %v2450_v0 }
0x1055   :  { %2370 = vmatprep.subr.mxu1 %v2450_v0  ;;  %2360 = vmatpush3.msra.mxu0 %v2589_v27 }
0x1056   :  { %2361 = vmatprep.subr.mxu0 %v2450_v0  ;;  %2367 = vmatprep.mubr.msk.f32.mxu0 %vm2451_vm0, %v2450_v0 }
0x1057   :  { %2357 = vmatmul.mubr.msk.f32.vlgmr.msra.gmra.mxu1 %vm120_vm2, %v2075_v52  ;;  %2362 = vmatpush3.msra.mxu0 %v2594_v28 }
0x1058   :  { %2371 = vmatpush3.msra.mxu1 %v2514_v1  ;;  %2363 = vmatprep.subr.mxu0 %v2450_v0 }
0x1059   :  { %2372 = vmatprep.subr.mxu1 %v2450_v0  ;;  %2364 = vmatpush3.msra.mxu0 %v2601_v29 }
0x105a   :  { %2373 = vmatpush3.msra.mxu1 %v2519_v2  ;;  %2365 = vmatprep.subr.mxu0 %v2450_v0 }
0x105b   :  { %2374 = vmatprep.subr.mxu1 %v2450_v0  ;;  %2366 = vmatpush3.msra.mxu0 %v2608_v30 }
0x105c   :  { %2375 = vmatpush3.msra.mxu1 %v2529_v3  ;;  %2378 = vmatprep.mubr.msk.f32.mxu1 %vm2451_vm0, %v2450_v0 }
0x105d   :  { %2376 = vmatprep.subr.mxu1 %v2450_v0  ;;  %2381 = vmatprep.subr.mxu0 %v2450_v0 }
0x105e   :  { %2377 = vmatpush3.msra.mxu1 %v2538_v4 }
0x105f   :  { %2386 = vmatprep.subr.mxu1 %v2450_v0 }
0x1113   :  { %v1529_v1 = vpop.f32.mrf.mxu1  ;;  %v1603_v2 = vpop.f32.mrf.mxu0 }
0x1114   :  { %v1530_v53 = vadd.f32 %v2649_v36, %v1529_v1 }
0x1115   :  { %v2342_v54 = vpop.f32.mrf.mxu1  ;;  %v2353_v55 = vpop.f32.mrf.mxu0 }
0x1116   :  { %2074 = vst.msk [vmem:[%s2910_s8 + $0x14] sm:$0xf] %vm308_vm3, %v1530_v53 }
0x1117   :  { %v1676_v3 = vpop.f32.mrf.mxu1 }
0x1118   :  { %v1677_v56 = vadd.f32 %v1676_v3, %v1603_v2 }
0x1119   :  { %v2358_v57 = vpop.f32.mrf.mxu1 }
0x111a   :  { %v1680_v58 = vadd.f32 %v2574_v10, %v1677_v56 }
0x111c   :  { %2438 = vtanh.f32 %v1680_v58  ;;  %v1681_v59 = vmul.f32 0.5, %v1680_v58 }
0x111e   :  { %2440 = vtanh.f32 %v1681_v59 }
0x1129   :  { %v2439_v4 = vpop.eup %2438 }
0x112a   :  { %1688 = vrot.lane.b32.xlu1 %v2439_v4, %s2452_s26 }
0x112b   :  { %v2441_v60 = vpop.eup %2440 }
0x112c   :  { %v1683_v61 = vadd.f32 1.0, %v2441_v60 }
0x112e   :  { %v1684_v62 = vmul.f32 0.5, %v1683_v61 }
0x1130   :  { %v1686_v7 = vmul.f32 %v1684_v62, %v1451_v47 }
0x119c   :  { %v1689_v63 = vpop.permute.xlu1 %1688 }
0x119d   :  { %v1691_v5 = vmul.f32 %v1689_v63, %v1684_v62 }
0x119f   :  { %1693 = vrot.lane.b32.xlu0 %v1691_v5, %s2453_s29 }
0x1211   :  { %v1694_v8 = vpop.permute.xlu0 %1693 }
0x1212   :  { %v1696_v9 = vadd.f32 %v1694_v8, %v1686_v7 }
0x1214   :  { %2442 = vtanh.f32 %v1696_v9 }
0x1221   :  { %v2443_v11 = vpop.eup %2442 }
0x1222   :  { %1699 = vrot.lane.b32.xlu1 %v2443_v11, %s2452_s26 }
0x1294   :  { %v1700_v12 = vpop.permute.xlu1 %1699 }
0x1295   :  { %v1702_v13 = vmul.f32 %v1700_v12, %v1684_v62 }
0x1297   :  { %1704 = vrot.lane.b32.xlu0 %v1702_v13, %s2453_s29 }
0x1309   :  { %v1705_v14 = vpop.permute.xlu0 %1704 }
0x130a   :  { %2368 = vmatmul.mubr.msk.f32.vlgmr.msra.gmra.mxu0 %vm46_vm1, %v1705_v14  ;;  %2379 = vmatmul.mubr.msk.f32.vlgmr.msra.gmra.mxu1 %vm46_vm1, %v1705_v14 }
0x130b   :  { %2382 = vmatpush3.msra.mxu0 %v2548_v6  ;;  %2383 = vmatprep.mubr.msk.f32.mxu0 %vm2451_vm0, %v2450_v0 }
0x130c   :  { %2387 = vmatpush3.msra.mxu1 %v2589_v27  ;;  %2394 = vmatprep.mubr.msk.f32.mxu1 %vm2451_vm0, %v2450_v0 }
0x130d   :  { %2388 = vmatprep.subr.mxu1 %v2450_v0 }
0x130e   :  { %2384 = vmatmul.mubr.msk.f32.vlgmr.msra.gmra.mxu0 %vm120_vm2, %v2080_v15  ;;  %2389 = vmatpush3.msra.mxu1 %v2594_v28 }
0x130f   :  { %2390 = vmatprep.subr.mxu1 %v2450_v0 }
0x1310   :  { %2391 = vmatpush3.msra.mxu1 %v2601_v29 }
0x1311   :  { %2392 = vmatprep.subr.mxu1 %v2450_v0 }
0x1312   :  { %2393 = vmatpush3.msra.mxu1 %v2608_v30 }
0x13ca   :  { %v1774_v6 = vpop.f32.mrf.mxu0  ;;  %v1848_v16 = vpop.f32.mrf.mxu1 }
0x13cb   :  { %v1775_v27 = vadd.f32 %v2649_v36, %v1774_v6 }
0x13cc   :  { %v2369_v17 = vpop.f32.mrf.mxu0  ;;  %v2380_v18 = vpop.f32.mrf.mxu1 }
0x13cd   :  { %2079 = vst.msk [vmem:[%s2910_s8 + $0x18] sm:$0xf] %vm308_vm3, %v1775_v27 }
0x13ce   :  { %v1921_v28 = vpop.f32.mrf.mxu0 }
0x13cf   :  { %v1922_v19 = vadd.f32 %v1921_v28, %v1848_v16 }
0x13d0   :  { %v2385_v20 = vpop.f32.mrf.mxu0 }
0x13d1   :  { %v1925_v29 = vadd.f32 %v2574_v10, %v1922_v19 }
0x13d3   :  { %2444 = vtanh.f32 %v1925_v29  ;;  %v1926_v30 = vmul.f32 0.5, %v1925_v29 }
0x13d5   :  { %2446 = vtanh.f32 %v1926_v30 }
0x13e0   :  { %v2445_v0 = vpop.eup %2444 }
0x13e1   :  { %1933 = vrot.lane.b32.xlu1 %v2445_v0, %s2452_s26 }
0x13e2   :  { %v2447_v21 = vpop.eup %2446 }
0x13e3   :  { %v1928_v22 = vadd.f32 1.0, %v2447_v21 }
0x13e5   :  { %v1929_v23 = vmul.f32 0.5, %v1928_v22 }
0x13e7   :  { %v1931_v26 = vmul.f32 %v1929_v23, %v1696_v9 }
0x1453   :  { %v1934_v24 = vpop.permute.xlu1 %1933 }
0x1454   :  { %v1936_v25 = vmul.f32 %v1934_v24, %v1929_v23 }
0x1456   :  { %1938 = vrot.lane.b32.xlu0 %v1936_v25, %s2453_s29 }
0x14c8   :  { %v1939_v31 = vpop.permute.xlu0 %1938 }
0x14c9   :  { %v1941_v32 = vadd.f32 %v1939_v31, %v1931_v26 }
0x14cb   :  { %2448 = vtanh.f32 %v1941_v32 }
0x14d8   :  { %v2449_v33 = vpop.eup %2448 }
0x14d9   :  { %1944 = vrot.lane.b32.xlu1 %v2449_v33, %s2452_s26 }
0x14dd   :  { %2029 = vrot.lane.b32.xlu1 %v1941_v32, %s2454_s19 }
0x154b   :  { %v1945_v10 = vpop.permute.xlu1 %1944 }
0x154c   :  { %v1947_v34 = vmul.f32 %v1945_v10, %v1929_v23 }
0x154e   :  { %1949 = vrot.lane.b32.xlu0 %v1947_v34, %s2453_s29 }
0x154f   :  { %v2030_v35 = vpop.permute.xlu1 %2029 }
0x1550   :  { %2032 = vst.msk [vmem:[%s2911_s10] sm:$0xf] %vm2026_vm4, %v2030_v35 }
0x15c0   :  { %v1950_v37 = vpop.permute.xlu0 %1949 }
0x15c1   :  { %2027 = vst.msk [vmem:[%s2912_s9] sm:$0xf] %vm2026_vm4, %v1950_v37  ;;  %2395 = vmatmul.mubr.msk.f32.vlgmr.msra.gmra.mxu1 %vm46_vm1, %v1950_v37 }
0x1681   :  { %v2019_v38 = vpop.f32.mrf.mxu1 }
0x1682   :  { %v2020_v39 = vadd.f32 %v2649_v36, %v2019_v38 }
0x1683   :  { %v2396_v40 = vpop.f32.mrf.mxu1 }
0x1684   :  { %2084 = vst.msk [vmem:[%s2910_s8 + $0x1c] sm:$0xf] %vm308_vm3, %v2020_v39 }

</bundles_post_ra>
